<compile_context>
chip_gen: v7x
topology: tpu7x:2x2x1
jax: 0.10.0
libtpu: 0.0.40
codegen_flags: <defaults>
</compile_context>

<pallas_src>
import jax
import jax.numpy as jnp
from jax.experimental import pallas as pl
from jax.experimental.pallas import tpu as pltpu


# ----------------------------------------------------------------------------
# In-kernel helpers (all sizes are static Python ints)
# ----------------------------------------------------------------------------
def _maxpool4_rows(y_scr, tp):
    """Max over groups of 4 consecutive rows of a VMEM scratch -> (tp, C) value."""
    a = jnp.maximum(y_scr[pl.ds(0, tp, stride=4), :],
                    y_scr[pl.ds(1, tp, stride=4), :])
    b = jnp.maximum(y_scr[pl.ds(2, tp, stride=4), :],
                    y_scr[pl.ds(3, tp, stride=4), :])
    return jnp.maximum(a, b)


def _tap3_add(z, t_out, c):
    """Recombine a tap-fused K=3 conv matmul Z = h @ [W0|W1|W2]:
    out[t] = Z[t,0:c] + Z[t+1,c:2c] + Z[t+2,2c:3c] for t < t_out."""
    return (z[0:t_out, 0:c]
            + z[1:t_out + 1, c:2 * c]
            + z[2:t_out + 2, 2 * c:3 * c])


# ----------------------------------------------------------------------------
# Fully fused forward kernel (one batch element per grid step)
# ----------------------------------------------------------------------------
def speech_command_kernel(x_ref, w1_ref, s1_ref, w2_ref, s2_ref, w3_ref, s3_ref,
                          w4_ref, s4_ref, fcw_ref, fcb_ref, o_ref,
                          y1, y2, y3):
    T1, C1 = y1.shape            # pre-pool conv1 rows actually consumed, n_channel
    T2, _ = y2.shape
    T3, C2 = y3.shape
    P1, P2, P3 = T1 // 4, T2 // 4, T3 // 4
    n_taps = w1_ref.shape[0]
    mxu_dtype = w1_ref.dtype

    # ---- conv1 (K=80, stride=16) as n_taps sublane-shifted bf16 matmuls -------------
    acc = jnp.dot(x_ref[0, pl.ds(0, T1), :].astype(mxu_dtype), w1_ref[0],
                  preferred_element_type=jnp.float32)
    for q in range(1, n_taps):
        acc = acc + jnp.dot(x_ref[0, pl.ds(q, T1), :].astype(mxu_dtype), w1_ref[q],
                            preferred_element_type=jnp.float32)
    y1[...] = acc
    # MaxPool(4) first; folded-BN shift + ReLU commute with max -> run on T1/4 rows.
    h1 = jnp.maximum(_maxpool4_rows(y1, P1) + s1_ref[...], 0.0).astype(mxu_dtype)

    # ---- conv2 (K=3): ONE tap-fused matmul + shifted adds + pool + shift/ReLU -------
    z2 = jnp.dot(h1, w2_ref[...], preferred_element_type=jnp.float32)      # (P1, 3*C1)
    y2[...] = _tap3_add(z2, T2, C1)
    h2 = jnp.maximum(_maxpool4_rows(y2, P2) + s2_ref[...], 0.0).astype(mxu_dtype)

    # ---- conv3 (K=3) -----------------------------------------------------------------
    z3 = jnp.dot(h2, w3_ref[...], preferred_element_type=jnp.float32)      # (P2, 3*C2)
    y3[...] = _tap3_add(z3, T3, C2)
    h3 = jnp.maximum(_maxpool4_rows(y3, P3) + s3_ref[...], 0.0).astype(mxu_dtype)

    # ---- conv4 (K=3) + MaxPool(4) + AvgPool + Linear + log_softmax (value-resident) --
    z4 = jnp.dot(h3, w4_ref[...], preferred_element_type=jnp.float32)      # (P3, 3*C2)
    n_win4 = (P3 - 2) // 4
    o4 = _tap3_add(z4, 4 * n_win4, C2)                                     # (4*n_win4, C2)
    feat = None
    for wi in range(n_win4):            # static; n_win4 == 1 at the default model sizes
        pw = jnp.max(o4[4 * wi:4 * wi + 4], axis=0, keepdims=True)         # (1, C2)
        hw = jnp.maximum(pw + s4_ref[...], 0.0)
        feat = hw if feat is None else feat + hw
    if n_win4 > 1:
        feat = feat * (1.0 / n_win4)    # avg_pool1d over the pooled length

    logits = jnp.dot(feat, fcw_ref[...],
                     preferred_element_type=jnp.float32) + fcb_ref[...]    # (1, n_out)
    m = jnp.max(logits, axis=-1, keepdims=True)
    z = logits - m
    o_ref[0] = z - jnp.log(jnp.sum(jnp.exp(z), axis=-1, keepdims=True))


# ----------------------------------------------------------------------------
# Wrapper: BN/bias folding, tap-fused weight packing, framing glue + pallas_call
# ----------------------------------------------------------------------------
def speech_command_forward(params, x, stride=16, eps=1e-5, mxu_dtype=jnp.bfloat16):
    """x: (B, n_input, L) float32  ->  (B, 1, n_output) log-probs (BatchNorm eval mode)."""
    B, Cin, L = x.shape
    w1, b1 = params["conv1"]; g1, be1, rm1, rv1 = params["bn1"]
    w2, b2 = params["conv2"]; g2, be2, rm2, rv2 = params["bn2"]
    w3, b3 = params["conv3"]; g3, be3, rm3, rv3 = params["bn3"]
    w4, b4 = params["conv4"]; g4, be4, rm4, rv4 = params["bn4"]
    fcw, fcb = params["fc1"]

    C1, _, K1 = w1.shape
    C2 = w3.shape[0]
    n_out = fcw.shape[0]

    # ---- static shape plumbing (only rows actually consumed by each pool) ----
    # TODO(synk): conv1 tap decomposition assumes kernel_size % stride == 0 (true for the
    # module defaults K=80, stride=16); other configs would need an in-kernel gather.
    assert K1 % stride == 0, "conv1 tap decomposition requires kernel_size % stride == 0"
    n_taps = K1 // stride
    n_frames = L // stride
    Lout1 = (L - K1) // stride + 1
    P1 = Lout1 // 4
    T1 = 4 * P1
    T2 = 4 * ((P1 - 2) // 4); P2 = T2 // 4
    T3 = 4 * ((P2 - 2) // 4); P3 = T3 // 4
    n_win4 = (P3 - 2) // 4
    assert P1 >= 3 and P2 >= 3 and P3 >= 3 and n_win4 >= 1, \
        "input length too short for the conv/pool chain"
    assert n_frames >= T1 + n_taps - 1

    # ---- metadata-only reframing of the raw waveform (no im2col HBM round trip) ----
    xf = x[:, :, :n_frames * stride].reshape(B, Cin, n_frames, stride)
    xf = jnp.transpose(xf, (0, 2, 1, 3)).reshape(B, n_frames, Cin * stride)

    # ---- fold conv bias + BatchNorm (eval mode) into weight scale / per-channel shift
    def fold(b, g, bt, rm, rv):
        scale = g / jnp.sqrt(rv + eps)
        shift = ((b - rm) * scale + bt).reshape(1, -1).astype(jnp.float32)
        return scale, shift

    sc1, s1 = fold(b1, g1, be1, rm1, rv1)
    sc2, s2 = fold(b2, g2, be2, rm2, rv2)
    sc3, s3 = fold(b3, g3, be3, rm3, rv3)
    sc4, s4 = fold(b4, g4, be4, rm4, rv4)

    # conv1 taps: (n_taps, Cin*stride, C1); tap q holds kernel columns [q*stride,(q+1)*stride)
    w1t = w1.reshape(C1, Cin, n_taps, stride)
    w1t = jnp.transpose(w1t, (2, 1, 3, 0)).reshape(n_taps, Cin * stride, C1)
    w1t = (w1t * sc1[None, None, :]).astype(mxu_dtype)

    # K=3 convs, taps fused along the output-lane axis: (C_in, 3*C_out)
    def cat3(w, sc):
        wt = jnp.transpose(w, (2, 1, 0)) * sc[None, None, :]            # (3, Cin, Cout)
        return jnp.concatenate([wt[0], wt[1], wt[2]], axis=1).astype(mxu_dtype)

    w2c, w3c, w4c = cat3(w2, sc2), cat3(w3, sc3), cat3(w4, sc4)
    fcw_t = fcw.T.astype(jnp.float32)                                   # (C2, n_out)
    fcb2 = fcb.reshape(1, n_out).astype(jnp.float32)

    out = pl.pallas_call(
        speech_command_kernel,
        out_shape=jax.ShapeDtypeStruct((B, 1, n_out), jnp.float32),
        grid=(B,),
        in_specs=[
            pl.BlockSpec((1, n_frames, Cin * stride), lambda b: (b, 0, 0)),  # framed x
            pl.BlockSpec((n_taps, Cin * stride, C1), lambda b: (0, 0, 0)),   # conv1 taps
            pl.BlockSpec((1, C1), lambda b: (0, 0)),                          # shift1
            pl.BlockSpec((C1, 3 * C1), lambda b: (0, 0)),                     # conv2 fused
            pl.BlockSpec((1, C1), lambda b: (0, 0)),                          # shift2
            pl.BlockSpec((C1, 3 * C2), lambda b: (0, 0)),                     # conv3 fused
            pl.BlockSpec((1, C2), lambda b: (0, 0)),                          # shift3
            pl.BlockSpec((C2, 3 * C2), lambda b: (0, 0)),                     # conv4 fused
            pl.BlockSpec((1, C2), lambda b: (0, 0)),                          # shift4
            pl.BlockSpec((C2, n_out), lambda b: (0, 0)),                      # fc weight
            pl.BlockSpec((1, n_out), lambda b: (0, 0)),                       # fc bias
        ],
        out_specs=pl.BlockSpec((1, 1, n_out), lambda b: (b, 0, 0)),
        scratch_shapes=[
            pltpu.VMEM((T1, C1), jnp.float32),   # y1: pre-pool conv1 rows (stride-4 pooled)
            pltpu.VMEM((T2, C1), jnp.float32),   # y2: pre-pool conv2 rows
            pltpu.VMEM((T3, C2), jnp.float32),   # y3: pre-pool conv3 rows
        ],
        compiler_params=pltpu.CompilerParams(
            dimension_semantics=("parallel",)),
    )(xf, w1t, s1, w2c, s2, w3c, s3, w4c, s4, fcw_t, fcb2)
    return out


# ----------------------------------------------------------------------------
# Parameter init (matches the PyTorch module's shapes)
# ----------------------------------------------------------------------------
def init_params(key, n_input=1, n_output=35, n_channel=32):
    ks = jax.random.split(key, 20)

    def conv_p(kw, kb, cout, cin, ksz):
        fan_in = cin * ksz
        w = jax.random.normal(kw, (cout, cin, ksz), jnp.float32) / jnp.sqrt(fan_in)
        b = 0.01 * jax.random.normal(kb, (cout,), jnp.float32)
        return w, b

    def bn_p(kg, kb, c):
        gamma = 1.0 + 0.1 * jax.random.normal(kg, (c,), jnp.float32)
        beta = 0.1 * jax.random.normal(kb, (c,), jnp.float32)
        rmean = jnp.zeros((c,), jnp.float32)
        rvar = jnp.ones((c,), jnp.float32)
        return gamma, beta, rmean, rvar

    p = {}
    p["conv1"] = conv_p(ks[0], ks[1], n_channel, n_input, 80)
    p["bn1"] = bn_p(ks[2], ks[3], n_channel)
    p["conv2"] = conv_p(ks[4], ks[5], n_channel, n_channel, 3)
    p["bn2"] = bn_p(ks[6], ks[7], n_channel)
    p["conv3"] = conv_p(ks[8], ks[9], 2 * n_channel, n_channel, 3)
    p["bn3"] = bn_p(ks[10], ks[11], 2 * n_channel)
    p["conv4"] = conv_p(ks[12], ks[13], 2 * n_channel, 2 * n_channel, 3)
    p["bn4"] = bn_p(ks[14], ks[15], 2 * n_channel)
    fc_w = jax.random.normal(ks[16], (n_output, 2 * n_channel), jnp.float32) / jnp.sqrt(2 * n_channel)
    fc_b = 0.01 * jax.random.normal(ks[17], (n_output,), jnp.float32)
    p["fc1"] = (fc_w, fc_b)
    return p


if __name__ == "__main__":
    key = jax.random.PRNGKey(0)
    k_param, k_x = jax.random.split(key)

    B, n_input, L = 2, 1, 8000   # 1 s of 8 kHz audio; smallest round length for the chain
    params = init_params(k_param)
    x = jax.random.normal(k_x, (B, n_input, L), jnp.float32)

    fwd = jax.jit(speech_command_forward)
    out = jax.block_until_ready(fwd(params, x))

    assert out.shape == (B, 1, 35), out.shape
    assert bool(jnp.all(jnp.isfinite(out)))
    probs_sum = jnp.exp(out).sum(axis=-1)
    assert bool(jnp.allclose(probs_sum, 1.0, atol=1e-4))
    print("KERNEL_OK")
</pallas_src>

<mosaic_0001>
module attributes {stable_mosaic.version = 11 : i64} {
  func.func @speech_command_kernel(%arg0: i32, %arg1: memref<1x500x16xf32, #tpu.memory_space<vmem>>, %arg2: memref<5x16x32xbf16, #tpu.memory_space<vmem>>, %arg3: memref<1x32xf32, #tpu.memory_space<vmem>>, %arg4: memref<32x96xbf16, #tpu.memory_space<vmem>>, %arg5: memref<1x32xf32, #tpu.memory_space<vmem>>, %arg6: memref<32x192xbf16, #tpu.memory_space<vmem>>, %arg7: memref<1x64xf32, #tpu.memory_space<vmem>>, %arg8: memref<64x192xbf16, #tpu.memory_space<vmem>>, %arg9: memref<1x64xf32, #tpu.memory_space<vmem>>, %arg10: memref<64x35xf32, #tpu.memory_space<vmem>>, %arg11: memref<1x35xf32, #tpu.memory_space<vmem>>, %arg12: memref<1x1x35xf32, #tpu.memory_space<vmem>>, %arg13: memref<496x32xf32, #tpu.memory_space<vmem>>, %arg14: memref<120x32xf32, #tpu.memory_space<vmem>>, %arg15: memref<28x64xf32, #tpu.memory_space<vmem>>) attributes {dimension_semantics = [#tpu.dimension_semantics<parallel>], iteration_bounds = array<i64: 2>, scalar_prefetch = 0 : i64, scratch_operands = 3 : i64, tpu.core_type = #tpu.core_type<tc>, window_params = [{transform_indices = @transform_0, window_bounds = array<i64: 1, 500, 16>}, {pipeline_mode = #tpu.pipeline_mode<synchronous>, transform_indices = @transform_1, window_bounds = array<i64: 5, 16, 32>}, {pipeline_mode = #tpu.pipeline_mode<synchronous>, transform_indices = @transform_2, window_bounds = array<i64: 1, 32>}, {pipeline_mode = #tpu.pipeline_mode<synchronous>, transform_indices = @transform_3, window_bounds = array<i64: 32, 96>}, {pipeline_mode = #tpu.pipeline_mode<synchronous>, transform_indices = @transform_4, window_bounds = array<i64: 1, 32>}, {pipeline_mode = #tpu.pipeline_mode<synchronous>, transform_indices = @transform_5, window_bounds = array<i64: 32, 192>}, {pipeline_mode = #tpu.pipeline_mode<synchronous>, transform_indices = @transform_6, window_bounds = array<i64: 1, 64>}, {pipeline_mode = #tpu.pipeline_mode<synchronous>, transform_indices = @transform_7, window_bounds = array<i64: 64, 192>}, {pipeline_mode = #tpu.pipeline_mode<synchronous>, transform_indices = @transform_8, window_bounds = array<i64: 1, 64>}, {pipeline_mode = #tpu.pipeline_mode<synchronous>, transform_indices = @transform_9, window_bounds = array<i64: 64, 35>}, {pipeline_mode = #tpu.pipeline_mode<synchronous>, transform_indices = @transform_10, window_bounds = array<i64: 1, 35>}, {transform_indices = @transform_11, window_bounds = array<i64: 1, 1, 35>}]} {
    %c0 = arith.constant 0 : index
    %c0_0 = arith.constant 0 : index
    %c0_1 = arith.constant 0 : index
    %0 = vector.load %arg1[%c0, %c0_0, %c0_1] : memref<1x500x16xf32, #tpu.memory_space<vmem>>, vector<1x496x16xf32>
    %1 = vector.shape_cast %0 : vector<1x496x16xf32> to vector<496x16xf32>
    %2 = arith.truncf %1 : vector<496x16xf32> to vector<496x16xbf16>
    %c0_2 = arith.constant 0 : index
    %c0_3 = arith.constant 0 : index
    %c0_4 = arith.constant 0 : index
    %3 = vector.load %arg2[%c0_2, %c0_3, %c0_4] : memref<5x16x32xbf16, #tpu.memory_space<vmem>>, vector<1x16x32xbf16>
    %4 = vector.shape_cast %3 : vector<1x16x32xbf16> to vector<16x32xbf16>
    %cst = arith.constant dense<0.000000e+00> : vector<496x32xf32>
    %5 = tpu.matmul %2, %4, %cst {dimension_numbers = #tpu.dot_dimension_numbers<[1], [0], [0], [1], [0, 0, 1, 1], [], []>} : vector<496x16xbf16>, vector<16x32xbf16>, vector<496x32xf32> -> vector<496x32xf32>
    %c0_5 = arith.constant 0 : index
    %c1 = arith.constant 1 : index
    %c0_6 = arith.constant 0 : index
    %6 = vector.load %arg1[%c0_5, %c1, %c0_6] : memref<1x500x16xf32, #tpu.memory_space<vmem>>, vector<1x496x16xf32>
    %7 = vector.shape_cast %6 : vector<1x496x16xf32> to vector<496x16xf32>
    %8 = arith.truncf %7 : vector<496x16xf32> to vector<496x16xbf16>
    %c1_7 = arith.constant 1 : index
    %c0_8 = arith.constant 0 : index
    %c0_9 = arith.constant 0 : index
    %9 = vector.load %arg2[%c1_7, %c0_8, %c0_9] : memref<5x16x32xbf16, #tpu.memory_space<vmem>>, vector<1x16x32xbf16>
    %10 = vector.shape_cast %9 : vector<1x16x32xbf16> to vector<16x32xbf16>
    %cst_10 = arith.constant dense<0.000000e+00> : vector<496x32xf32>
    %11 = tpu.matmul %8, %10, %cst_10 {dimension_numbers = #tpu.dot_dimension_numbers<[1], [0], [0], [1], [0, 0, 1, 1], [], []>} : vector<496x16xbf16>, vector<16x32xbf16>, vector<496x32xf32> -> vector<496x32xf32>
    %12 = arith.addf %5, %11 : vector<496x32xf32>
    %c0_11 = arith.constant 0 : index
    %c2 = arith.constant 2 : index
    %c0_12 = arith.constant 0 : index
    %13 = vector.load %arg1[%c0_11, %c2, %c0_12] : memref<1x500x16xf32, #tpu.memory_space<vmem>>, vector<1x496x16xf32>
    %14 = vector.shape_cast %13 : vector<1x496x16xf32> to vector<496x16xf32>
    %15 = arith.truncf %14 : vector<496x16xf32> to vector<496x16xbf16>
    %c2_13 = arith.constant 2 : index
    %c0_14 = arith.constant 0 : index
    %c0_15 = arith.constant 0 : index
    %16 = vector.load %arg2[%c2_13, %c0_14, %c0_15] : memref<5x16x32xbf16, #tpu.memory_space<vmem>>, vector<1x16x32xbf16>
    %17 = vector.shape_cast %16 : vector<1x16x32xbf16> to vector<16x32xbf16>
    %cst_16 = arith.constant dense<0.000000e+00> : vector<496x32xf32>
    %18 = tpu.matmul %15, %17, %cst_16 {dimension_numbers = #tpu.dot_dimension_numbers<[1], [0], [0], [1], [0, 0, 1, 1], [], []>} : vector<496x16xbf16>, vector<16x32xbf16>, vector<496x32xf32> -> vector<496x32xf32>
    %19 = arith.addf %12, %18 : vector<496x32xf32>
    %c0_17 = arith.constant 0 : index
    %c3 = arith.constant 3 : index
    %c0_18 = arith.constant 0 : index
    %20 = vector.load %arg1[%c0_17, %c3, %c0_18] : memref<1x500x16xf32, #tpu.memory_space<vmem>>, vector<1x496x16xf32>
    %21 = vector.shape_cast %20 : vector<1x496x16xf32> to vector<496x16xf32>
    %22 = arith.truncf %21 : vector<496x16xf32> to vector<496x16xbf16>
    %c3_19 = arith.constant 3 : index
    %c0_20 = arith.constant 0 : index
    %c0_21 = arith.constant 0 : index
    %23 = vector.load %arg2[%c3_19, %c0_20, %c0_21] : memref<5x16x32xbf16, #tpu.memory_space<vmem>>, vector<1x16x32xbf16>
    %24 = vector.shape_cast %23 : vector<1x16x32xbf16> to vector<16x32xbf16>
    %cst_22 = arith.constant dense<0.000000e+00> : vector<496x32xf32>
    %25 = tpu.matmul %22, %24, %cst_22 {dimension_numbers = #tpu.dot_dimension_numbers<[1], [0], [0], [1], [0, 0, 1, 1], [], []>} : vector<496x16xbf16>, vector<16x32xbf16>, vector<496x32xf32> -> vector<496x32xf32>
    %26 = arith.addf %19, %25 : vector<496x32xf32>
    %c0_23 = arith.constant 0 : index
    %c4 = arith.constant 4 : index
    %c0_24 = arith.constant 0 : index
    %27 = vector.load %arg1[%c0_23, %c4, %c0_24] : memref<1x500x16xf32, #tpu.memory_space<vmem>>, vector<1x496x16xf32>
    %28 = vector.shape_cast %27 : vector<1x496x16xf32> to vector<496x16xf32>
    %29 = arith.truncf %28 : vector<496x16xf32> to vector<496x16xbf16>
    %c4_25 = arith.constant 4 : index
    %c0_26 = arith.constant 0 : index
    %c0_27 = arith.constant 0 : index
    %30 = vector.load %arg2[%c4_25, %c0_26, %c0_27] : memref<5x16x32xbf16, #tpu.memory_space<vmem>>, vector<1x16x32xbf16>
    %31 = vector.shape_cast %30 : vector<1x16x32xbf16> to vector<16x32xbf16>
    %cst_28 = arith.constant dense<0.000000e+00> : vector<496x32xf32>
    %32 = tpu.matmul %29, %31, %cst_28 {dimension_numbers = #tpu.dot_dimension_numbers<[1], [0], [0], [1], [0, 0, 1, 1], [], []>} : vector<496x16xbf16>, vector<16x32xbf16>, vector<496x32xf32> -> vector<496x32xf32>
    %33 = arith.addf %26, %32 : vector<496x32xf32>
    %c0_29 = arith.constant 0 : index
    %c0_30 = arith.constant 0 : index
    %34 = vector.load %arg13[%c0_29, %c0_30] : memref<496x32xf32, #tpu.memory_space<vmem>>, vector<496x32xf32>
    tpu.vector_store %arg13[%c0_29, %c0_30], %33 {strides = array<i32>} : memref<496x32xf32, #tpu.memory_space<vmem>>, vector<496x32xf32>,
    %c0_31 = arith.constant 0 : index
    %c0_32 = arith.constant 0 : index
    %35 = tpu.strided_load %arg13[%c0_31, %c0_32] {strides = array<i32: 4, 1>} : memref<496x32xf32, #tpu.memory_space<vmem>>, vector<124x32xf32>
    %c1_33 = arith.constant 1 : index
    %c0_34 = arith.constant 0 : index
    %36 = tpu.strided_load %arg13[%c1_33, %c0_34] {strides = array<i32: 4, 1>} : memref<496x32xf32, #tpu.memory_space<vmem>>, vector<124x32xf32>
    %37 = arith.maximumf %35, %36 : vector<124x32xf32>
    %c2_35 = arith.constant 2 : index
    %c0_36 = arith.constant 0 : index
    %38 = tpu.strided_load %arg13[%c2_35, %c0_36] {strides = array<i32: 4, 1>} : memref<496x32xf32, #tpu.memory_space<vmem>>, vector<124x32xf32>
    %c3_37 = arith.constant 3 : index
    %c0_38 = arith.constant 0 : index
    %39 = tpu.strided_load %arg13[%c3_37, %c0_38] {strides = array<i32: 4, 1>} : memref<496x32xf32, #tpu.memory_space<vmem>>, vector<124x32xf32>
    %40 = arith.maximumf %38, %39 : vector<124x32xf32>
    %41 = arith.maximumf %37, %40 : vector<124x32xf32>
    %c0_39 = arith.constant 0 : index
    %c0_40 = arith.constant 0 : index
    %42 = vector.load %arg3[%c0_39, %c0_40] : memref<1x32xf32, #tpu.memory_space<vmem>>, vector<1x32xf32>
    %43 = vector.broadcast %42 : vector<1x32xf32> to vector<124x32xf32>
    %44 = arith.addf %41, %43 : vector<124x32xf32>
    %cst_41 = arith.constant 0.000000e+00 : f32
    %45 = vector.broadcast %cst_41 : f32 to vector<124x32xf32>
    %46 = arith.maximumf %44, %45 : vector<124x32xf32>
    %47 = arith.truncf %46 : vector<124x32xf32> to vector<124x32xbf16>
    %c0_42 = arith.constant 0 : index
    %c0_43 = arith.constant 0 : index
    %48 = vector.load %arg4[%c0_42, %c0_43] : memref<32x96xbf16, #tpu.memory_space<vmem>>, vector<32x96xbf16>
    %cst_44 = arith.constant dense<0.000000e+00> : vector<124x96xf32>
    %49 = tpu.matmul %47, %48, %cst_44 {dimension_numbers = #tpu.dot_dimension_numbers<[1], [0], [0], [1], [0, 0, 1, 1], [], []>} : vector<124x32xbf16>, vector<32x96xbf16>, vector<124x96xf32> -> vector<124x96xf32>
    %50 = vector.extract_strided_slice %49 {offsets = [0, 0], sizes = [120, 32], strides = [1, 1]} : vector<124x96xf32> to vector<120x32xf32>
    %51 = vector.extract_strided_slice %49 {offsets = [1, 32], sizes = [120, 32], strides = [1, 1]} : vector<124x96xf32> to vector<120x32xf32>
    %52 = arith.addf %50, %51 : vector<120x32xf32>
    %53 = vector.extract_strided_slice %49 {offsets = [2, 64], sizes = [120, 32], strides = [1, 1]} : vector<124x96xf32> to vector<120x32xf32>
    %54 = arith.addf %52, %53 : vector<120x32xf32>
    %c0_45 = arith.constant 0 : index
    %c0_46 = arith.constant 0 : index
    %55 = vector.load %arg14[%c0_45, %c0_46] : memref<120x32xf32, #tpu.memory_space<vmem>>, vector<120x32xf32>
    tpu.vector_store %arg14[%c0_45, %c0_46], %54 {strides = array<i32>} : memref<120x32xf32, #tpu.memory_space<vmem>>, vector<120x32xf32>,
    %c0_47 = arith.constant 0 : index
    %c0_48 = arith.constant 0 : index
    %56 = tpu.strided_load %arg14[%c0_47, %c0_48] {strides = array<i32: 4, 1>} : memref<120x32xf32, #tpu.memory_space<vmem>>, vector<30x32xf32>
    %c1_49 = arith.constant 1 : index
    %c0_50 = arith.constant 0 : index
    %57 = tpu.strided_load %arg14[%c1_49, %c0_50] {strides = array<i32: 4, 1>} : memref<120x32xf32, #tpu.memory_space<vmem>>, vector<30x32xf32>
    %58 = arith.maximumf %56, %57 : vector<30x32xf32>
    %c2_51 = arith.constant 2 : index
    %c0_52 = arith.constant 0 : index
    %59 = tpu.strided_load %arg14[%c2_51, %c0_52] {strides = array<i32: 4, 1>} : memref<120x32xf32, #tpu.memory_space<vmem>>, vector<30x32xf32>
    %c3_53 = arith.constant 3 : index
    %c0_54 = arith.constant 0 : index
    %60 = tpu.strided_load %arg14[%c3_53, %c0_54] {strides = array<i32: 4, 1>} : memref<120x32xf32, #tpu.memory_space<vmem>>, vector<30x32xf32>
    %61 = arith.maximumf %59, %60 : vector<30x32xf32>
    %62 = arith.maximumf %58, %61 : vector<30x32xf32>
    %c0_55 = arith.constant 0 : index
    %c0_56 = arith.constant 0 : index
    %63 = vector.load %arg5[%c0_55, %c0_56] : memref<1x32xf32, #tpu.memory_space<vmem>>, vector<1x32xf32>
    %64 = vector.broadcast %63 : vector<1x32xf32> to vector<30x32xf32>
    %65 = arith.addf %62, %64 : vector<30x32xf32>
    %cst_57 = arith.constant 0.000000e+00 : f32
    %66 = vector.broadcast %cst_57 : f32 to vector<30x32xf32>
    %67 = arith.maximumf %65, %66 : vector<30x32xf32>
    %68 = arith.truncf %67 : vector<30x32xf32> to vector<30x32xbf16>
    %c0_58 = arith.constant 0 : index
    %c0_59 = arith.constant 0 : index
    %69 = vector.load %arg6[%c0_58, %c0_59] : memref<32x192xbf16, #tpu.memory_space<vmem>>, vector<32x192xbf16>
    %cst_60 = arith.constant dense<0.000000e+00> : vector<30x192xf32>
    %70 = tpu.matmul %68, %69, %cst_60 {dimension_numbers = #tpu.dot_dimension_numbers<[1], [0], [0], [1], [0, 0, 1, 1], [], []>} : vector<30x32xbf16>, vector<32x192xbf16>, vector<30x192xf32> -> vector<30x192xf32>
    %71 = vector.extract_strided_slice %70 {offsets = [0, 0], sizes = [28, 64], strides = [1, 1]} : vector<30x192xf32> to vector<28x64xf32>
    %72 = vector.extract_strided_slice %70 {offsets = [1, 64], sizes = [28, 64], strides = [1, 1]} : vector<30x192xf32> to vector<28x64xf32>
    %73 = arith.addf %71, %72 : vector<28x64xf32>
    %74 = vector.extract_strided_slice %70 {offsets = [2, 128], sizes = [28, 64], strides = [1, 1]} : vector<30x192xf32> to vector<28x64xf32>
    %75 = arith.addf %73, %74 : vector<28x64xf32>
    %c0_61 = arith.constant 0 : index
    %c0_62 = arith.constant 0 : index
    %76 = vector.load %arg15[%c0_61, %c0_62] : memref<28x64xf32, #tpu.memory_space<vmem>>, vector<28x64xf32>
    tpu.vector_store %arg15[%c0_61, %c0_62], %75 {strides = array<i32>} : memref<28x64xf32, #tpu.memory_space<vmem>>, vector<28x64xf32>,
    %c0_63 = arith.constant 0 : index
    %c0_64 = arith.constant 0 : index
    %77 = tpu.strided_load %arg15[%c0_63, %c0_64] {strides = array<i32: 4, 1>} : memref<28x64xf32, #tpu.memory_space<vmem>>, vector<7x64xf32>
    %c1_65 = arith.constant 1 : index
    %c0_66 = arith.constant 0 : index
    %78 = tpu.strided_load %arg15[%c1_65, %c0_66] {strides = array<i32: 4, 1>} : memref<28x64xf32, #tpu.memory_space<vmem>>, vector<7x64xf32>
    %79 = arith.maximumf %77, %78 : vector<7x64xf32>
    %c2_67 = arith.constant 2 : index
    %c0_68 = arith.constant 0 : index
    %80 = tpu.strided_load %arg15[%c2_67, %c0_68] {strides = array<i32: 4, 1>} : memref<28x64xf32, #tpu.memory_space<vmem>>, vector<7x64xf32>
    %c3_69 = arith.constant 3 : index
    %c0_70 = arith.constant 0 : index
    %81 = tpu.strided_load %arg15[%c3_69, %c0_70] {strides = array<i32: 4, 1>} : memref<28x64xf32, #tpu.memory_space<vmem>>, vector<7x64xf32>
    %82 = arith.maximumf %80, %81 : vector<7x64xf32>
    %83 = arith.maximumf %79, %82 : vector<7x64xf32>
    %c0_71 = arith.constant 0 : index
    %c0_72 = arith.constant 0 : index
    %84 = vector.load %arg7[%c0_71, %c0_72] : memref<1x64xf32, #tpu.memory_space<vmem>>, vector<1x64xf32>
    %85 = vector.broadcast %84 : vector<1x64xf32> to vector<7x64xf32>
    %86 = arith.addf %83, %85 : vector<7x64xf32>
    %cst_73 = arith.constant 0.000000e+00 : f32
    %87 = vector.broadcast %cst_73 : f32 to vector<7x64xf32>
    %88 = arith.maximumf %86, %87 : vector<7x64xf32>
    %89 = arith.truncf %88 : vector<7x64xf32> to vector<7x64xbf16>
    %c0_74 = arith.constant 0 : index
    %c0_75 = arith.constant 0 : index
    %90 = vector.load %arg8[%c0_74, %c0_75] : memref<64x192xbf16, #tpu.memory_space<vmem>>, vector<64x192xbf16>
    %cst_76 = arith.constant dense<0.000000e+00> : vector<7x192xf32>
    %91 = tpu.matmul %89, %90, %cst_76 {dimension_numbers = #tpu.dot_dimension_numbers<[1], [0], [0], [1], [0, 0, 1, 1], [], []>} : vector<7x64xbf16>, vector<64x192xbf16>, vector<7x192xf32> -> vector<7x192xf32>
    %92 = vector.extract_strided_slice %91 {offsets = [0, 0], sizes = [4, 64], strides = [1, 1]} : vector<7x192xf32> to vector<4x64xf32>
    %93 = vector.extract_strided_slice %91 {offsets = [1, 64], sizes = [4, 64], strides = [1, 1]} : vector<7x192xf32> to vector<4x64xf32>
    %94 = arith.addf %92, %93 : vector<4x64xf32>
    %95 = vector.extract_strided_slice %91 {offsets = [2, 128], sizes = [4, 64], strides = [1, 1]} : vector<7x192xf32> to vector<4x64xf32>
    %96 = arith.addf %94, %95 : vector<4x64xf32>
    %cst_77 = arith.constant dense<0xFF800000> : vector<64xf32>
    %97 = vector.multi_reduction <maximumf>, %96, %cst_77 [0] : vector<4x64xf32> to vector<64xf32>
    %98 = vector.shape_cast %97 : vector<64xf32> to vector<1x64xf32>
    %c0_78 = arith.constant 0 : index
    %c0_79 = arith.constant 0 : index
    %99 = vector.load %arg9[%c0_78, %c0_79] : memref<1x64xf32, #tpu.memory_space<vmem>>, vector<1x64xf32>
    %100 = arith.addf %98, %99 : vector<1x64xf32>
    %cst_80 = arith.constant 0.000000e+00 : f32
    %101 = vector.broadcast %cst_80 : f32 to vector<1x64xf32>
    %102 = arith.maximumf %100, %101 : vector<1x64xf32>
    %c0_81 = arith.constant 0 : index
    %c0_82 = arith.constant 0 : index
    %103 = vector.load %arg10[%c0_81, %c0_82] : memref<64x35xf32, #tpu.memory_space<vmem>>, vector<64x35xf32>
    %cst_83 = arith.constant dense<0.000000e+00> : vector<1x35xf32>
    %104 = tpu.matmul %102, %103, %cst_83 {dimension_numbers = #tpu.dot_dimension_numbers<[1], [0], [0], [1], [0, 0, 1, 1], [], []>} : vector<1x64xf32>, vector<64x35xf32>, vector<1x35xf32> -> vector<1x35xf32>
    %c0_84 = arith.constant 0 : index
    %c0_85 = arith.constant 0 : index
    %105 = vector.load %arg11[%c0_84, %c0_85] : memref<1x35xf32, #tpu.memory_space<vmem>>, vector<1x35xf32>
    %106 = arith.addf %104, %105 : vector<1x35xf32>
    %cst_86 = arith.constant dense<0xFF800000> : vector<1xf32>
    %107 = vector.multi_reduction <maximumf>, %106, %cst_86 [1] : vector<1x35xf32> to vector<1xf32>
    %108 = vector.shape_cast %107 : vector<1xf32> to vector<1x1xf32>
    %109 = vector.broadcast %108 : vector<1x1xf32> to vector<1x35xf32>
    %110 = arith.subf %106, %109 : vector<1x35xf32>
    %111 = math.exp %110 : vector<1x35xf32>
    %cst_87 = arith.constant dense<0.000000e+00> : vector<1xf32>
    %112 = vector.multi_reduction <add>, %111, %cst_87 [1] : vector<1x35xf32> to vector<1xf32>
    %113 = vector.shape_cast %112 : vector<1xf32> to vector<1x1xf32>
    %114 = math.log %113 : vector<1x1xf32>
    %115 = vector.broadcast %114 : vector<1x1xf32> to vector<1x35xf32>
    %116 = arith.subf %110, %115 : vector<1x35xf32>
    %c0_88 = arith.constant 0 : index
    %c0_89 = arith.constant 0 : index
    %c0_90 = arith.constant 0 : index
    %117 = vector.load %arg12[%c0_88, %c0_89, %c0_90] : memref<1x1x35xf32, #tpu.memory_space<vmem>>, vector<1x1x35xf32>
    %118 = vector.shape_cast %117 : vector<1x1x35xf32> to vector<1x35xf32>
    %119 = vector.shape_cast %116 : vector<1x35xf32> to vector<1x1x35xf32>
    tpu.vector_store %arg12[%c0_88, %c0_89, %c0_90], %119 {strides = array<i32>} : memref<1x1x35xf32, #tpu.memory_space<vmem>>, vector<1x1x35xf32>,
    return
  }
  func.func @transform_0(%arg0: i32) -> (i32, i32, i32) {
    %c0_i32 = arith.constant 0 : i32
    %c0_i32_0 = arith.constant 0 : i32
    %c0_i32_1 = arith.constant 0 : i32
    return %arg0, %c0_i32, %c0_i32_0 : i32, i32, i32
  }
  func.func @transform_1(%arg0: i32) -> (i32, i32, i32) {
    %c0_i32 = arith.constant 0 : i32
    %c0_i32_0 = arith.constant 0 : i32
    %c0_i32_1 = arith.constant 0 : i32
    %c0_i32_2 = arith.constant 0 : i32
    return %c0_i32, %c0_i32_0, %c0_i32_1 : i32, i32, i32
  }
  func.func @transform_2(%arg0: i32) -> (i32, i32) {
    %c0_i32 = arith.constant 0 : i32
    %c0_i32_0 = arith.constant 0 : i32
    %c0_i32_1 = arith.constant 0 : i32
    return %c0_i32, %c0_i32_0 : i32, i32
  }
  func.func @transform_3(%arg0: i32) -> (i32, i32) {
    %c0_i32 = arith.constant 0 : i32
    %c0_i32_0 = arith.constant 0 : i32
    %c0_i32_1 = arith.constant 0 : i32
    return %c0_i32, %c0_i32_0 : i32, i32
  }
  func.func @transform_4(%arg0: i32) -> (i32, i32) {
    %c0_i32 = arith.constant 0 : i32
    %c0_i32_0 = arith.constant 0 : i32
    %c0_i32_1 = arith.constant 0 : i32
    return %c0_i32, %c0_i32_0 : i32, i32
  }
  func.func @transform_5(%arg0: i32) -> (i32, i32) {
    %c0_i32 = arith.constant 0 : i32
    %c0_i32_0 = arith.constant 0 : i32
    %c0_i32_1 = arith.constant 0 : i32
    return %c0_i32, %c0_i32_0 : i32, i32
  }
  func.func @transform_6(%arg0: i32) -> (i32, i32) {
    %c0_i32 = arith.constant 0 : i32
    %c0_i32_0 = arith.constant 0 : i32
    %c0_i32_1 = arith.constant 0 : i32
    return %c0_i32, %c0_i32_0 : i32, i32
  }
  func.func @transform_7(%arg0: i32) -> (i32, i32) {
    %c0_i32 = arith.constant 0 : i32
    %c0_i32_0 = arith.constant 0 : i32
    %c0_i32_1 = arith.constant 0 : i32
    return %c0_i32, %c0_i32_0 : i32, i32
  }
  func.func @transform_8(%arg0: i32) -> (i32, i32) {
    %c0_i32 = arith.constant 0 : i32
    %c0_i32_0 = arith.constant 0 : i32
    %c0_i32_1 = arith.constant 0 : i32
    return %c0_i32, %c0_i32_0 : i32, i32
  }
  func.func @transform_9(%arg0: i32) -> (i32, i32) {
    %c0_i32 = arith.constant 0 : i32
    %c0_i32_0 = arith.constant 0 : i32
    %c0_i32_1 = arith.constant 0 : i32
    return %c0_i32, %c0_i32_0 : i32, i32
  }
  func.func @transform_10(%arg0: i32) -> (i32, i32) {
    %c0_i32 = arith.constant 0 : i32
    %c0_i32_0 = arith.constant 0 : i32
    %c0_i32_1 = arith.constant 0 : i32
    return %c0_i32, %c0_i32_0 : i32, i32
  }
  func.func @transform_11(%arg0: i32) -> (i32, i32, i32) {
    %c0_i32 = arith.constant 0 : i32
    %c0_i32_0 = arith.constant 0 : i32
    %c0_i32_1 = arith.constant 0 : i32
    return %arg0, %c0_i32, %c0_i32_0 : i32, i32, i32
  }
}

</mosaic_0001>

<bundles_post_ra>
// kernel: speech_command_forward.1
= control target key start
LH: loop header
LB: loop body
LE: loop exit
PB: predicated region body
PF: predicated region fallthrough
CT: control target
= control target key end

     0   :  { %s7211_s0 = inlined_call_operand.vmem [shape: f32[2,500,16], index: 0, kind: input, shape index: {}]   ;;  %s7212_s1 = inlined_call_operand.vmem [shape: bf16[5,16,32], index: 1, kind: input, shape index: {}]   ;;  %s7213_s2 = inlined_call_operand.vmem [shape: f32[1,32], index: 2, kind: input, shape index: {}]   ;;  %s7214_s3 = inlined_call_operand.vmem [shape: bf16[32,96], index: 3, kind: input, shape index: {}]   ;;  %s7215_s4 = inlined_call_operand.vmem [shape: f32[1,32], index: 4, kind: input, shape index: {}]   ;;  %s7216_s5 = inlined_call_operand.vmem [shape: bf16[32,192], index: 5, kind: input, shape index: {}]   ;;  %s7217_s6 = inlined_call_operand.vmem [shape: f32[1,64], index: 6, kind: input, shape index: {}]   ;;  %s7218_s7 = inlined_call_operand.vmem [shape: bf16[64,192], index: 7, kind: input, shape index: {}]   ;;  %s7219_s8 = inlined_call_operand.vmem [shape: f32[1,64], index: 8, kind: input, shape index: {}]   ;;  %s7220_s9 = inlined_call_operand.vmem [shape: f32[64,35], index: 9, kind: input, shape index: {}]   ;;  %s7221_s10 = inlined_call_operand.vmem [shape: f32[1,35], index: 10, kind: input, shape index: {}]   ;;  %s7222_s11 = inlined_call_operand.hbm [shape: f32[2,1,35], index: 11, kind: output, shape index: {}]  }
   0x1   :  { %7223 = sst [smem:[#allocation8_spill]] %s7211_s0 }
   0x2   :  { %16 = vsyncpa [#allocation6], 0 }
   0x3   :  { %18 = vsyncpa [#allocation6 + $0x1], 0  ;;  %s5786_s17 = smov 0   ;;  %s5788_s18 = smov 0  }
   0x4   :  { %s5790_s19 = smov 0   ;;  %s5792_s20 = smov 0  }
   0x5 LB: > { %s5807_s21 = sadd.s32 4294967295, %s5717_s20   ;;  %s4079_s22 = sadd.s32 4294967294, %s5717_s20   ;;  %s5717_s20 = sphi %s5792_s20, %s7230_s20   ;;  %s5713_s19 = sphi %s5790_s19, %s7229_s19   ;;  %s5709_s18 = sphi %s5788_s18, %s7228_s18   ;;  %s5705_s17 = sphi %s5786_s17, %s7227_s17  }
   0x6   : > { %s5811_s23 = sadd.s32 1, %s5717_s20   ;;  %s267_s24 = sadd.s32 1, %s5713_s19 }
   0x7   : > { %s264_s25 = ssub.s32 %s5717_s20, %s5811_s23  ;;  %p277_p0 = scmp.ne.s32.totalorder %s5713_s19, %s5709_s18 }
   0x8   : > { %p265_p1 = scmp.eq.s32.totalorder %s264_s25, 0  ;;  %p278_p2 = scmp.eq.s32.totalorder %s5807_s21, 1 }
   0x9   : > { %p283_p3 = scmp.ne.s32.totalorder %s5709_s18, %s5705_s17  ;;  %p284_p4 = scmp.eq.s32.totalorder %s4079_s22, 1 }
   0xa   : > { %s5822_s26 = scalar_select %p265_p1, %s5713_s19, %s267_s24  }
   0xb   : > { %p5824_p5 = por %p278_p2, %p277_p0  ;;  %p5828_p6 = por %p284_p4, %p283_p3 }
   0xc   : > { %p4082_p7 = scmp.ge.s32.totalorder %s5717_s20, 1  ;;  %p340_p8 = scmp.lt.s32.totalorder %s5717_s20, 3 }
   0xe   : > { %p341_p9 = pnand %p4082_p7, %p340_p8 }
   0xf   : > { %v5837_v0 = vld [vmem:[%s7212_s1 + $0x10] sm:$0xff] (!%p341_p9)   ;;  %v5719_v1 = vmov (!%p341_p9), 0.0   ;;  %v5627_v2 = vld [vmem:[%s7212_s1 + $0x8] sm:$0xff] (!%p341_p9)   ;;  %vm5720_vm0 = vmmov (!%p341_p9), 0   ;;  %p379_p10 = scmp.lt.s32.totalorder (!%p341_p9), %s5807_s21, 1  ;;  %s7226_s0 = sld [smem:[#allocation8_spill]] (!%p341_p9) }
  0x10   : > { %344 = sbr.rel (%p341_p9) target bundleno = 2531 (0x9e3), region = 64  ;;  %4715 = vmatprep.subr.bf16.mxu0 (!%p341_p9), %v5719_v1  ;;  %4463 = vmatprep.subr.bf16.mxu1 (!%p341_p9), %v5719_v1  ;;  %vm582_vm1 = vcmask (!%p341_p9), 130048   ;;  %v5628_v8 = vld [vmem:[%s7212_s1 + $0x18] sm:$0xff] (!%p341_p9)   ;;  %v5629_v10 = vld [vmem:[%s7212_s1] sm:$0xff] (!%p341_p9)   ;;  %vm2951_vm2 = vcmask (!%p341_p9), 261120   ;;  %vm3481_vm3 = vcmask (!%p341_p9), 1045504  }
  0x11   : > { %4716 = vmatpush3.bf16.msra.mxu0 (!%p341_p9), %v5837_v0  ;;  %4465 = vmatprep.mubr.msk.bf16.mxu1 (!%p341_p9), %vm5720_vm0, %v5719_v1  ;;  %vm3389_vm4 = vcmask (!%p341_p9), 1046528   ;;  %s5721_s30 = smov (!%p341_p9), 64   ;;  %s5722_s12 = smov (!%p341_p9), 96   ;;  %vm3777_vm5 = vcmask (!%p341_p9), 523264   ;;  %vm3781_vm6 = vcmask (!%p341_p9), 519168   ;;  %vm3997_vm7 = vcmask (!%p341_p9), 278528  }
  0x12   : > { %4464 = vmatpush3.bf16.msra.mxu1 (!%p341_p9), %v5627_v2  ;;  %4717 = vmatprep.mubr.msk.bf16.mxu0 (!%p341_p9), %vm5720_vm0, %v5719_v1  ;;  %s4281_s16 = sshll.u32 (!%p341_p9), %s5807_s21, 4 }
  0x13   : > { %4841 = vmatprep.subr.bf16.mxu0 (!%p341_p9), %v5719_v1  ;;  %4589 = vmatprep.subr.bf16.mxu1 (!%p341_p9), %v5719_v1 }
  0x17   : > { %s380_s14 = scalar_select %p379_p10, %s5807_s21, 1 }
  0x18   : > { %s5725_s21 = smov [#allocation5]  }
  0x19   : > { %s5580_s15 = smul.u32 504, %s380_s14  ;;  %s5659_s14 = sshll.u32 %s5725_s21, 4  ;;  %s5660_s14 = int_to_ptr.vmem [resolvable:$false] %s5659_s14 }
  0x1b   : > { %s5856_s24 = scalar_lea.vmem %s7226_s0, %s5580_s15  ;;  %s377_s15 = sand.u32 1, %s5709_s18  }
  0x1c   : > { %v480_v3 = vld [vmem:[%s5856_s24 + $0x1] sm:$0xff]  ;;  %v481_v4 = vld [vmem:[%s5856_s24 + $0x9] sm:$0xff]  ;;  %v482_v11 = vld [vmem:[%s5856_s24 + $0x11] sm:$0xff]  ;;  %s378_s22 = scalar_lea.vmem [#allocation5], %s377_s15  ;;  %s5661_s0 = scalar_lea.vmem %s5660_s14, 32 }
  0x1d   : > { %v1337_v5 = vld [vmem:[%s5856_s24 + $0x2] sm:$0xff]  ;;  %v542_v6 = vpack.c.bf16 %v481_v4, %v480_v3  ;;  %v1338_v7 = vld [vmem:[%s5856_s24 + $0xa] sm:$0xff]  ;;  %v483_v12 = vld [vmem:[%s5856_s24 + $0x19] sm:$0xff]  ;;  %s4024_s25 = sshll.u32 %s378_s22, 4  ;;  %s7170_s25 = int_to_ptr.vmem [resolvable:$true] %s4024_s25 }
  0x1e   : > { %v1399_v9 = vpack.c.bf16 %v1338_v7, %v1337_v5  ;;  %v1339_v13 = vld [vmem:[%s5856_s24 + $0x12] sm:$0xff]  ;;  %v1340_v14 = vld [vmem:[%s5856_s24 + $0x1a] sm:$0xff]  ;;  %v543_v15 = vpack.c.bf16 %v483_v12, %v482_v11  ;;  %v485_v18 = vld [vmem:[%s5856_s24 + $0x29] sm:$0xff]  ;;  %s5655_s13 = scalar_lea.vmem %s7170_s25, 16  ;;  %p5662_p0 = scmp.lt.s32.totalorder %s7170_s25, %s5660_s14 }
  0x1f   : > { %4466 = vmatmul.mubr.msk.bf16.vlgmr.msra.gmra.mrb[0].mxu1 %vm582_vm1, %v542_v6  ;;  %v1400_v16 = vpack.c.bf16 %v1340_v14, %v1339_v13  ;;  %v484_v17 = vld [vmem:[%s5856_s24 + $0x21] sm:$0xff]  ;;  %v1342_v20 = vld [vmem:[%s5856_s24 + $0x2a] sm:$0xff]  ;;  %v487_v24 = vld [vmem:[%s5856_s24 + $0x39] sm:$0xff]  ;;  %p5656_p11 = scmp.ne.s32.totalorder %s7170_s25, %s5655_s13  ;;  %p5663_p1 = scmp.lt.s32.totalorder %s5661_s0, %s5655_s13 }
  0x20   : > { %4718 = vmatmul.mubr.msk.bf16.vlgmr.msra.gmra.mrb[0].mxu0 %vm582_vm1, %v1399_v9  ;;  %4469 = vmatprep.mubr.msk.bf16.mxu1 %vm5720_vm0, %v5719_v1  ;;  %v1341_v19 = vld [vmem:[%s5856_s24 + $0x22] sm:$0xff]  ;;  %v544_v21 = vpack.c.bf16 %v485_v18, %v484_v17  ;;  %v486_v23 = vld [vmem:[%s5856_s24 + $0x31] sm:$0xff]  ;;  %v1344_v26 = vld [vmem:[%s5856_s24 + $0x3a] sm:$0xff] }
  0x21   : > { %4842 = vmatpush3.bf16.msra.mxu0 %v5628_v8  ;;  %4721 = vmatprep.mubr.msk.bf16.mxu0 %vm5720_vm0, %v5719_v1  ;;  %v1401_v22 = vpack.c.bf16 %v1342_v20, %v1341_v19  ;;  %v1343_v25 = vld [vmem:[%s5856_s24 + $0x32] sm:$0xff]  ;;  %v545_v27 = vpack.c.bf16 %v487_v24, %v486_v23  ;;  %v488_v29 = vld [vmem:[%s5856_s24 + $0x41] sm:$0xff]  ;;  %v489_v30 = vld [vmem:[%s5856_s24 + $0x49] sm:$0xff]  ;;  %p5657_p12 = pnand %p5656_p11, %p5824_p5  ;;  %p5664_p2 = por %p5663_p1, %p5662_p0 }
  0x22   : > { %4590 = vmatpush3.bf16.msra.mxu1 %v5629_v10  ;;  %4967 = vmatprep.subr.bf16.mxu0 %v5719_v1  ;;  %v1402_v28 = vpack.c.bf16 %v1344_v26, %v1343_v25  ;;  %v1345_v31 = vld [vmem:[%s5856_s24 + $0x42] sm:$0xff]  ;;  %v1346_v32 = vld [vmem:[%s5856_s24 + $0x4a] sm:$0xff]  ;;  %v546_v33 = vpack.c.bf16 %v489_v30, %v488_v29  ;;  %v491_v36 = vld [vmem:[%s5856_s24 + $0x59] sm:$0xff] }
  0x23   : > { %5144 = vmatprep.subr.bf16.mxu1 %v5719_v1  ;;  %v1403_v34 = vpack.c.bf16 %v1346_v32, %v1345_v31  ;;  %v490_v35 = vld [vmem:[%s5856_s24 + $0x51] sm:$0xff]  ;;  %v1348_v38 = vld [vmem:[%s5856_s24 + $0x5a] sm:$0xff]  ;;  %v493_v42 = vld [vmem:[%s5856_s24 + $0x69] sm:$0xff]  ;;  %p5658_p13 = pneg %p5657_p12 }
  0x24   : > { %v1347_v37 = vld [vmem:[%s5856_s24 + $0x52] sm:$0xff]  ;;  %v547_v39 = vpack.c.bf16 %v491_v36, %v490_v35  ;;  %v492_v41 = vld [vmem:[%s5856_s24 + $0x61] sm:$0xff]  ;;  %v1350_v44 = vld [vmem:[%s5856_s24 + $0x6a] sm:$0xff] }
  0x25   : > { %v1404_v40 = vpack.c.bf16 %v1348_v38, %v1347_v37  ;;  %v1349_v43 = vld [vmem:[%s5856_s24 + $0x62] sm:$0xff]  ;;  %v548_v45 = vpack.c.bf16 %v493_v42, %v492_v41  ;;  %v494_v47 = vld [vmem:[%s5856_s24 + $0x71] sm:$0xff]  ;;  %v495_v48 = vld [vmem:[%s5856_s24 + $0x79] sm:$0xff]  ;;  %p5665_p3 = pnand %p5664_p2, %p5658_p13 }
  0x26   : > { %v1405_v46 = vpack.c.bf16 %v1350_v44, %v1349_v43  ;;  %v1351_v49 = vld [vmem:[%s5856_s24 + $0x72] sm:$0xff]  ;;  %v1352_v50 = vld [vmem:[%s5856_s24 + $0x7a] sm:$0xff]  ;;  %v549_v51 = vpack.c.bf16 %v495_v48, %v494_v47  ;;  %v497_v54 = vld [vmem:[%s5856_s24 + $0x89] sm:$0xff] }
  0x27   : > { %4470 = vmatmul.mubr.msk.bf16.gmra.mrb[4].mxu1 %vm582_vm1, %v543_v15  ;;  %v1406_v52 = vpack.c.bf16 %v1352_v50, %v1351_v49  ;;  %v496_v53 = vld [vmem:[%s5856_s24 + $0x81] sm:$0xff]  ;;  %v1354_v56 = vld [vmem:[%s5856_s24 + $0x8a] sm:$0xff]  ;;  %v499_v60 = vld [vmem:[%s5856_s24 + $0x99] sm:$0xff] }
  0x28   : > { %4722 = vmatmul.mubr.msk.bf16.gmra.mrb[4].mxu0 %vm582_vm1, %v1400_v16  ;;  %4473 = vmatprep.mubr.msk.bf16.mxu1 %vm5720_vm0, %v5719_v1  ;;  %v1353_v55 = vld [vmem:[%s5856_s24 + $0x82] sm:$0xff]  ;;  %v550_v57 = vpack.c.bf16 %v497_v54, %v496_v53  ;;  %v498_v59 = vld [vmem:[%s5856_s24 + $0x91] sm:$0xff]  ;;  %v1356_v62 = vld [vmem:[%s5856_s24 + $0x9a] sm:$0xff] }
  0x29   : > { %4725 = vmatprep.mubr.msk.bf16.mxu0 %vm5720_vm0, %v5719_v1  ;;  %v1407_v58 = vpack.c.bf16 %v1354_v56, %v1353_v55  ;;  %v1355_v61 = vld [vmem:[%s5856_s24 + $0x92] sm:$0xff]  ;;  %v551_v63 = vpack.c.bf16 %v499_v60, %v498_v59  ;;  %v500_v3 = vld [vmem:[%s5856_s24 + $0xa1] sm:$0xff]  ;;  %v501_v4 = vld [vmem:[%s5856_s24 + $0xa9] sm:$0xff] }
  0x2a   : > { %v1408_v2 = vpack.c.bf16 %v1356_v62, %v1355_v61  ;;  %v1357_v5 = vld [vmem:[%s5856_s24 + $0xa2] sm:$0xff]  ;;  %v1358_v6 = vld [vmem:[%s5856_s24 + $0xaa] sm:$0xff]  ;;  %v552_v7 = vpack.c.bf16 %v501_v4, %v500_v3  ;;  %v503_v10 = vld [vmem:[%s5856_s24 + $0xb9] sm:$0xff] }
  0x2b   : > { %v1409_v8 = vpack.c.bf16 %v1358_v6, %v1357_v5  ;;  %v502_v9 = vld [vmem:[%s5856_s24 + $0xb1] sm:$0xff]  ;;  %v1360_v12 = vld [vmem:[%s5856_s24 + $0xba] sm:$0xff]  ;;  %v505_v16 = vld [vmem:[%s5856_s24 + $0xc9] sm:$0xff] }
  0x2c   : > { %v1359_v11 = vld [vmem:[%s5856_s24 + $0xb2] sm:$0xff]  ;;  %v553_v13 = vpack.c.bf16 %v503_v10, %v502_v9  ;;  %v504_v15 = vld [vmem:[%s5856_s24 + $0xc1] sm:$0xff]  ;;  %v1362_v18 = vld [vmem:[%s5856_s24 + $0xca] sm:$0xff] }
  0x2d   : > { %v1410_v14 = vpack.c.bf16 %v1360_v12, %v1359_v11  ;;  %v1361_v17 = vld [vmem:[%s5856_s24 + $0xc2] sm:$0xff]  ;;  %v554_v19 = vpack.c.bf16 %v505_v16, %v504_v15  ;;  %v1363_v23 = vld [vmem:[%s5856_s24 + $0xd2] sm:$0xff]  ;;  %v1364_v24 = vld [vmem:[%s5856_s24 + $0xda] sm:$0xff] }
  0x2e   : > { %v1411_v20 = vpack.c.bf16 %v1362_v18, %v1361_v17  ;;  %v1412_v26 = vpack.c.bf16 %v1364_v24, %v1363_v23  ;;  %v1365_v29 = vld [vmem:[%s5856_s24 + $0xe2] sm:$0xff]  ;;  %v1366_v30 = vld [vmem:[%s5856_s24 + $0xea] sm:$0xff]  ;;  %v1367_v35 = vld [vmem:[%s5856_s24 + $0xf2] sm:$0xff] }
  0x2f   : > { %4474 = vmatmul.mubr.msk.bf16.gmra.mrb[8].mxu1 %vm582_vm1, %v544_v21  ;;  %v506_v21 = vld [vmem:[%s5856_s24 + $0xd1] sm:$0xff]  ;;  %v1413_v32 = vpack.c.bf16 %v1366_v30, %v1365_v29  ;;  %v1368_v36 = vld [vmem:[%s5856_s24 + $0xfa] sm:$0xff]  ;;  %v1369_v41 = vld [vmem:[%s5856_s24 + $0x102] sm:$0xff] }
  0x30   : > { %4726 = vmatmul.mubr.msk.bf16.gmra.mrb[8].mxu0 %vm582_vm1, %v1401_v22  ;;  %4477 = vmatprep.mubr.msk.bf16.mxu1 %vm5720_vm0, %v5719_v1  ;;  %v507_v22 = vld [vmem:[%s5856_s24 + $0xd9] sm:$0xff]  ;;  %v1414_v38 = vpack.c.bf16 %v1368_v36, %v1367_v35  ;;  %v1370_v42 = vld [vmem:[%s5856_s24 + $0x10a] sm:$0xff]  ;;  %v1373_v53 = vld [vmem:[%s5856_s24 + $0x122] sm:$0xff] }
  0x31   : > { %4729 = vmatprep.mubr.msk.bf16.mxu0 %vm5720_vm0, %v5719_v1  ;;  %v555_v25 = vpack.c.bf16 %v507_v22, %v506_v21  ;;  %v1415_v44 = vpack.c.bf16 %v1370_v42, %v1369_v41  ;;  %v1371_v47 = vld [vmem:[%s5856_s24 + $0x112] sm:$0xff]  ;;  %v1372_v48 = vld [vmem:[%s5856_s24 + $0x11a] sm:$0xff]  ;;  %v1374_v54 = vld [vmem:[%s5856_s24 + $0x12a] sm:$0xff] }
  0x32   : > { %v1416_v50 = vpack.c.bf16 %v1372_v48, %v1371_v47  ;;  %v1417_v56 = vpack.c.bf16 %v1374_v54, %v1373_v53  ;;  %v1375_v59 = vld [vmem:[%s5856_s24 + $0x132] sm:$0xff]  ;;  %v1376_v60 = vld [vmem:[%s5856_s24 + $0x13a] sm:$0xff]  ;;  %v1875_v3 = vld [vmem:[%s5856_s24 + $0x3] sm:$0xff] }
  0x33   : > { %v1418_v62 = vpack.c.bf16 %v1376_v60, %v1375_v59  ;;  %v1876_v4 = vld [vmem:[%s5856_s24 + $0xb] sm:$0xff]  ;;  %v523_v9 = vld [vmem:[%s5856_s24 + $0x159] sm:$0xff]  ;;  %v1879_v16 = vld [vmem:[%s5856_s24 + $0x23] sm:$0xff] }
  0x34   : > { %v1937_v6 = vpack.c.bf16 %v1876_v4, %v1875_v3  ;;  %v1877_v10 = vld [vmem:[%s5856_s24 + $0x13] sm:$0xff]  ;;  %v1878_v11 = vld [vmem:[%s5856_s24 + $0x1b] sm:$0xff]  ;;  %v525_v15 = vld [vmem:[%s5856_s24 + $0x169] sm:$0xff] }
  0x35   : > { %v1880_v17 = vld [vmem:[%s5856_s24 + $0x2b] sm:$0xff]  ;;  %v527_v21 = vld [vmem:[%s5856_s24 + $0x179] sm:$0xff] }
  0x36   : > { %v1881_v22 = vld [vmem:[%s5856_s24 + $0x33] sm:$0xff]  ;;  %v1882_v23 = vld [vmem:[%s5856_s24 + $0x3b] sm:$0xff]  ;;  %v1884_v29 = vld [vmem:[%s5856_s24 + $0x4b] sm:$0xff] }
  0x37   : > { %4478 = vmatmul.mubr.msk.bf16.gmra.mrb[12].mxu1 %vm582_vm1, %v545_v27  ;;  %v508_v27 = vld [vmem:[%s5856_s24 + $0xe1] sm:$0xff]  ;;  %v1888_v41 = vld [vmem:[%s5856_s24 + $0x6b] sm:$0xff] }
  0x38   : > { %4730 = vmatmul.mubr.msk.bf16.gmra.mrb[12].mxu0 %vm582_vm1, %v1402_v28  ;;  %4481 = vmatprep.mubr.msk.bf16.mxu1 %vm5720_vm0, %v5719_v1  ;;  %v509_v28 = vld [vmem:[%s5856_s24 + $0xe9] sm:$0xff]  ;;  %v1886_v35 = vld [vmem:[%s5856_s24 + $0x5b] sm:$0xff] }
  0x39   : > { %4733 = vmatprep.mubr.msk.bf16.mxu0 %vm5720_vm0, %v5719_v1  ;;  %v556_v31 = vpack.c.bf16 %v509_v28, %v508_v27  ;;  %v529_v27 = vld [vmem:[%s5856_s24 + $0x189] sm:$0xff]  ;;  %v1890_v47 = vld [vmem:[%s5856_s24 + $0x7b] sm:$0xff] }
  0x3a   : > { %v1883_v28 = vld [vmem:[%s5856_s24 + $0x43] sm:$0xff]  ;;  %v1892_v53 = vld [vmem:[%s5856_s24 + $0x8b] sm:$0xff]  ;;  %v1894_v59 = vld [vmem:[%s5856_s24 + $0x9b] sm:$0xff] }
  0x3b   : > { %v1896_v3 = vld [vmem:[%s5856_s24 + $0xab] sm:$0xff] }
  0x3f   : > { %4482 = vmatmul.mubr.msk.bf16.gmra.mrb[16].mxu1 %vm582_vm1, %v546_v33  ;;  %v510_v33 = vld [vmem:[%s5856_s24 + $0xf1] sm:$0xff] }
  0x40   : > { %4734 = vmatmul.mubr.msk.bf16.gmra.mrb[16].mxu0 %vm582_vm1, %v1403_v34  ;;  %4485 = vmatprep.mubr.msk.bf16.mxu1 %vm5720_vm0, %v5719_v1  ;;  %v511_v34 = vld [vmem:[%s5856_s24 + $0xf9] sm:$0xff] }
  0x41   : > { %4737 = vmatprep.mubr.msk.bf16.mxu0 %vm5720_vm0, %v5719_v1  ;;  %v557_v37 = vpack.c.bf16 %v511_v34, %v510_v33  ;;  %v531_v33 = vld [vmem:[%s5856_s24 + $0x199] sm:$0xff] }
  0x42   : > { %v1885_v34 = vld [vmem:[%s5856_s24 + $0x53] sm:$0xff] }
  0x47   : > { %4486 = vmatmul.mubr.msk.bf16.gmra.mrb[20].mxu1 %vm582_vm1, %v547_v39  ;;  %v512_v39 = vld [vmem:[%s5856_s24 + $0x101] sm:$0xff] }
  0x48   : > { %4738 = vmatmul.mubr.msk.bf16.gmra.mrb[20].mxu0 %vm582_vm1, %v1404_v40  ;;  %4489 = vmatprep.mubr.msk.bf16.mxu1 %vm5720_vm0, %v5719_v1  ;;  %v513_v40 = vld [vmem:[%s5856_s24 + $0x109] sm:$0xff] }
  0x49   : > { %4741 = vmatprep.mubr.msk.bf16.mxu0 %vm5720_vm0, %v5719_v1  ;;  %v558_v43 = vpack.c.bf16 %v513_v40, %v512_v39  ;;  %v533_v39 = vld [vmem:[%s5856_s24 + $0x1a9] sm:$0xff] }
  0x4a   : > { %v1887_v40 = vld [vmem:[%s5856_s24 + $0x63] sm:$0xff] }
  0x4f   : > { %4490 = vmatmul.mubr.msk.bf16.gmra.mrb[24].mxu1 %vm582_vm1, %v548_v45  ;;  %v514_v45 = vld [vmem:[%s5856_s24 + $0x111] sm:$0xff] }
  0x50   : > { %4742 = vmatmul.mubr.msk.bf16.gmra.mrb[24].mxu0 %vm582_vm1, %v1405_v46  ;;  %4493 = vmatprep.mubr.msk.bf16.mxu1 %vm5720_vm0, %v5719_v1  ;;  %v515_v46 = vld [vmem:[%s5856_s24 + $0x119] sm:$0xff] }
  0x51   : > { %4745 = vmatprep.mubr.msk.bf16.mxu0 %vm5720_vm0, %v5719_v1  ;;  %v559_v49 = vpack.c.bf16 %v515_v46, %v514_v45  ;;  %v535_v45 = vld [vmem:[%s5856_s24 + $0x1b9] sm:$0xff] }
  0x52   : > { %v1889_v46 = vld [vmem:[%s5856_s24 + $0x73] sm:$0xff] }
  0x57   : > { %4494 = vmatmul.mubr.msk.bf16.gmra.mrb[28].mxu1 %vm582_vm1, %v549_v51  ;;  %v516_v51 = vld [vmem:[%s5856_s24 + $0x121] sm:$0xff] }
  0x58   : > { %4746 = vmatmul.mubr.msk.bf16.gmra.mrb[28].mxu0 %vm582_vm1, %v1406_v52  ;;  %4497 = vmatprep.mubr.msk.bf16.mxu1 %vm5720_vm0, %v5719_v1  ;;  %v517_v52 = vld [vmem:[%s5856_s24 + $0x129] sm:$0xff] }
  0x59   : > { %4749 = vmatprep.mubr.msk.bf16.mxu0 %vm5720_vm0, %v5719_v1  ;;  %v560_v55 = vpack.c.bf16 %v517_v52, %v516_v51  ;;  %v537_v51 = vld [vmem:[%s5856_s24 + $0x1c9] sm:$0xff] }
  0x5a   : > { %v1891_v52 = vld [vmem:[%s5856_s24 + $0x83] sm:$0xff] }
  0x5f   : > { %4498 = vmatmul.mubr.msk.bf16.gmra.mrb[32].mxu1 %vm582_vm1, %v550_v57  ;;  %v518_v57 = vld [vmem:[%s5856_s24 + $0x131] sm:$0xff] }
  0x60   : > { %4750 = vmatmul.mubr.msk.bf16.gmra.mrb[32].mxu0 %vm582_vm1, %v1407_v58  ;;  %4501 = vmatprep.mubr.msk.bf16.mxu1 %vm5720_vm0, %v5719_v1  ;;  %v519_v58 = vld [vmem:[%s5856_s24 + $0x139] sm:$0xff] }
  0x61   : > { %4753 = vmatprep.mubr.msk.bf16.mxu0 %vm5720_vm0, %v5719_v1  ;;  %v561_v61 = vpack.c.bf16 %v519_v58, %v518_v57  ;;  %v539_v57 = vld [vmem:[%s5856_s24 + $0x1d9] sm:$0xff] }
  0x62   : > { %v1893_v58 = vld [vmem:[%s5856_s24 + $0x93] sm:$0xff] }
  0x67   : > { %4502 = vmatmul.mubr.msk.bf16.gmra.mrb[36].mxu1 %vm582_vm1, %v551_v63  ;;  %v520_v63 = vld [vmem:[%s5856_s24 + $0x141] sm:$0xff] }
  0x68   : > { %4754 = vmatmul.mubr.msk.bf16.gmra.mrb[36].mxu0 %vm582_vm1, %v1408_v2  ;;  %4505 = vmatprep.mubr.msk.bf16.mxu1 %vm5720_vm0, %v5719_v1  ;;  %v521_v2 = vld [vmem:[%s5856_s24 + $0x149] sm:$0xff] }
  0x69   : > { %4757 = vmatprep.mubr.msk.bf16.mxu0 %vm5720_vm0, %v5719_v1  ;;  %v562_v5 = vpack.c.bf16 %v521_v2, %v520_v63  ;;  %v541_v63 = vld [vmem:[%s5856_s24 + $0x1e9] sm:$0xff] }
  0x6a   : > { %v1895_v2 = vld [vmem:[%s5856_s24 + $0xa3] sm:$0xff] }
  0x6f   : > { %4506 = vmatmul.mubr.msk.bf16.gmra.mrb[40].mxu1 %vm582_vm1, %v552_v7  ;;  %v5630_v7 = vld [vmem:[%s7212_s1 + $0x20] sm:$0xff]  }
  0x70   : > { %4758 = vmatmul.mubr.msk.bf16.gmra.mrb[40].mxu0 %vm582_vm1, %v1409_v8  ;;  %4509 = vmatprep.mubr.msk.bf16.mxu1 %vm5720_vm0, %v5719_v1  ;;  %v522_v8 = vld [vmem:[%s5856_s24 + $0x151] sm:$0xff] }
  0x71   : > { %4761 = vmatprep.mubr.msk.bf16.mxu0 %vm5720_vm0, %v5719_v1  ;;  %v563_v12 = vpack.c.bf16 %v523_v9, %v522_v8  ;;  %v1897_v8 = vld [vmem:[%s5856_s24 + $0xb3] sm:$0xff]  ;;  %v1898_v9 = vld [vmem:[%s5856_s24 + $0xbb] sm:$0xff] }
  0x77   : > { %4510 = vmatmul.mubr.msk.bf16.gmra.mrb[44].mxu1 %vm582_vm1, %v553_v13  ;;  %v1938_v13 = vpack.c.bf16 %v1878_v11, %v1877_v10  ;;  %v1948_v11 = vpack.c.bf16 %v1898_v9, %v1897_v8  ;;  %v407_v9 = vld [vmem:[%s5856_s24 + $0xb0] sm:$0xff] }
  0x78   : > { %4762 = vmatmul.mubr.msk.bf16.gmra.mrb[44].mxu0 %vm582_vm1, %v1410_v14  ;;  %4513 = vmatprep.mubr.msk.bf16.mxu1 %vm5720_vm0, %v5719_v1  ;;  %v524_v14 = vld [vmem:[%s5856_s24 + $0x161] sm:$0xff] }
  0x79   : > { %4765 = vmatprep.mubr.msk.bf16.mxu0 %vm5720_vm0, %v5719_v1  ;;  %v564_v18 = vpack.c.bf16 %v525_v15, %v524_v14  ;;  %v1899_v14 = vld [vmem:[%s5856_s24 + $0xc3] sm:$0xff]  ;;  %v1900_v15 = vld [vmem:[%s5856_s24 + $0xcb] sm:$0xff] }
  0x7f   : > { %4514 = vmatmul.mubr.msk.bf16.gmra.mrb[48].mxu1 %vm582_vm1, %v554_v19  ;;  %v1939_v19 = vpack.c.bf16 %v1880_v17, %v1879_v16  ;;  %v1949_v17 = vpack.c.bf16 %v1900_v15, %v1899_v14  ;;  %v409_v15 = vld [vmem:[%s5856_s24 + $0xc0] sm:$0xff] }
  0x80   : > { %4766 = vmatmul.mubr.msk.bf16.gmra.mrb[48].mxu0 %vm582_vm1, %v1411_v20  ;;  %4517 = vmatprep.mubr.msk.bf16.mxu1 %vm5720_vm0, %v5719_v1  ;;  %v526_v20 = vld [vmem:[%s5856_s24 + $0x171] sm:$0xff] }
  0x81   : > { %4769 = vmatprep.mubr.msk.bf16.mxu0 %vm5720_vm0, %v5719_v1  ;;  %v565_v24 = vpack.c.bf16 %v527_v21, %v526_v20  ;;  %v1901_v20 = vld [vmem:[%s5856_s24 + $0xd3] sm:$0xff] }
  0x87   : > { %4518 = vmatmul.mubr.msk.bf16.gmra.mrb[52].mxu1 %vm582_vm1, %v555_v25  ;;  %v1940_v25 = vpack.c.bf16 %v1882_v23, %v1881_v22  ;;  %v391_v23 = vld [vmem:[%s5856_s24 + $0x30] sm:$0xff] }
  0x88   : > { %4770 = vmatmul.mubr.msk.bf16.gmra.mrb[52].mxu0 %vm582_vm1, %v1412_v26  ;;  %4521 = vmatprep.mubr.msk.bf16.mxu1 %vm5720_vm0, %v5719_v1  ;;  %v528_v26 = vld [vmem:[%s5856_s24 + $0x181] sm:$0xff] }
  0x89   : > { %4773 = vmatprep.mubr.msk.bf16.mxu0 %vm5720_vm0, %v5719_v1  ;;  %v566_v30 = vpack.c.bf16 %v529_v27, %v528_v26  ;;  %v1904_v26 = vld [vmem:[%s5856_s24 + $0xeb] sm:$0xff] }
  0x8f   : > { %4522 = vmatmul.mubr.msk.bf16.gmra.mrb[56].mxu1 %vm582_vm1, %v556_v31  ;;  %v1941_v31 = vpack.c.bf16 %v1884_v29, %v1883_v28  ;;  %v393_v29 = vld [vmem:[%s5856_s24 + $0x40] sm:$0xff] }
  0x90   : > { %4774 = vmatmul.mubr.msk.bf16.gmra.mrb[56].mxu0 %vm582_vm1, %v1413_v32  ;;  %4525 = vmatprep.mubr.msk.bf16.mxu1 %vm5720_vm0, %v5719_v1  ;;  %v530_v32 = vld [vmem:[%s5856_s24 + $0x191] sm:$0xff] }
  0x91   : > { %4777 = vmatprep.mubr.msk.bf16.mxu0 %vm5720_vm0, %v5719_v1  ;;  %v567_v36 = vpack.c.bf16 %v531_v33, %v530_v32  ;;  %v1906_v32 = vld [vmem:[%s5856_s24 + $0xfb] sm:$0xff] }
  0x97   : > { %4526 = vmatmul.mubr.msk.bf16.gmra.mrb[60].mxu1 %vm582_vm1, %v557_v37  ;;  %v1942_v37 = vpack.c.bf16 %v1886_v35, %v1885_v34  ;;  %v395_v35 = vld [vmem:[%s5856_s24 + $0x50] sm:$0xff] }
  0x98   : > { %4778 = vmatmul.mubr.msk.bf16.gmra.mrb[60].mxu0 %vm582_vm1, %v1414_v38  ;;  %4529 = vmatprep.mubr.msk.bf16.mxu1 %vm5720_vm0, %v5719_v1  ;;  %v532_v38 = vld [vmem:[%s5856_s24 + $0x1a1] sm:$0xff] }
  0x99   : > { %4781 = vmatprep.mubr.msk.bf16.mxu0 %vm5720_vm0, %v5719_v1  ;;  %v568_v42 = vpack.c.bf16 %v533_v39, %v532_v38  ;;  %v1908_v38 = vld [vmem:[%s5856_s24 + $0x10b] sm:$0xff] }
  0x9f   : > { %4530 = vmatmul.mubr.msk.bf16.gmra.mrb[64].mxu1 %vm582_vm1, %v558_v43  ;;  %v1943_v43 = vpack.c.bf16 %v1888_v41, %v1887_v40  ;;  %v397_v41 = vld [vmem:[%s5856_s24 + $0x60] sm:$0xff] }
  0xa0   : > { %4782 = vmatmul.mubr.msk.bf16.gmra.mrb[64].mxu0 %vm582_vm1, %v1415_v44  ;;  %4533 = vmatprep.mubr.msk.bf16.mxu1 %vm5720_vm0, %v5719_v1  ;;  %v534_v44 = vld [vmem:[%s5856_s24 + $0x1b1] sm:$0xff] }
  0xa1   : > { %4785 = vmatprep.mubr.msk.bf16.mxu0 %vm5720_vm0, %v5719_v1  ;;  %v569_v48 = vpack.c.bf16 %v535_v45, %v534_v44  ;;  %v1910_v44 = vld [vmem:[%s5856_s24 + $0x11b] sm:$0xff] }
  0xa7   : > { %4534 = vmatmul.mubr.msk.bf16.gmra.mrb[68].mxu1 %vm582_vm1, %v559_v49  ;;  %v1944_v49 = vpack.c.bf16 %v1890_v47, %v1889_v46  ;;  %v399_v47 = vld [vmem:[%s5856_s24 + $0x70] sm:$0xff] }
  0xa8   : > { %4786 = vmatmul.mubr.msk.bf16.gmra.mrb[68].mxu0 %vm582_vm1, %v1416_v50  ;;  %4537 = vmatprep.mubr.msk.bf16.mxu1 %vm5720_vm0, %v5719_v1  ;;  %v536_v50 = vld [vmem:[%s5856_s24 + $0x1c1] sm:$0xff] }
  0xa9   : > { %4789 = vmatprep.mubr.msk.bf16.mxu0 %vm5720_vm0, %v5719_v1  ;;  %v570_v54 = vpack.c.bf16 %v537_v51, %v536_v50  ;;  %v1912_v50 = vld [vmem:[%s5856_s24 + $0x12b] sm:$0xff] }
  0xaf   : > { %4538 = vmatmul.mubr.msk.bf16.gmra.mrb[72].mxu1 %vm582_vm1, %v560_v55  ;;  %v1945_v55 = vpack.c.bf16 %v1892_v53, %v1891_v52  ;;  %v401_v53 = vld [vmem:[%s5856_s24 + $0x80] sm:$0xff] }
  0xb0   : > { %4790 = vmatmul.mubr.msk.bf16.gmra.mrb[72].mxu0 %vm582_vm1, %v1417_v56  ;;  %4541 = vmatprep.mubr.msk.bf16.mxu1 %vm5720_vm0, %v5719_v1  ;;  %v538_v56 = vld [vmem:[%s5856_s24 + $0x1d1] sm:$0xff] }
  0xb1   : > { %4793 = vmatprep.mubr.msk.bf16.mxu0 %vm5720_vm0, %v5719_v1  ;;  %v571_v60 = vpack.c.bf16 %v539_v57, %v538_v56  ;;  %v1914_v56 = vld [vmem:[%s5856_s24 + $0x13b] sm:$0xff] }
  0xb7   : > { %4542 = vmatmul.mubr.msk.bf16.gmra.mrb[76].mxu1 %vm582_vm1, %v561_v61  ;;  %v1946_v61 = vpack.c.bf16 %v1894_v59, %v1893_v58  ;;  %v403_v59 = vld [vmem:[%s5856_s24 + $0x90] sm:$0xff] }
  0xb8   : > { %4794 = vmatmul.mubr.msk.bf16.gmra.mrb[76].mxu0 %vm582_vm1, %v1418_v62  ;;  %4545 = vmatprep.mubr.msk.bf16.mxu1 %vm5720_vm0, %v5719_v1  ;;  %v540_v62 = vld [vmem:[%s5856_s24 + $0x1e1] sm:$0xff] }
  0xb9   : > { %4843 = vmatprep.mubr.msk.bf16.mxu0 %vm5720_vm0, %v5719_v1  ;;  %v572_v4 = vpack.c.bf16 %v541_v63, %v540_v62  ;;  %v1916_v62 = vld [vmem:[%s5856_s24 + $0x14b] sm:$0xff] }
  0xbf   : > { %4546 = vmatmul.mubr.msk.bf16.gmra.mrb[80].mxu1 %vm582_vm1, %v562_v5  ;;  %v1947_v5 = vpack.c.bf16 %v1896_v3, %v1895_v2  ;;  %v405_v3 = vld [vmem:[%s5856_s24 + $0xa0] sm:$0xff] }
  0xc0   : > { %4844 = vmatmul.mubr.msk.bf16.vlgmr.msra.gmra.mrb[0].mxu0 %vm582_vm1, %v1937_v6  ;;  %4549 = vmatprep.mubr.msk.bf16.mxu1 %vm5720_vm0, %v5719_v1  ;;  %v385_v6 = vld [vmem:[%s5856_s24] sm:$0xff] }
  0xc1   : > { %4968 = vmatpush3.bf16.msra.mxu0 %v5630_v7  ;;  %4847 = vmatprep.mubr.msk.bf16.mxu0 %vm5720_vm0, %v5719_v1  ;;  %v386_v7 = vld [vmem:[%s5856_s24 + $0x8] sm:$0xff] }
  0xc2   : > { %v447_v10 = vpack.c.bf16 %v386_v7, %v385_v6  ;;  %v1918_v6 = vld [vmem:[%s5856_s24 + $0x15b] sm:$0xff] }
  0xc7   : > { %4550 = vmatmul.mubr.msk.bf16.gmra.mrb[84].mxu1 %vm582_vm1, %v563_v12  ;;  %v387_v12 = vld [vmem:[%s5856_s24 + $0x10] sm:$0xff] }
  0xc8   : > { %4848 = vmatmul.mubr.msk.bf16.gmra.mrb[4].mxu0 %vm582_vm1, %v1938_v13  ;;  %4553 = vmatprep.mubr.msk.bf16.mxu1 %vm5720_vm0, %v5719_v1  ;;  %v388_v13 = vld [vmem:[%s5856_s24 + $0x18] sm:$0xff] }
  0xc9   : > { %4851 = vmatprep.mubr.msk.bf16.mxu0 %vm5720_vm0, %v5719_v1  ;;  %v448_v16 = vpack.c.bf16 %v388_v13, %v387_v12  ;;  %v1920_v12 = vld [vmem:[%s5856_s24 + $0x16b] sm:$0xff] }
  0xcf   : > { %4554 = vmatmul.mubr.msk.bf16.gmra.mrb[88].mxu1 %vm582_vm1, %v564_v18  ;;  %v389_v18 = vld [vmem:[%s5856_s24 + $0x20] sm:$0xff] }
  0xd0   : > { %4852 = vmatmul.mubr.msk.bf16.gmra.mrb[8].mxu0 %vm582_vm1, %v1939_v19  ;;  %4557 = vmatprep.mubr.msk.bf16.mxu1 %vm5720_vm0, %v5719_v1  ;;  %v390_v19 = vld [vmem:[%s5856_s24 + $0x28] sm:$0xff] }
  0xd1   : > { %4855 = vmatprep.mubr.msk.bf16.mxu0 %vm5720_vm0, %v5719_v1  ;;  %v449_v21 = vpack.c.bf16 %v390_v19, %v389_v18  ;;  %v1922_v18 = vld [vmem:[%s5856_s24 + $0x17b] sm:$0xff] }
  0xd7   : > { %4558 = vmatmul.mubr.msk.bf16.gmra.mrb[92].mxu1 %vm582_vm1, %v565_v24  ;;  %v392_v24 = vld [vmem:[%s5856_s24 + $0x38] sm:$0xff] }
  0xd8   : > { %4856 = vmatmul.mubr.msk.bf16.gmra.mrb[12].mxu0 %vm582_vm1, %v1940_v25  ;;  %4561 = vmatprep.mubr.msk.bf16.mxu1 %vm5720_vm0, %v5719_v1  ;;  %v1903_v25 = vld [vmem:[%s5856_s24 + $0xe3] sm:$0xff]  ;;  %v450_v27 = vpack.c.bf16 %v392_v24, %v391_v23  ;;  %v1924_v23 = vld [vmem:[%s5856_s24 + $0x18b] sm:$0xff] }
  0xd9   : > { %4859 = vmatprep.mubr.msk.bf16.mxu0 %vm5720_vm0, %v5719_v1  ;;  %v1951_v28 = vpack.c.bf16 %v1904_v26, %v1903_v25  ;;  %v413_v26 = vld [vmem:[%s5856_s24 + $0xe0] sm:$0xff] }
  0xdf   : > { %4562 = vmatmul.mubr.msk.bf16.gmra.mrb[96].mxu1 %vm582_vm1, %v566_v30  ;;  %v394_v30 = vld [vmem:[%s5856_s24 + $0x48] sm:$0xff] }
  0xe0   : > { %4860 = vmatmul.mubr.msk.bf16.gmra.mrb[16].mxu0 %vm582_vm1, %v1941_v31  ;;  %4565 = vmatprep.mubr.msk.bf16.mxu1 %vm5720_vm0, %v5719_v1  ;;  %v1905_v31 = vld [vmem:[%s5856_s24 + $0xf3] sm:$0xff]  ;;  %v451_v33 = vpack.c.bf16 %v394_v30, %v393_v29  ;;  %v1926_v29 = vld [vmem:[%s5856_s24 + $0x19b] sm:$0xff] }
  0xe1   : > { %4863 = vmatprep.mubr.msk.bf16.mxu0 %vm5720_vm0, %v5719_v1  ;;  %v1952_v34 = vpack.c.bf16 %v1906_v32, %v1905_v31  ;;  %v415_v32 = vld [vmem:[%s5856_s24 + $0xf0] sm:$0xff] }
  0xe7   : > { %4566 = vmatmul.mubr.msk.bf16.gmra.mrb[100].mxu1 %vm582_vm1, %v567_v36  ;;  %v396_v36 = vld [vmem:[%s5856_s24 + $0x58] sm:$0xff] }
  0xe8   : > { %4864 = vmatmul.mubr.msk.bf16.gmra.mrb[20].mxu0 %vm582_vm1, %v1942_v37  ;;  %4569 = vmatprep.mubr.msk.bf16.mxu1 %vm5720_vm0, %v5719_v1  ;;  %v1907_v37 = vld [vmem:[%s5856_s24 + $0x103] sm:$0xff]  ;;  %v452_v39 = vpack.c.bf16 %v396_v36, %v395_v35  ;;  %v1928_v35 = vld [vmem:[%s5856_s24 + $0x1ab] sm:$0xff] }
  0xe9   : > { %4867 = vmatprep.mubr.msk.bf16.mxu0 %vm5720_vm0, %v5719_v1  ;;  %v1953_v40 = vpack.c.bf16 %v1908_v38, %v1907_v37  ;;  %v417_v38 = vld [vmem:[%s5856_s24 + $0x100] sm:$0xff] }
  0xef   : > { %4570 = vmatmul.mubr.msk.bf16.gmra.mrb[104].mxu1 %vm582_vm1, %v568_v42  ;;  %v398_v42 = vld [vmem:[%s5856_s24 + $0x68] sm:$0xff] }
  0xf0   : > { %4868 = vmatmul.mubr.msk.bf16.gmra.mrb[24].mxu0 %vm582_vm1, %v1943_v43  ;;  %4573 = vmatprep.mubr.msk.bf16.mxu1 %vm5720_vm0, %v5719_v1  ;;  %v1909_v43 = vld [vmem:[%s5856_s24 + $0x113] sm:$0xff]  ;;  %v453_v45 = vpack.c.bf16 %v398_v42, %v397_v41  ;;  %v1930_v41 = vld [vmem:[%s5856_s24 + $0x1bb] sm:$0xff] }
  0xf1   : > { %4871 = vmatprep.mubr.msk.bf16.mxu0 %vm5720_vm0, %v5719_v1  ;;  %v1954_v46 = vpack.c.bf16 %v1910_v44, %v1909_v43  ;;  %v419_v44 = vld [vmem:[%s5856_s24 + $0x110] sm:$0xff] }
  0xf7   : > { %4574 = vmatmul.mubr.msk.bf16.gmra.mrb[108].mxu1 %vm582_vm1, %v569_v48  ;;  %v400_v48 = vld [vmem:[%s5856_s24 + $0x78] sm:$0xff] }
  0xf8   : > { %4872 = vmatmul.mubr.msk.bf16.gmra.mrb[28].mxu0 %vm582_vm1, %v1944_v49  ;;  %4577 = vmatprep.mubr.msk.bf16.mxu1 %vm5720_vm0, %v5719_v1  ;;  %v1911_v49 = vld [vmem:[%s5856_s24 + $0x123] sm:$0xff]  ;;  %v454_v51 = vpack.c.bf16 %v400_v48, %v399_v47  ;;  %v1932_v47 = vld [vmem:[%s5856_s24 + $0x1cb] sm:$0xff] }
  0xf9   : > { %4875 = vmatprep.mubr.msk.bf16.mxu0 %vm5720_vm0, %v5719_v1  ;;  %v1955_v52 = vpack.c.bf16 %v1912_v50, %v1911_v49  ;;  %v421_v50 = vld [vmem:[%s5856_s24 + $0x120] sm:$0xff] }
  0xff   : > { %4578 = vmatmul.mubr.msk.bf16.gmra.mrb[112].mxu1 %vm582_vm1, %v570_v54  ;;  %v402_v54 = vld [vmem:[%s5856_s24 + $0x88] sm:$0xff] }
 0x100   : > { %4876 = vmatmul.mubr.msk.bf16.gmra.mrb[32].mxu0 %vm582_vm1, %v1945_v55  ;;  %4581 = vmatprep.mubr.msk.bf16.mxu1 %vm5720_vm0, %v5719_v1  ;;  %v1913_v55 = vld [vmem:[%s5856_s24 + $0x133] sm:$0xff]  ;;  %v455_v57 = vpack.c.bf16 %v402_v54, %v401_v53  ;;  %v1934_v53 = vld [vmem:[%s5856_s24 + $0x1db] sm:$0xff] }
 0x101   : > { %4879 = vmatprep.mubr.msk.bf16.mxu0 %vm5720_vm0, %v5719_v1  ;;  %v1956_v58 = vpack.c.bf16 %v1914_v56, %v1913_v55  ;;  %v423_v56 = vld [vmem:[%s5856_s24 + $0x130] sm:$0xff] }
 0x107   : > { %4582 = vmatmul.mubr.msk.bf16.gmra.mrb[116].mxu1 %vm582_vm1, %v571_v60  ;;  %v404_v60 = vld [vmem:[%s5856_s24 + $0x98] sm:$0xff] }
 0x108   : > { %4880 = vmatmul.mubr.msk.bf16.gmra.mrb[36].mxu0 %vm582_vm1, %v1946_v61  ;;  %4585 = vmatprep.mubr.msk.bf16.mxu1 %vm5720_vm0, %v5719_v1  ;;  %v1915_v61 = vld [vmem:[%s5856_s24 + $0x143] sm:$0xff]  ;;  %v456_v63 = vpack.c.bf16 %v404_v60, %v403_v59  ;;  %v1936_v59 = vld [vmem:[%s5856_s24 + $0x1eb] sm:$0xff] }
 0x109   : > { %4883 = vmatprep.mubr.msk.bf16.mxu0 %vm5720_vm0, %v5719_v1  ;;  %v1957_v2 = vpack.c.bf16 %v1916_v62, %v1915_v61  ;;  %v425_v62 = vld [vmem:[%s5856_s24 + $0x140] sm:$0xff] }
 0x10f   : > { %4586 = vmatmul.mubr.msk.bf16.gmra.mrb[120].mxu1 %vm582_vm1, %v572_v4  ;;  %v406_v4 = vld [vmem:[%s5856_s24 + $0xa8] sm:$0xff] }
 0x110   : > { %4884 = vmatmul.mubr.msk.bf16.gmra.mrb[40].mxu0 %vm582_vm1, %v1947_v5  ;;  %4591 = vmatprep.mubr.msk.bf16.mxu1 %vm5720_vm0, %v5719_v1  ;;  %v1917_v5 = vld [vmem:[%s5856_s24 + $0x153] sm:$0xff]  ;;  %v457_v7 = vpack.c.bf16 %v406_v4, %v405_v3 }
 0x111   : > { %4887 = vmatprep.mubr.msk.bf16.mxu0 %vm5720_vm0, %v5719_v1  ;;  %v1958_v8 = vpack.c.bf16 %v1918_v6, %v1917_v5  ;;  %v2414_v3 = vld [vmem:[%s5856_s24 + $0xc] sm:$0xff] }
 0x112   : > { %v427_v6 = vld [vmem:[%s5856_s24 + $0x150] sm:$0xff] }
 0x117   : > { %4592 = vmatmul.mubr.msk.bf16.vlgmr.msra.gmra.mrb[0].mxu1 %vm582_vm1, %v447_v10  ;;  %v408_v10 = vld [vmem:[%s5856_s24 + $0xb8] sm:$0xff] }
 0x118   : > { %4888 = vmatmul.mubr.msk.bf16.gmra.mrb[44].mxu0 %vm582_vm1, %v1948_v11  ;;  %4595 = vmatprep.mubr.msk.bf16.mxu1 %vm5720_vm0, %v5719_v1  ;;  %v1919_v11 = vld [vmem:[%s5856_s24 + $0x163] sm:$0xff]  ;;  %v458_v13 = vpack.c.bf16 %v408_v10, %v407_v9 }
 0x119   : > { %4891 = vmatprep.mubr.msk.bf16.mxu0 %vm5720_vm0, %v5719_v1  ;;  %5145 = vmatpush3.bf16.msra.mxu1 %v5837_v0  ;;  %v1902_v0 = vld [vmem:[%s5856_s24 + $0xdb] sm:$0xff]  ;;  %v1959_v14 = vpack.c.bf16 %v1920_v12, %v1919_v11 }
 0x11a   : > { %v1950_v22 = vpack.c.bf16 %v1902_v0, %v1901_v20  ;;  %v411_v0 = vld [vmem:[%s5856_s24 + $0xd0] sm:$0xff]  ;;  %v2416_v9 = vld [vmem:[%s5856_s24 + $0x1c] sm:$0xff] }
 0x11b   : > { %v429_v12 = vld [vmem:[%s5856_s24 + $0x160] sm:$0xff] }
 0x11f   : > { %4596 = vmatmul.mubr.msk.bf16.gmra.mrb[4].mxu1 %vm582_vm1, %v448_v16  ;;  %v410_v16 = vld [vmem:[%s5856_s24 + $0xc8] sm:$0xff] }
 0x120   : > { %4892 = vmatmul.mubr.msk.bf16.gmra.mrb[48].mxu0 %vm582_vm1, %v1949_v17  ;;  %4599 = vmatprep.mubr.msk.bf16.mxu1 %vm5720_vm0, %v5719_v1  ;;  %v1921_v17 = vld [vmem:[%s5856_s24 + $0x173] sm:$0xff]  ;;  %v459_v19 = vpack.c.bf16 %v410_v16, %v409_v15 }
 0x121   : > { %4895 = vmatprep.mubr.msk.bf16.mxu0 %vm5720_vm0, %v5719_v1  ;;  %v1960_v20 = vpack.c.bf16 %v1922_v18, %v1921_v17  ;;  %v2418_v15 = vld [vmem:[%s5856_s24 + $0x2c] sm:$0xff] }
 0x122   : > { %v431_v18 = vld [vmem:[%s5856_s24 + $0x170] sm:$0xff] }
 0x127   : > { %4600 = vmatmul.mubr.msk.bf16.gmra.mrb[8].mxu1 %vm582_vm1, %v449_v21  ;;  %v412_v21 = vld [vmem:[%s5856_s24 + $0xd8] sm:$0xff] }
 0x128   : > { %4896 = vmatmul.mubr.msk.bf16.gmra.mrb[52].mxu0 %vm582_vm1, %v1950_v22  ;;  %4603 = vmatprep.mubr.msk.bf16.mxu1 %vm5720_vm0, %v5719_v1  ;;  %v1923_v22 = vld [vmem:[%s5856_s24 + $0x183] sm:$0xff]  ;;  %v460_v24 = vpack.c.bf16 %v412_v21, %v411_v0 }
 0x129   : > { %4899 = vmatprep.mubr.msk.bf16.mxu0 %vm5720_vm0, %v5719_v1  ;;  %v1961_v25 = vpack.c.bf16 %v1924_v23, %v1923_v22  ;;  %v2420_v0 = vld [vmem:[%s5856_s24 + $0x3c] sm:$0xff] }
 0x12a   : > { %v433_v23 = vld [vmem:[%s5856_s24 + $0x180] sm:$0xff] }
 0x12f   : > { %4604 = vmatmul.mubr.msk.bf16.gmra.mrb[12].mxu1 %vm582_vm1, %v450_v27  ;;  %v414_v27 = vld [vmem:[%s5856_s24 + $0xe8] sm:$0xff] }
 0x130   : > { %4900 = vmatmul.mubr.msk.bf16.gmra.mrb[56].mxu0 %vm582_vm1, %v1951_v28  ;;  %4607 = vmatprep.mubr.msk.bf16.mxu1 %vm5720_vm0, %v5719_v1  ;;  %v1925_v28 = vld [vmem:[%s5856_s24 + $0x193] sm:$0xff]  ;;  %v461_v30 = vpack.c.bf16 %v414_v27, %v413_v26 }
 0x131   : > { %4903 = vmatprep.mubr.msk.bf16.mxu0 %vm5720_vm0, %v5719_v1  ;;  %v1962_v31 = vpack.c.bf16 %v1926_v29, %v1925_v28  ;;  %v2422_v26 = vld [vmem:[%s5856_s24 + $0x4c] sm:$0xff] }
 0x132   : > { %v435_v29 = vld [vmem:[%s5856_s24 + $0x190] sm:$0xff] }
 0x137   : > { %4608 = vmatmul.mubr.msk.bf16.gmra.mrb[16].mxu1 %vm582_vm1, %v451_v33  ;;  %v416_v33 = vld [vmem:[%s5856_s24 + $0xf8] sm:$0xff] }
 0x138   : > { %4904 = vmatmul.mubr.msk.bf16.gmra.mrb[60].mxu0 %vm582_vm1, %v1952_v34  ;;  %4611 = vmatprep.mubr.msk.bf16.mxu1 %vm5720_vm0, %v5719_v1  ;;  %v1927_v34 = vld [vmem:[%s5856_s24 + $0x1a3] sm:$0xff]  ;;  %v462_v36 = vpack.c.bf16 %v416_v33, %v415_v32 }
 0x139   : > { %4907 = vmatprep.mubr.msk.bf16.mxu0 %vm5720_vm0, %v5719_v1  ;;  %v1963_v37 = vpack.c.bf16 %v1928_v35, %v1927_v34  ;;  %v2424_v32 = vld [vmem:[%s5856_s24 + $0x5c] sm:$0xff] }
 0x13a   : > { %v437_v35 = vld [vmem:[%s5856_s24 + $0x1a0] sm:$0xff] }
 0x13f   : > { %4612 = vmatmul.mubr.msk.bf16.gmra.mrb[20].mxu1 %vm582_vm1, %v452_v39  ;;  %v418_v39 = vld [vmem:[%s5856_s24 + $0x108] sm:$0xff] }
 0x140   : > { %4908 = vmatmul.mubr.msk.bf16.gmra.mrb[64].mxu0 %vm582_vm1, %v1953_v40  ;;  %4615 = vmatprep.mubr.msk.bf16.mxu1 %vm5720_vm0, %v5719_v1  ;;  %v1929_v40 = vld [vmem:[%s5856_s24 + $0x1b3] sm:$0xff]  ;;  %v463_v42 = vpack.c.bf16 %v418_v39, %v417_v38 }
 0x141   : > { %4911 = vmatprep.mubr.msk.bf16.mxu0 %vm5720_vm0, %v5719_v1  ;;  %v1964_v43 = vpack.c.bf16 %v1930_v41, %v1929_v40  ;;  %v2426_v38 = vld [vmem:[%s5856_s24 + $0x6c] sm:$0xff] }
 0x142   : > { %v439_v41 = vld [vmem:[%s5856_s24 + $0x1b0] sm:$0xff] }
 0x147   : > { %4616 = vmatmul.mubr.msk.bf16.gmra.mrb[24].mxu1 %vm582_vm1, %v453_v45  ;;  %v420_v45 = vld [vmem:[%s5856_s24 + $0x118] sm:$0xff] }
 0x148   : > { %4912 = vmatmul.mubr.msk.bf16.gmra.mrb[68].mxu0 %vm582_vm1, %v1954_v46  ;;  %4619 = vmatprep.mubr.msk.bf16.mxu1 %vm5720_vm0, %v5719_v1  ;;  %v1931_v46 = vld [vmem:[%s5856_s24 + $0x1c3] sm:$0xff]  ;;  %v464_v48 = vpack.c.bf16 %v420_v45, %v419_v44 }
 0x149   : > { %4915 = vmatprep.mubr.msk.bf16.mxu0 %vm5720_vm0, %v5719_v1  ;;  %v1965_v49 = vpack.c.bf16 %v1932_v47, %v1931_v46  ;;  %v2428_v44 = vld [vmem:[%s5856_s24 + $0x7c] sm:$0xff] }
 0x14f   : > { %4620 = vmatmul.mubr.msk.bf16.gmra.mrb[28].mxu1 %vm582_vm1, %v454_v51  ;;  %v422_v51 = vld [vmem:[%s5856_s24 + $0x128] sm:$0xff] }
 0x150   : > { %4916 = vmatmul.mubr.msk.bf16.gmra.mrb[72].mxu0 %vm582_vm1, %v1955_v52  ;;  %4623 = vmatprep.mubr.msk.bf16.mxu1 %vm5720_vm0, %v5719_v1  ;;  %v1933_v52 = vld [vmem:[%s5856_s24 + $0x1d3] sm:$0xff]  ;;  %v465_v54 = vpack.c.bf16 %v422_v51, %v421_v50  ;;  %v441_v51 = vld [vmem:[%s5856_s24 + $0x1c0] sm:$0xff] }
 0x151   : > { %4919 = vmatprep.mubr.msk.bf16.mxu0 %vm5720_vm0, %v5719_v1  ;;  %v1966_v55 = vpack.c.bf16 %v1934_v53, %v1933_v52  ;;  %v442_v52 = vld [vmem:[%s5856_s24 + $0x1c8] sm:$0xff] }
 0x152   : > { %v2429_v53 = vld [vmem:[%s5856_s24 + $0x84] sm:$0xff] }
 0x157   : > { %4624 = vmatmul.mubr.msk.bf16.gmra.mrb[32].mxu1 %vm582_vm1, %v455_v57  ;;  %v424_v57 = vld [vmem:[%s5856_s24 + $0x138] sm:$0xff] }
 0x158   : > { %4920 = vmatmul.mubr.msk.bf16.gmra.mrb[76].mxu0 %vm582_vm1, %v1956_v58  ;;  %4627 = vmatprep.mubr.msk.bf16.mxu1 %vm5720_vm0, %v5719_v1  ;;  %v1935_v58 = vld [vmem:[%s5856_s24 + $0x1e3] sm:$0xff]  ;;  %v466_v60 = vpack.c.bf16 %v424_v57, %v423_v56  ;;  %v475_v57 = vpack.c.bf16 %v442_v52, %v441_v51  ;;  %v1384_v51 = vld [vmem:[%s5856_s24 + $0x17a] sm:$0xff] }
 0x159   : > { %4923 = vmatprep.mubr.msk.bf16.mxu0 %vm5720_vm0, %v5719_v1  ;;  %v1967_v61 = vpack.c.bf16 %v1936_v59, %v1935_v58  ;;  %v2441_v52 = vld [vmem:[%s5856_s24 + $0xe4] sm:$0xff] }
 0x15f   : > { %4628 = vmatmul.mubr.msk.bf16.gmra.mrb[36].mxu1 %vm582_vm1, %v456_v63  ;;  %v426_v63 = vld [vmem:[%s5856_s24 + $0x148] sm:$0xff] }
 0x160   : > { %4924 = vmatmul.mubr.msk.bf16.gmra.mrb[80].mxu0 %vm582_vm1, %v1957_v2  ;;  %4631 = vmatprep.mubr.msk.bf16.mxu1 %vm5720_vm0, %v5719_v1  ;;  %v2413_v2 = vld [vmem:[%s5856_s24 + $0x4] sm:$0xff]  ;;  %v467_v4 = vpack.c.bf16 %v426_v63, %v425_v62  ;;  %v444_v62 = vld [vmem:[%s5856_s24 + $0x1d8] sm:$0xff] }
 0x161   : > { %4927 = vmatprep.mubr.msk.bf16.mxu0 %vm5720_vm0, %v5719_v1  ;;  %v2475_v5 = vpack.c.bf16 %v2414_v3, %v2413_v2  ;;  %v2431_v63 = vld [vmem:[%s5856_s24 + $0x94] sm:$0xff]  ;;  %v2432_v2 = vld [vmem:[%s5856_s24 + $0x9c] sm:$0xff] }
 0x167   : > { %4632 = vmatmul.mubr.msk.bf16.gmra.mrb[40].mxu1 %vm582_vm1, %v457_v7  ;;  %v428_v7 = vld [vmem:[%s5856_s24 + $0x158] sm:$0xff] }
 0x168   : > { %4928 = vmatmul.mubr.msk.bf16.gmra.mrb[84].mxu0 %vm582_vm1, %v1958_v8  ;;  %4635 = vmatprep.mubr.msk.bf16.mxu1 %vm5720_vm0, %v5719_v1  ;;  %v2415_v8 = vld [vmem:[%s5856_s24 + $0x14] sm:$0xff]  ;;  %v468_v10 = vpack.c.bf16 %v428_v7, %v427_v6  ;;  %v2484_v7 = vpack.c.bf16 %v2432_v2, %v2431_v63  ;;  %v1386_v63 = vld [vmem:[%s5856_s24 + $0x18a] sm:$0xff] }
 0x169   : > { %4931 = vmatprep.mubr.msk.bf16.mxu0 %vm5720_vm0, %v5719_v1  ;;  %v2476_v11 = vpack.c.bf16 %v2416_v9, %v2415_v8  ;;  %v445_v9 = vld [vmem:[%s5856_s24 + $0x1e0] sm:$0xff]  ;;  %v2443_v2 = vld [vmem:[%s5856_s24 + $0xf4] sm:$0xff] }
 0x16f   : > { %4636 = vmatmul.mubr.msk.bf16.gmra.mrb[44].mxu1 %vm582_vm1, %v458_v13  ;;  %v430_v13 = vld [vmem:[%s5856_s24 + $0x168] sm:$0xff] }
 0x170   : > { %4932 = vmatmul.mubr.msk.bf16.gmra.mrb[88].mxu0 %vm582_vm1, %v1959_v14  ;;  %4639 = vmatprep.mubr.msk.bf16.mxu1 %vm5720_vm0, %v5719_v1  ;;  %v2417_v14 = vld [vmem:[%s5856_s24 + $0x24] sm:$0xff]  ;;  %v469_v16 = vpack.c.bf16 %v430_v13, %v429_v12  ;;  %v2434_v12 = vld [vmem:[%s5856_s24 + $0xac] sm:$0xff] }
 0x171   : > { %4935 = vmatprep.mubr.msk.bf16.mxu0 %vm5720_vm0, %v5719_v1  ;;  %v2477_v17 = vpack.c.bf16 %v2418_v15, %v2417_v14 }
 0x177   : > { %4640 = vmatmul.mubr.msk.bf16.gmra.mrb[48].mxu1 %vm582_vm1, %v459_v19  ;;  %v432_v19 = vld [vmem:[%s5856_s24 + $0x178] sm:$0xff] }
 0x178   : > { %4936 = vmatmul.mubr.msk.bf16.gmra.mrb[92].mxu0 %vm582_vm1, %v1960_v20  ;;  %4643 = vmatprep.mubr.msk.bf16.mxu1 %vm5720_vm0, %v5719_v1  ;;  %v2419_v20 = vld [vmem:[%s5856_s24 + $0x34] sm:$0xff]  ;;  %v470_v21 = vpack.c.bf16 %v432_v19, %v431_v18  ;;  %v1377_v19 = vld [vmem:[%s5856_s24 + $0x142] sm:$0xff] }
 0x179   : > { %4939 = vmatprep.mubr.msk.bf16.mxu0 %vm5720_vm0, %v5719_v1  ;;  %v2478_v22 = vpack.c.bf16 %v2420_v0, %v2419_v20  ;;  %v1378_v20 = vld [vmem:[%s5856_s24 + $0x14a] sm:$0xff]  ;;  %v2435_v0 = vld [vmem:[%s5856_s24 + $0xb4] sm:$0xff] }
 0x17f   : > { %4644 = vmatmul.mubr.msk.bf16.gmra.mrb[52].mxu1 %vm582_vm1, %v460_v24  ;;  %v434_v24 = vld [vmem:[%s5856_s24 + $0x188] sm:$0xff] }
 0x180   : > { %4940 = vmatmul.mubr.msk.bf16.gmra.mrb[96].mxu0 %vm582_vm1, %v1961_v25  ;;  %4647 = vmatprep.mubr.msk.bf16.mxu1 %vm5720_vm0, %v5719_v1  ;;  %v2421_v25 = vld [vmem:[%s5856_s24 + $0x44] sm:$0xff]  ;;  %v471_v27 = vpack.c.bf16 %v434_v24, %v433_v23  ;;  %v1419_v24 = vpack.c.bf16 %v1378_v20, %v1377_v19 }
 0x181   : > { %4943 = vmatprep.mubr.msk.bf16.mxu0 %vm5720_vm0, %v5719_v1  ;;  %v2479_v28 = vpack.c.bf16 %v2422_v26, %v2421_v25 }
 0x187   : > { %4648 = vmatmul.mubr.msk.bf16.gmra.mrb[56].mxu1 %vm582_vm1, %v461_v30  ;;  %v436_v30 = vld [vmem:[%s5856_s24 + $0x198] sm:$0xff] }
 0x188   : > { %4944 = vmatmul.mubr.msk.bf16.gmra.mrb[100].mxu0 %vm582_vm1, %v1962_v31  ;;  %4651 = vmatprep.mubr.msk.bf16.mxu1 %vm5720_vm0, %v5719_v1  ;;  %v2423_v31 = vld [vmem:[%s5856_s24 + $0x54] sm:$0xff]  ;;  %v472_v33 = vpack.c.bf16 %v436_v30, %v435_v29  ;;  %v2437_v30 = vld [vmem:[%s5856_s24 + $0xc4] sm:$0xff] }
 0x189   : > { %4947 = vmatprep.mubr.msk.bf16.mxu0 %vm5720_vm0, %v5719_v1  ;;  %v2480_v34 = vpack.c.bf16 %v2424_v32, %v2423_v31  ;;  %v1380_v29 = vld [vmem:[%s5856_s24 + $0x15a] sm:$0xff]  ;;  %v2438_v31 = vld [vmem:[%s5856_s24 + $0xcc] sm:$0xff] }
 0x18f   : > { %4652 = vmatmul.mubr.msk.bf16.gmra.mrb[60].mxu1 %vm582_vm1, %v462_v36  ;;  %v438_v36 = vld [vmem:[%s5856_s24 + $0x1a8] sm:$0xff] }
 0x190   : > { %4948 = vmatmul.mubr.msk.bf16.gmra.mrb[104].mxu0 %vm582_vm1, %v1963_v37  ;;  %4655 = vmatprep.mubr.msk.bf16.mxu1 %vm5720_vm0, %v5719_v1  ;;  %v2425_v37 = vld [vmem:[%s5856_s24 + $0x64] sm:$0xff]  ;;  %v473_v39 = vpack.c.bf16 %v438_v36, %v437_v35  ;;  %v2487_v36 = vpack.c.bf16 %v2438_v31, %v2437_v30 }
 0x191   : > { %4951 = vmatprep.mubr.msk.bf16.mxu0 %vm5720_vm0, %v5719_v1  ;;  %v2481_v40 = vpack.c.bf16 %v2426_v38, %v2425_v37  ;;  %v1381_v38 = vld [vmem:[%s5856_s24 + $0x162] sm:$0xff] }
 0x197   : > { %4656 = vmatmul.mubr.msk.bf16.gmra.mrb[64].mxu1 %vm582_vm1, %v463_v42  ;;  %v440_v42 = vld [vmem:[%s5856_s24 + $0x1b8] sm:$0xff] }
 0x198   : > { %4952 = vmatmul.mubr.msk.bf16.gmra.mrb[108].mxu0 %vm582_vm1, %v1964_v43  ;;  %4659 = vmatprep.mubr.msk.bf16.mxu1 %vm5720_vm0, %v5719_v1  ;;  %v2427_v43 = vld [vmem:[%s5856_s24 + $0x74] sm:$0xff]  ;;  %v474_v47 = vpack.c.bf16 %v440_v42, %v439_v41  ;;  %v2440_v41 = vld [vmem:[%s5856_s24 + $0xdc] sm:$0xff] }
 0x199   : > { %4955 = vmatprep.mubr.msk.bf16.mxu0 %vm5720_vm0, %v5719_v1 }
 0x19f   : > { %4660 = vmatmul.mubr.msk.bf16.gmra.mrb[68].mxu1 %vm582_vm1, %v464_v48 }
 0x1a0   : > { %4956 = vmatmul.mubr.msk.bf16.gmra.mrb[112].mxu0 %vm582_vm1, %v1965_v49  ;;  %4663 = vmatprep.mubr.msk.bf16.mxu1 %vm5720_vm0, %v5719_v1  ;;  %v2482_v49 = vpack.c.bf16 %v2428_v44, %v2427_v43 }
 0x1a1   : > { %4959 = vmatprep.mubr.msk.bf16.mxu0 %vm5720_vm0, %v5719_v1 }
 0x1a7   : > { %4664 = vmatmul.mubr.msk.bf16.gmra.mrb[72].mxu1 %vm582_vm1, %v465_v54  ;;  %v2430_v54 = vld [vmem:[%s5856_s24 + $0x8c] sm:$0xff] }
 0x1a8   : > { %4960 = vmatmul.mubr.msk.bf16.gmra.mrb[116].mxu0 %vm582_vm1, %v1966_v55  ;;  %4667 = vmatprep.mubr.msk.bf16.mxu1 %vm5720_vm0, %v5719_v1  ;;  %v2483_v59 = vpack.c.bf16 %v2430_v54, %v2429_v53  ;;  %v2442_v53 = vld [vmem:[%s5856_s24 + $0xec] sm:$0xff] }
 0x1a9   : > { %4963 = vmatprep.mubr.msk.bf16.mxu0 %vm5720_vm0, %v5719_v1 }
 0x1af   : > { %4668 = vmatmul.mubr.msk.bf16.gmra.mrb[76].mxu1 %vm582_vm1, %v466_v60 }
 0x1b0   : > { %4964 = vmatmul.mubr.msk.bf16.gmra.mrb[120].mxu0 %vm582_vm1, %v1967_v61  ;;  %4671 = vmatprep.mubr.msk.bf16.mxu1 %vm5720_vm0, %v5719_v1  ;;  %v443_v61 = vld [vmem:[%s5856_s24 + $0x1d0] sm:$0xff] }
 0x1b1   : > { %4969 = vmatprep.mubr.msk.bf16.mxu0 %vm5720_vm0, %v5719_v1 }
 0x1b7   : > { %4672 = vmatmul.mubr.msk.bf16.gmra.mrb[80].mxu1 %vm582_vm1, %v467_v4 }
 0x1b8   : > { %4970 = vmatmul.mubr.msk.bf16.vlgmr.msra.gmra.mrb[0].mxu0 %vm582_vm1, %v2475_v5  ;;  %4675 = vmatprep.mubr.msk.bf16.mxu1 %vm5720_vm0, %v5719_v1  ;;  %v476_v5 = vpack.c.bf16 %v444_v62, %v443_v61  ;;  %v1385_v62 = vld [vmem:[%s5856_s24 + $0x182] sm:$0xff] }
 0x1b9   : > { %4973 = vmatprep.mubr.msk.bf16.mxu0 %vm5720_vm0, %v5719_v1 }
 0x1bf   : > { %4676 = vmatmul.mubr.msk.bf16.gmra.mrb[84].mxu1 %vm582_vm1, %v468_v10  ;;  %v446_v10 = vld [vmem:[%s5856_s24 + $0x1e8] sm:$0xff] }
 0x1c0   : > { %4974 = vmatmul.mubr.msk.bf16.gmra.mrb[4].mxu0 %vm582_vm1, %v2476_v11  ;;  %4679 = vmatprep.mubr.msk.bf16.mxu1 %vm5720_vm0, %v5719_v1  ;;  %v2433_v11 = vld [vmem:[%s5856_s24 + $0xa4] sm:$0xff]  ;;  %v477_v15 = vpack.c.bf16 %v446_v10, %v445_v9 }
 0x1c1   : > { %4977 = vmatprep.mubr.msk.bf16.mxu0 %vm5720_vm0, %v5719_v1 }
 0x1c7   : > { %4680 = vmatmul.mubr.msk.bf16.gmra.mrb[88].mxu1 %vm582_vm1, %v469_v16 }
 0x1c8   : > { %4978 = vmatmul.mubr.msk.bf16.gmra.mrb[8].mxu0 %vm582_vm1, %v2477_v17  ;;  %4683 = vmatprep.mubr.msk.bf16.mxu1 %vm5720_vm0, %v5719_v1  ;;  %v2485_v17 = vpack.c.bf16 %v2434_v12, %v2433_v11  ;;  %v1387_v12 = vld [vmem:[%s5856_s24 + $0x192] sm:$0xff] }
 0x1c9   : > { %4981 = vmatprep.mubr.msk.bf16.mxu0 %vm5720_vm0, %v5719_v1 }
 0x1cf   : > { %4684 = vmatmul.mubr.msk.bf16.gmra.mrb[92].mxu1 %vm582_vm1, %v470_v21  ;;  %v2436_v21 = vld [vmem:[%s5856_s24 + $0xbc] sm:$0xff] }
 0x1d0   : > { %4982 = vmatmul.mubr.msk.bf16.gmra.mrb[12].mxu0 %vm582_vm1, %v2478_v22  ;;  %4687 = vmatprep.mubr.msk.bf16.mxu1 %vm5720_vm0, %v5719_v1  ;;  %v2486_v26 = vpack.c.bf16 %v2436_v21, %v2435_v0 }
 0x1d1   : > { %4985 = vmatprep.mubr.msk.bf16.mxu0 %vm5720_vm0, %v5719_v1 }
 0x1d7   : > { %4688 = vmatmul.mubr.msk.bf16.gmra.mrb[96].mxu1 %vm582_vm1, %v471_v27 }
 0x1d8   : > { %4986 = vmatmul.mubr.msk.bf16.gmra.mrb[16].mxu0 %vm582_vm1, %v2479_v28  ;;  %4691 = vmatprep.mubr.msk.bf16.mxu1 %vm5720_vm0, %v5719_v1  ;;  %v1379_v28 = vld [vmem:[%s5856_s24 + $0x152] sm:$0xff] }
 0x1d9   : > { %4989 = vmatprep.mubr.msk.bf16.mxu0 %vm5720_vm0, %v5719_v1 }
 0x1df   : > { %4692 = vmatmul.mubr.msk.bf16.gmra.mrb[100].mxu1 %vm582_vm1, %v472_v33 }
 0x1e0   : > { %4990 = vmatmul.mubr.msk.bf16.gmra.mrb[20].mxu0 %vm582_vm1, %v2480_v34  ;;  %4695 = vmatprep.mubr.msk.bf16.mxu1 %vm5720_vm0, %v5719_v1  ;;  %v1420_v34 = vpack.c.bf16 %v1380_v29, %v1379_v28  ;;  %v2448_v28 = vld [vmem:[%s5856_s24 + $0x11c] sm:$0xff] }
 0x1e1   : > { %4993 = vmatprep.mubr.msk.bf16.mxu0 %vm5720_vm0, %v5719_v1 }
 0x1e7   : > { %4696 = vmatmul.mubr.msk.bf16.gmra.mrb[104].mxu1 %vm582_vm1, %v473_v39  ;;  %v1382_v39 = vld [vmem:[%s5856_s24 + $0x16a] sm:$0xff] }
 0x1e8   : > { %4994 = vmatmul.mubr.msk.bf16.gmra.mrb[24].mxu0 %vm582_vm1, %v2481_v40  ;;  %4699 = vmatprep.mubr.msk.bf16.mxu1 %vm5720_vm0, %v5719_v1  ;;  %v2439_v40 = vld [vmem:[%s5856_s24 + $0xd4] sm:$0xff]  ;;  %v1421_v44 = vpack.c.bf16 %v1382_v39, %v1381_v38  ;;  %v2449_v39 = vld [vmem:[%s5856_s24 + $0x124] sm:$0xff] }
 0x1e9   : > { %4997 = vmatprep.mubr.msk.bf16.mxu0 %vm5720_vm0, %v5719_v1  ;;  %v1392_v38 = vld [vmem:[%s5856_s24 + $0x1ba] sm:$0xff] }
 0x1ea   : > { %v6454_v45 = vpop.f32.mrb[0].mxu1 }
 0x1eb   : > { %v4593_v46 = vpop.f32.mrb[1].mxu1 }
 0x1ec   : > { %v6456_v48 = vpop.f32.mrb[2].mxu1 }
 0x1ed   : > { %v4594_v50 = vpop.f32.mrb[3].mxu1 }
 0x1ee   : > { %v1383_v50 = vld [vmem:[%s5856_s24 + $0x172] sm:$0xff] }
 0x1ef   : > { %4700 = vmatmul.mubr.msk.bf16.gmra.mrb[108].mxu1 %vm582_vm1, %v474_v47  ;;  %v2488_v47 = vpack.c.bf16 %v2440_v41, %v2439_v40  ;;  %v2450_v40 = vld [vmem:[%s5856_s24 + $0x12c] sm:$0xff] }
 0x1f0   : > { %4998 = vmatmul.mubr.msk.bf16.gmra.mrb[28].mxu0 %vm582_vm1, %v2482_v49  ;;  %4703 = vmatprep.mubr.msk.bf16.mxu1 %vm5720_vm0, %v5719_v1 }
 0x1f1   : > { %5001 = vmatprep.mubr.msk.bf16.mxu0 %vm5720_vm0, %v5719_v1 }
 0x1f2   : > { %v6468_v55 = vpop.f32.mrb[4].mxu1 }
 0x1f3   : > { %v4597_v56 = vpop.f32.mrb[5].mxu1 }
 0x1f4   : > { %v6470_v58 = vpop.f32.mrb[6].mxu1 }
 0x1f5   : > { %v4598_v60 = vpop.f32.mrb[7].mxu1 }
 0x1f6   : > { %v2489_v60 = vpack.c.bf16 %v2442_v53, %v2441_v52  ;;  %v1394_v52 = vld [vmem:[%s5856_s24 + $0x1ca] sm:$0xff]  ;;  %v2451_v53 = vld [vmem:[%s5856_s24 + $0x134] sm:$0xff] }
 0x1f7   : > { %4704 = vmatmul.mubr.msk.bf16.gmra.mrb[112].mxu1 %vm582_vm1, %v475_v57  ;;  %v1422_v57 = vpack.c.bf16 %v1384_v51, %v1383_v50  ;;  %v1393_v51 = vld [vmem:[%s5856_s24 + $0x1c2] sm:$0xff] }
 0x1f8   : > { %5002 = vmatmul.mubr.msk.bf16.gmra.mrb[32].mxu0 %vm582_vm1, %v2483_v59  ;;  %4707 = vmatprep.mubr.msk.bf16.mxu1 %vm5720_vm0, %v5719_v1 }
 0x1f9   : > { %5005 = vmatprep.mubr.msk.bf16.mxu0 %vm5720_vm0, %v5719_v1 }
 0x1fa   : > { %v6482_v3 = vpop.f32.mrb[8].mxu1 }
 0x1fb   : > { %v4601_v4 = vpop.f32.mrb[9].mxu1 }
 0x1fc   : > { %v6484_v6 = vpop.f32.mrb[10].mxu1  ;;  %v2444_v4 = vld [vmem:[%s5856_s24 + $0xfc] sm:$0xff] }
 0x1fd   : > { %v4602_v8 = vpop.f32.mrb[11].mxu1  ;;  %v2490_v10 = vpack.c.bf16 %v2444_v4, %v2443_v2  ;;  %v1395_v4 = vld [vmem:[%s5856_s24 + $0x1d2] sm:$0xff] }
 0x1fe   : > { %v1423_v8 = vpack.c.bf16 %v1386_v63, %v1385_v62 }
 0x1ff   : > { %4708 = vmatmul.mubr.msk.bf16.gmra.mrb[116].mxu1 %vm582_vm1, %v476_v5 }
 0x200   : > { %5006 = vmatmul.mubr.msk.bf16.gmra.mrb[36].mxu0 %vm582_vm1, %v2484_v7  ;;  %4711 = vmatprep.mubr.msk.bf16.mxu1 %vm5720_vm0, %v5719_v1 }
 0x201   : > { %5009 = vmatprep.mubr.msk.bf16.mxu0 %vm5720_vm0, %v5719_v1 }
 0x202   : > { %v6496_v13 = vpop.f32.mrb[12].mxu1 }
 0x203   : > { %v4605_v14 = vpop.f32.mrb[13].mxu1 }
 0x204   : > { %v6498_v16 = vpop.f32.mrb[14].mxu1  ;;  %v1388_v14 = vld [vmem:[%s5856_s24 + $0x19a] sm:$0xff] }
 0x205   : > { %v4606_v18 = vpop.f32.mrb[15].mxu1  ;;  %v1424_v20 = vpack.c.bf16 %v1388_v14, %v1387_v12 }
 0x207   : > { %4712 = vmatmul.mubr.msk.bf16.gmra.mrb[120].mxu1 %vm582_vm1, %v477_v15  ;;  %v2445_v15 = vld [vmem:[%s5856_s24 + $0x104] sm:$0xff] }
 0x208   : > { %5010 = vmatmul.mubr.msk.bf16.gmra.mrb[40].mxu0 %vm582_vm1, %v2485_v17  ;;  %4797 = vmatprep.mubr.msk.bf16.mxu1 %vm5720_vm0, %v5719_v1  ;;  %v2446_v17 = vld [vmem:[%s5856_s24 + $0x10c] sm:$0xff] }
 0x209   : > { %5013 = vmatprep.mubr.msk.bf16.mxu0 %vm5720_vm0, %v5719_v1  ;;  %v2491_v21 = vpack.c.bf16 %v2446_v17, %v2445_v15 }
 0x20a   : > { %v6510_v22 = vpop.f32.mrb[16].mxu1 }
 0x20b   : > { %v4609_v23 = vpop.f32.mrb[17].mxu1 }
 0x20c   : > { %v6512_v25 = vpop.f32.mrb[18].mxu1 }
 0x20d   : > { %v4610_v27 = vpop.f32.mrb[19].mxu1 }
 0x20e   : > { %v2447_v27 = vld [vmem:[%s5856_s24 + $0x114] sm:$0xff] }
 0x20f   : > { %4798 = vmatmul.mubr.msk.bf16.vlgmr.msra.gmra.mrb[80].mxu1 %vm582_vm1, %v1419_v24  ;;  %v1389_v24 = vld [vmem:[%s5856_s24 + $0x1a2] sm:$0xff] }
 0x210   : > { %5014 = vmatmul.mubr.msk.bf16.gmra.mrb[44].mxu0 %vm582_vm1, %v2486_v26  ;;  %4801 = vmatprep.mubr.msk.bf16.mxu1 %vm5720_vm0, %v5719_v1  ;;  %v1390_v26 = vld [vmem:[%s5856_s24 + $0x1aa] sm:$0xff] }
 0x211   : > { %5017 = vmatprep.mubr.msk.bf16.mxu0 %vm5720_vm0, %v5719_v1  ;;  %v1425_v31 = vpack.c.bf16 %v1390_v26, %v1389_v24  ;;  %v1398_v24 = vld [vmem:[%s5856_s24 + $0x1ea] sm:$0xff]  ;;  %v2455_v26 = vld [vmem:[%s5856_s24 + $0x154] sm:$0xff] }
 0x212   : > { %v6524_v32 = vpop.f32.mrb[20].mxu1 }
 0x213   : > { %v4613_v33 = vpop.f32.mrb[21].mxu1 }
 0x214   : > { %v6526_v35 = vpop.f32.mrb[22].mxu1 }
 0x215   : > { %v4614_v37 = vpop.f32.mrb[23].mxu1 }
 0x216   : > { %v1391_v37 = vld [vmem:[%s5856_s24 + $0x1b2] sm:$0xff] }
 0x217   : > { %4802 = vmatmul.mubr.msk.bf16.gmra.mrb[84].mxu1 %vm582_vm1, %v1420_v34  ;;  %v2492_v34 = vpack.c.bf16 %v2448_v28, %v2447_v27  ;;  %v2456_v27 = vld [vmem:[%s5856_s24 + $0x15c] sm:$0xff] }
 0x218   : > { %5018 = vmatmul.mubr.msk.bf16.gmra.mrb[48].mxu0 %vm582_vm1, %v2487_v36  ;;  %4805 = vmatprep.mubr.msk.bf16.mxu1 %vm5720_vm0, %v5719_v1 }
 0x219   : > { %5021 = vmatprep.mubr.msk.bf16.mxu0 %vm5720_vm0, %v5719_v1 }
 0x21a   : > { %v6538_v42 = vpop.f32.mrb[24].mxu1 }
 0x21b   : > { %v4617_v43 = vpop.f32.mrb[25].mxu1 }
 0x21c   : > { %v6540_v46 = vpop.f32.mrb[26].mxu1 }
 0x21d   : > { %v4618_v49 = vpop.f32.mrb[27].mxu1 }
 0x21e   : > { %v2493_v49 = vpack.c.bf16 %v2450_v40, %v2449_v39  ;;  %v2458_v39 = vld [vmem:[%s5856_s24 + $0x16c] sm:$0xff] }
 0x21f   : > { %4806 = vmatmul.mubr.msk.bf16.gmra.mrb[88].mxu1 %vm582_vm1, %v1421_v44  ;;  %v1426_v44 = vpack.c.bf16 %v1392_v38, %v1391_v37  ;;  %v2457_v38 = vld [vmem:[%s5856_s24 + $0x164] sm:$0xff] }
 0x220   : > { %5022 = vmatmul.mubr.msk.bf16.gmra.mrb[52].mxu0 %vm582_vm1, %v2488_v47  ;;  %4809 = vmatprep.mubr.msk.bf16.mxu1 %vm5720_vm0, %v5719_v1 }
 0x221   : > { %5025 = vmatprep.mubr.msk.bf16.mxu0 %vm5720_vm0, %v5719_v1 }
 0x222   : > { %v6552_v54 = vpop.f32.mrb[28].mxu1 }
 0x223   : > { %v4621_v56 = vpop.f32.mrb[29].mxu1 }
 0x224   : > { %v6554_v59 = vpop.f32.mrb[30].mxu1  ;;  %v2452_v56 = vld [vmem:[%s5856_s24 + $0x13c] sm:$0xff] }
 0x225   : > { %v4622_v61 = vpop.f32.mrb[31].mxu1  ;;  %v2494_v63 = vpack.c.bf16 %v2452_v56, %v2451_v53 }
 0x226   : > { %v1427_v61 = vpack.c.bf16 %v1394_v52, %v1393_v51  ;;  %v2459_v51 = vld [vmem:[%s5856_s24 + $0x174] sm:$0xff]  ;;  %v2460_v52 = vld [vmem:[%s5856_s24 + $0x17c] sm:$0xff] }
 0x227   : > { %4810 = vmatmul.mubr.msk.bf16.gmra.mrb[92].mxu1 %vm582_vm1, %v1422_v57 }
 0x228   : > { %5026 = vmatmul.mubr.msk.bf16.gmra.mrb[56].mxu0 %vm582_vm1, %v2489_v60  ;;  %4813 = vmatprep.mubr.msk.bf16.mxu1 %vm5720_vm0, %v5719_v1 }
 0x229   : > { %5029 = vmatprep.mubr.msk.bf16.mxu0 %vm5720_vm0, %v5719_v1 }
 0x22a   : > { %v6566_v5 = vpop.f32.mrb[32].mxu1 }
 0x22b   : > { %v4625_v7 = vpop.f32.mrb[33].mxu1 }
 0x22c   : > { %v6568_v9 = vpop.f32.mrb[34].mxu1  ;;  %v1396_v7 = vld [vmem:[%s5856_s24 + $0x1da] sm:$0xff] }
 0x22d   : > { %v4626_v11 = vpop.f32.mrb[35].mxu1  ;;  %v1428_v15 = vpack.c.bf16 %v1396_v7, %v1395_v4  ;;  %v2462_v4 = vld [vmem:[%s5856_s24 + $0x18c] sm:$0xff] }
 0x22e   : > { %v2454_v11 = vld [vmem:[%s5856_s24 + $0x14c] sm:$0xff] }
 0x22f   : > { %4814 = vmatmul.mubr.msk.bf16.gmra.mrb[96].mxu1 %vm582_vm1, %v1423_v8  ;;  %v5631_v8 = vld [vmem:[%s7214_s3] sm:$0xff]  }
 0x230   : > { %5030 = vmatmul.mubr.msk.bf16.gmra.mrb[60].mxu0 %vm582_vm1, %v2490_v10  ;;  %4817 = vmatprep.mubr.msk.bf16.mxu1 %vm5720_vm0, %v5719_v1  ;;  %v2453_v10 = vld [vmem:[%s5856_s24 + $0x144] sm:$0xff] }
 0x231   : > { %5033 = vmatprep.mubr.msk.bf16.mxu0 %vm5720_vm0, %v5719_v1  ;;  %5093 = vmatprep.subr.bf16.mxu1 %v5631_v8 }
 0x232   : > { %v6580_v18 = vpop.f32.mrb[36].mxu1  ;;  %5094 = vmatpush3.bf16.msra.mxu1 %v5631_v8 }
 0x233   : > { %v4629_v19 = vpop.f32.mrb[37].mxu1 }
 0x234   : > { %v6582_v0 = vpop.f32.mrb[38].mxu1  ;;  %v2495_v19 = vpack.c.bf16 %v2454_v11, %v2453_v10 }
 0x235   : > { %v4630_v23 = vpop.f32.mrb[39].mxu1 }
 0x236   : > { %v1397_v23 = vld [vmem:[%s5856_s24 + $0x1e2] sm:$0xff] }
 0x237   : > { %4818 = vmatmul.mubr.msk.bf16.gmra.mrb[100].mxu1 %vm582_vm1, %v1424_v20 }
 0x238   : > { %5034 = vmatmul.mubr.msk.bf16.gmra.mrb[64].mxu0 %vm582_vm1, %v2491_v21  ;;  %4821 = vmatprep.mubr.msk.bf16.mxu1 %vm5720_vm0, %v5719_v1  ;;  %v5632_v21 = vld [vmem:[%s7214_s3 + $0x8] sm:$0xff]  }
 0x239   : > { %5037 = vmatprep.mubr.msk.bf16.mxu0 %vm5720_vm0, %v5719_v1  ;;  %5095 = vmatprep.subr.bf16.mxu1 %v5632_v21 }
 0x23a   : > { %v6594_v29 = vpop.f32.mrb[40].mxu1  ;;  %5096 = vmatpush3.bf16.msra.mxu1 %v5632_v21 }
 0x23b   : > { %v4633_v30 = vpop.f32.mrb[41].mxu1 }
 0x23c   : > { %v6596_v33 = vpop.f32.mrb[42].mxu1 }
 0x23d   : > { %v4634_v36 = vpop.f32.mrb[43].mxu1 }
 0x23e   : > { %v2496_v36 = vpack.c.bf16 %v2456_v27, %v2455_v26  ;;  %v2465_v27 = vld [vmem:[%s5856_s24 + $0x1a4] sm:$0xff] }
 0x23f   : > { %4822 = vmatmul.mubr.msk.bf16.gmra.mrb[104].mxu1 %vm582_vm1, %v1425_v31  ;;  %v1429_v31 = vpack.c.bf16 %v1398_v24, %v1397_v23 }
 0x240   : > { %5038 = vmatmul.mubr.msk.bf16.gmra.mrb[68].mxu0 %vm582_vm1, %v2492_v34  ;;  %4825 = vmatprep.mubr.msk.bf16.mxu1 %vm5720_vm0, %v5719_v1 }
 0x241   : > { %5041 = vmatprep.mubr.msk.bf16.mxu0 %vm5720_vm0, %v5719_v1 }
 0x242   : > { %v6608_v41 = vpop.f32.mrb[44].mxu1 }
 0x243   : > { %v4637_v43 = vpop.f32.mrb[45].mxu1 }
 0x244   : > { %v6610_v47 = vpop.f32.mrb[46].mxu1 }
 0x245   : > { %v4638_v50 = vpop.f32.mrb[47].mxu1 }
 0x247   : > { %4826 = vmatmul.mubr.msk.bf16.gmra.mrb[108].mxu1 %vm582_vm1, %v1426_v44 }
 0x248   : > { %5042 = vmatmul.mubr.msk.bf16.gmra.mrb[72].mxu0 %vm582_vm1, %v2493_v49  ;;  %4829 = vmatprep.mubr.msk.bf16.mxu1 %vm5720_vm0, %v5719_v1  ;;  %v2497_v49 = vpack.c.bf16 %v2458_v39, %v2457_v38 }
 0x249   : > { %5045 = vmatprep.mubr.msk.bf16.mxu0 %vm5720_vm0, %v5719_v1 }
 0x24a   : > { %v6622_v57 = vpop.f32.mrb[48].mxu1 }
 0x24b   : > { %v4641_v60 = vpop.f32.mrb[49].mxu1 }
 0x24c   : > { %v6624_v62 = vpop.f32.mrb[50].mxu1 }
 0x24d   : > { %v4642_v2 = vpop.f32.mrb[51].mxu1 }
 0x24e   : > { %v2461_v2 = vld [vmem:[%s5856_s24 + $0x184] sm:$0xff] }
 0x24f   : > { %4830 = vmatmul.mubr.msk.bf16.gmra.mrb[112].mxu1 %vm582_vm1, %v1427_v61  ;;  %v2498_v61 = vpack.c.bf16 %v2460_v52, %v2459_v51  ;;  %v2499_v11 = vpack.c.bf16 %v2462_v4, %v2461_v2  ;;  %v2469_v4 = vld [vmem:[%s5856_s24 + $0x1c4] sm:$0xff] }
 0x250   : > { %5046 = vmatmul.mubr.msk.bf16.gmra.mrb[76].mxu0 %vm582_vm1, %v2494_v63  ;;  %4833 = vmatprep.mubr.msk.bf16.mxu1 %vm5720_vm0, %v5719_v1 }
 0x251   : > { %5049 = vmatprep.mubr.msk.bf16.mxu0 %vm5720_vm0, %v5719_v1 }
 0x252   : > { %v6639_v12 = vpop.f32.mrb[52].mxu1 }
 0x253   : > { %v4645_v14 = vpop.f32.mrb[53].mxu1 }
 0x254   : > { %v6641_v17 = vpop.f32.mrb[54].mxu1 }
 0x255   : > { %v4646_v20 = vpop.f32.mrb[55].mxu1 }
 0x257   : > { %4834 = vmatmul.mubr.msk.bf16.gmra.mrb[116].mxu1 %vm582_vm1, %v1428_v15  ;;  %v2463_v15 = vld [vmem:[%s5856_s24 + $0x194] sm:$0xff] }
 0x258   : > { %5050 = vmatmul.mubr.msk.bf16.gmra.mrb[80].mxu0 %vm582_vm1, %v2495_v19  ;;  %4837 = vmatprep.mubr.msk.bf16.mxu1 %vm5720_vm0, %v5719_v1  ;;  %v2464_v19 = vld [vmem:[%s5856_s24 + $0x19c] sm:$0xff] }
 0x259   : > { %5053 = vmatprep.mubr.msk.bf16.mxu0 %vm5720_vm0, %v5719_v1  ;;  %v2500_v24 = vpack.c.bf16 %v2464_v19, %v2463_v15 }
 0x25a   : > { %v6656_v28 = vpop.f32.mrb[56].mxu1 }
 0x25b   : > { %v4649_v30 = vpop.f32.mrb[57].mxu1 }
 0x25c   : > { %v6658_v34 = vpop.f32.mrb[58].mxu1  ;;  %v2466_v30 = vld [vmem:[%s5856_s24 + $0x1ac] sm:$0xff] }
 0x25d   : > { %v4650_v37 = vpop.f32.mrb[59].mxu1  ;;  %v2501_v38 = vpack.c.bf16 %v2466_v30, %v2465_v27 }
 0x25f   : > { %4838 = vmatmul.mubr.msk.bf16.gmra.mrb[120].mxu1 %vm582_vm1, %v1429_v31 }
 0x260   : > { %5054 = vmatmul.mubr.msk.bf16.gmra.mrb[84].mxu0 %vm582_vm1, %v2496_v36 }
 0x261   : > { %5057 = vmatprep.mubr.msk.bf16.mxu0 %vm5720_vm0, %v5719_v1 }
 0x262   : > { %v6666_v40 = vpop.f32.mrb[60].mxu1 }
 0x263   : > { %v4653_v43 = vpop.f32.mrb[61].mxu1 }
 0x264   : > { %v6668_v44 = vpop.f32.mrb[62].mxu1  ;;  %v2467_v43 = vld [vmem:[%s5856_s24 + $0x1b4] sm:$0xff] }
 0x265   : > { %v4654_v50 = vpop.f32.mrb[63].mxu1 }
 0x268   : > { %5058 = vmatmul.mubr.msk.bf16.gmra.mrb[88].mxu0 %vm582_vm1, %v2497_v49  ;;  %v2468_v49 = vld [vmem:[%s5856_s24 + $0x1bc] sm:$0xff] }
 0x269   : > { %5061 = vmatprep.mubr.msk.bf16.mxu0 %vm5720_vm0, %v5719_v1 }
 0x26a   : > { %v6675_v53 = vpop.f32.mrb[64].mxu1 }
 0x26b   : > { %v4657_v56 = vpop.f32.mrb[65].mxu1 }
 0x26c   : > { %v6677_v60 = vpop.f32.mrb[66].mxu1  ;;  %v2502_v56 = vpack.c.bf16 %v2468_v49, %v2467_v43  ;;  %v2473_v43 = vld [vmem:[%s5856_s24 + $0x1e4] sm:$0xff]  ;;  %v2474_v49 = vld [vmem:[%s5856_s24 + $0x1ec] sm:$0xff] }
 0x26d   : > { %v4658_v63 = vpop.f32.mrb[67].mxu1 }
 0x270   : > { %5062 = vmatmul.mubr.msk.bf16.gmra.mrb[92].mxu0 %vm582_vm1, %v2498_v61 }
 0x271   : > { %5065 = vmatprep.mubr.msk.bf16.mxu0 %vm5720_vm0, %v5719_v1 }
 0x272   : > { %v6684_v7 = vpop.f32.mrb[68].mxu1 }
 0x273   : > { %v4661_v8 = vpop.f32.mrb[69].mxu1 }
 0x274   : > { %v6686_v10 = vpop.f32.mrb[70].mxu1  ;;  %v2470_v8 = vld [vmem:[%s5856_s24 + $0x1cc] sm:$0xff] }
 0x275   : > { %v4662_v14 = vpop.f32.mrb[71].mxu1  ;;  %v2503_v15 = vpack.c.bf16 %v2470_v8, %v2469_v4 }
 0x278   : > { %5066 = vmatmul.mubr.msk.bf16.gmra.mrb[96].mxu0 %vm582_vm1, %v2499_v11 }
 0x279   : > { %5069 = vmatprep.mubr.msk.bf16.mxu0 %vm5720_vm0, %v5719_v1 }
 0x27a   : > { %v6693_v20 = vpop.f32.mrb[72].mxu1 }
 0x27b   : > { %v4665_v21 = vpop.f32.mrb[73].mxu1 }
 0x27c   : > { %v6695_v23 = vpop.f32.mrb[74].mxu1 }
 0x27d   : > { %v4666_v26 = vpop.f32.mrb[75].mxu1 }
 0x27e   : > { %v2472_v26 = vld [vmem:[%s5856_s24 + $0x1dc] sm:$0xff] }
 0x280   : > { %5070 = vmatmul.mubr.msk.bf16.gmra.mrb[100].mxu0 %vm582_vm1, %v2500_v24  ;;  %v2471_v24 = vld [vmem:[%s5856_s24 + $0x1d4] sm:$0xff] }
 0x281   : > { %5073 = vmatprep.mubr.msk.bf16.mxu0 %vm5720_vm0, %v5719_v1 }
 0x282   : > { %v6702_v31 = vpop.f32.mrb[76].mxu1 }
 0x283   : > { %v4669_v36 = vpop.f32.mrb[77].mxu1 }
 0x284   : > { %v6704_v37 = vpop.f32.mrb[78].mxu1  ;;  %v2504_v36 = vpack.c.bf16 %v2472_v26, %v2471_v24 }
 0x285   : > { %v4670_v39 = vpop.f32.mrb[79].mxu1 }
 0x288   : > { %5074 = vmatmul.mubr.msk.bf16.gmra.mrb[104].mxu0 %vm582_vm1, %v2501_v38 }
 0x289   : > { %5077 = vmatprep.mubr.msk.bf16.mxu0 %vm5720_vm0, %v5719_v1 }
 0x28b   : > { %v2642_v50 = vpop.f32.mrb[0].mxu0 }
 0x28c   : > { %v5146_v51 = vadd.f32 %v2642_v50, %v6454_v45  ;;  %v4971_v52 = vpop.f32.mrb[1].mxu0 }
 0x28d   : > { %v2645_v61 = vpop.f32.mrb[2].mxu0  ;;  %v2505_v52 = vpack.c.bf16 %v2474_v49, %v2473_v43 }
 0x28e   : > { %2952 = vst.msk [vmem:[#allocation2] sm:$0xff] %vm2951_vm2, %v5146_v51  ;;  %v5147_v63 = vadd.f32 %v2645_v61, %v6456_v48  ;;  %v4972_v2 = vpop.f32.mrb[3].mxu0 }
 0x290   : > { %2953 = vst.msk [vmem:[#allocation2 + $0x8] sm:$0xff] %vm2951_vm2, %v5147_v63  ;;  %5078 = vmatmul.mubr.msk.bf16.gmra.mrb[108].mxu0 %vm582_vm1, %v2502_v56 }
 0x291   : > { %5081 = vmatprep.mubr.msk.bf16.mxu0 %vm5720_vm0, %v5719_v1 }
 0x293   : > { %v2650_v45 = vpop.f32.mrb[4].mxu0 }
 0x294   : > { %v5148_v11 = vadd.f32 %v2650_v45, %v6468_v55  ;;  %v4975_v14 = vpop.f32.mrb[5].mxu0 }
 0x295   : > { %v2653_v19 = vpop.f32.mrb[6].mxu0 }
 0x296   : > { %2954 = vst.msk [vmem:[#allocation2 + $0x10] sm:$0xff] %vm2951_vm2, %v5148_v11  ;;  %v5149_v48 = vadd.f32 %v2653_v19, %v6470_v58  ;;  %v4976_v21 = vpop.f32.mrb[7].mxu0 }
 0x298   : > { %2955 = vst.msk [vmem:[#allocation2 + $0x18] sm:$0xff] %vm2951_vm2, %v5149_v48  ;;  %5082 = vmatmul.mubr.msk.bf16.gmra.mrb[112].mxu0 %vm582_vm1, %v2503_v15 }
 0x299   : > { %5085 = vmatprep.mubr.msk.bf16.mxu0 %vm5720_vm0, %v5719_v1 }
 0x29b   : > { %v2658_v55 = vpop.f32.mrb[8].mxu0 }
 0x29c   : > { %v5150_v27 = vadd.f32 %v2658_v55, %v6482_v3  ;;  %v4979_v30 = vpop.f32.mrb[9].mxu0 }
 0x29d   : > { %v2661_v38 = vpop.f32.mrb[10].mxu0 }
 0x29e   : > { %2956 = vst.msk [vmem:[#allocation2 + $0x20] sm:$0xff] %vm2951_vm2, %v5150_v27  ;;  %v5151_v58 = vadd.f32 %v2661_v38, %v6484_v6  ;;  %v4980_v39 = vpop.f32.mrb[11].mxu0 }
 0x29f   : > { %v3014_v63 = vld [vmem:[#allocation2] ss:$4 sm:$0xff]  ;;  %v3046_v2 = vld [vmem:[#allocation2 + $0x1] ss:$4 sm:$0xff]  ;;  %v3094_v4 = vld [vmem:[#allocation2 + $0x2] ss:$4 sm:$0xff] }
 0x2a0   : > { %2957 = vst.msk [vmem:[#allocation2 + $0x28] sm:$0xff] %vm2951_vm2, %v5151_v58  ;;  %5086 = vmatmul.mubr.msk.bf16.gmra.mrb[116].mxu0 %vm582_vm1, %v2504_v36  ;;  %v3126_v8 = vld [vmem:[#allocation2 + $0x3] ss:$4 sm:$0xff]  ;;  %v3077_v11 = vmax.f32 %v3014_v63, %v3046_v2  ;;  %v6750_v36 = vld [vmem:[%s7213_s2] ss:$0 sm:$0xff] }
 0x2a1   : > { %5089 = vmatprep.mubr.msk.bf16.mxu0 %vm5720_vm0, %v5719_v1  ;;  %v3157_v14 = vmax.f32 %v3094_v4, %v3126_v8 }
 0x2a3   : > { %v2666_v50 = vpop.f32.mrb[12].mxu0  ;;  %v3173_v55 = vmax.f32 %v3077_v11, %v3157_v14 }
 0x2a4   : > { %v5152_v3 = vadd.f32 %v2666_v50, %v6496_v13  ;;  %v4983_v51 = vpop.f32.mrb[13].mxu0 }
 0x2a5   : > { %v2669_v56 = vpop.f32.mrb[14].mxu0  ;;  %v3196_v39 = vadd.f32 %v6750_v36, %v3173_v55 }
 0x2a6   : > { %2958 = vst.msk [vmem:[#allocation2 + $0x30] sm:$0xff] %vm2951_vm2, %v5152_v3  ;;  %v5153_v6 = vadd.f32 %v2669_v56, %v6498_v16  ;;  %v4984_v61 = vpop.f32.mrb[15].mxu0 }
 0x2a8   : > { %2959 = vst.msk [vmem:[#allocation2 + $0x38] sm:$0xff] %vm2951_vm2, %v5153_v6  ;;  %5090 = vmatmul.mubr.msk.bf16.gmra.mrb[120].mxu0 %vm582_vm1, %v2505_v52  ;;  %v3212_v52 = vmax.f32 %v3196_v39, 0.0 }
 0x2ab   : > { %v2674_v45 = vpop.f32.mrb[16].mxu0 }
 0x2ac   : > { %v5154_v13 = vadd.f32 %v2674_v45, %v6510_v22  ;;  %v4987_v15 = vpop.f32.mrb[17].mxu0 }
 0x2ad   : > { %v2677_v19 = vpop.f32.mrb[18].mxu0 }
 0x2ae   : > { %2960 = vst.msk [vmem:[#allocation2 + $0x40] sm:$0xff] %vm2951_vm2, %v5154_v13  ;;  %v5155_v16 = vadd.f32 %v2677_v19, %v6512_v25  ;;  %v4988_v48 = vpop.f32.mrb[19].mxu0 }
 0x2af   : > { %v3016_v21 = vld [vmem:[#allocation2 + $0x20] ss:$4 sm:$0xff]  ;;  %v3048_v24 = vld [vmem:[#allocation2 + $0x21] ss:$4 sm:$0xff]  ;;  %v3096_v26 = vld [vmem:[#allocation2 + $0x22] ss:$4 sm:$0xff] }
 0x2b0   : > { %2961 = vst.msk [vmem:[#allocation2 + $0x48] sm:$0xff] %vm2951_vm2, %v5155_v16  ;;  %v3078_v27 = vmax.f32 %v3016_v21, %v3048_v24  ;;  %v3128_v30 = vld [vmem:[#allocation2 + $0x23] ss:$4 sm:$0xff] }
 0x2b1   : > { %v3158_v22 = vmax.f32 %v3096_v26, %v3128_v30 }
 0x2b3   : > { %v2682_v38 = vpop.f32.mrb[20].mxu0  ;;  %v3174_v58 = vmax.f32 %v3078_v27, %v3158_v22 }
 0x2b4   : > { %v5156_v25 = vadd.f32 %v2682_v38, %v6524_v32  ;;  %v4991_v43 = vpop.f32.mrb[21].mxu0 }
 0x2b5   : > { %v2685_v49 = vpop.f32.mrb[22].mxu0  ;;  %v3197_v50 = vadd.f32 %v6750_v36, %v3174_v58 }
 0x2b6   : > { %2962 = vst.msk [vmem:[#allocation2 + $0x50] sm:$0xff] %vm2951_vm2, %v5156_v25  ;;  %v5157_v3 = vadd.f32 %v2685_v49, %v6526_v35  ;;  %v4992_v51 = vpop.f32.mrb[23].mxu0 }
 0x2b7   : > { %v3213_v56 = vmax.f32 %v3197_v50, 0.0 }
 0x2b8   : > { %2963 = vst.msk [vmem:[#allocation2 + $0x58] sm:$0xff] %vm2951_vm2, %v5157_v3 }
 0x2b9   : > { %v3228_v6 = vpack.c.bf16 %v3213_v56, %v3212_v52 }
 0x2bb   : > { %5097 = vmatprep.mubr.msk.bf16.mxu1 %vm2951_vm2, %v3228_v6  ;;  %v2690_v61 = vpop.f32.mrb[24].mxu0 }
 0x2bc   : > { %v5158_v63 = vadd.f32 %v2690_v61, %v6538_v42  ;;  %v4995_v32 = vpop.f32.mrb[25].mxu0 }
 0x2bd   : > { %v2693_v2 = vpop.f32.mrb[26].mxu0 }
 0x2be   : > { %2964 = vst.msk [vmem:[#allocation2 + $0x60] sm:$0xff] %vm2951_vm2, %v5158_v63  ;;  %v5159_v4 = vadd.f32 %v2693_v2, %v6540_v46  ;;  %v4996_v8 = vpop.f32.mrb[27].mxu0 }
 0x2bf   : > { %v3018_v42 = vld [vmem:[#allocation2 + $0x40] ss:$4 sm:$0xff]  ;;  %v3050_v19 = vld [vmem:[#allocation2 + $0x41] ss:$4 sm:$0xff]  ;;  %v3098_v16 = vld [vmem:[#allocation2 + $0x42] ss:$4 sm:$0xff] }
 0x2c0   : > { %2965 = vst.msk [vmem:[#allocation2 + $0x68] sm:$0xff] %vm2951_vm2, %v5159_v4  ;;  %v3130_v48 = vld [vmem:[#allocation2 + $0x43] ss:$4 sm:$0xff]  ;;  %v3079_v21 = vmax.f32 %v3018_v42, %v3050_v19 }
 0x2c1   : > { %v3159_v24 = vmax.f32 %v3098_v16, %v3130_v48 }
 0x2c3   : > { %v2698_v35 = vpop.f32.mrb[28].mxu0  ;;  %v3175_v58 = vmax.f32 %v3079_v21, %v3159_v24 }
 0x2c4   : > { %v5160_v45 = vadd.f32 %v2698_v35, %v6552_v54  ;;  %v4999_v11 = vpop.f32.mrb[29].mxu0 }
 0x2c5   : > { %v2701_v14 = vpop.f32.mrb[30].mxu0 }
 0x2c6   : > { %2966 = vst.msk [vmem:[#allocation2 + $0x70] sm:$0xff] %vm2951_vm2, %v5160_v45  ;;  %v5161_v13 = vadd.f32 %v2701_v14, %v6554_v59  ;;  %v5000_v15 = vpop.f32.mrb[31].mxu0 }
 0x2c8   : > { %2967 = vst.msk [vmem:[#allocation2 + $0x78] sm:$0xff] %vm2951_vm2, %v5161_v13 }
 0x2cb   : > { %v2706_v46 = vpop.f32.mrb[32].mxu0 }
 0x2cc   : > { %v5162_v26 = vadd.f32 %v2706_v46, %v6566_v5  ;;  %v5003_v55 = vpop.f32.mrb[33].mxu0  ;;  %v3198_v5 = vadd.f32 %v6750_v36, %v3175_v58 }
 0x2cd   : > { %v2709_v54 = vpop.f32.mrb[34].mxu0 }
 0x2ce   : > { %2968 = vst.msk [vmem:[#allocation2 + $0x80] sm:$0xff] %vm2951_vm2, %v5162_v26  ;;  %v5163_v27 = vadd.f32 %v2709_v54, %v6568_v9  ;;  %v5004_v30 = vpop.f32.mrb[35].mxu0  ;;  %v3214_v61 = vmax.f32 %v3198_v5, 0.0 }
 0x2cf   : > { %v3020_v59 = vld [vmem:[#allocation2 + $0x60] ss:$4 sm:$0xff]  ;;  %v3052_v22 = vld [vmem:[#allocation2 + $0x61] ss:$4 sm:$0xff]  ;;  %v3100_v38 = vld [vmem:[#allocation2 + $0x62] ss:$4 sm:$0xff] }
 0x2d0   : > { %2969 = vst.msk [vmem:[#allocation2 + $0x88] sm:$0xff] %vm2951_vm2, %v5163_v27  ;;  %v3080_v39 = vmax.f32 %v3020_v59, %v3052_v22  ;;  %v3132_v25 = vld [vmem:[#allocation2 + $0x63] ss:$4 sm:$0xff] }
 0x2d1   : > { %v3160_v43 = vmax.f32 %v3100_v38, %v3132_v25 }
 0x2d3   : > { %v2714_v49 = vpop.f32.mrb[36].mxu0  ;;  %v3176_v50 = vmax.f32 %v3080_v39, %v3160_v43 }
 0x2d4   : > { %v5164_v3 = vadd.f32 %v2714_v49, %v6580_v18  ;;  %v5007_v51 = vpop.f32.mrb[37].mxu0 }
 0x2d5   : > { %v2717_v52 = vpop.f32.mrb[38].mxu0  ;;  %v3199_v9 = vadd.f32 %v6750_v36, %v3176_v50 }
 0x2d6   : > { %2970 = vst.msk [vmem:[#allocation2 + $0x90] sm:$0xff] %vm2951_vm2, %v5164_v3  ;;  %v5165_v56 = vadd.f32 %v2717_v52, %v6582_v0  ;;  %v5008_v6 = vpop.f32.mrb[39].mxu0 }
 0x2d7   : > { %v3215_v63 = vmax.f32 %v3199_v9, 0.0 }
 0x2d8   : > { %2971 = vst.msk [vmem:[#allocation2 + $0x98] sm:$0xff] %vm2951_vm2, %v5165_v56 }
 0x2d9   : > { %v3229_v32 = vpack.c.bf16 %v3215_v63, %v3214_v61 }
 0x2db   : > { %5098 = vmatmul.mubr.msk.bf16.vlgmr.msra.gmra.mrb[124].mxu1 %vm2951_vm2, %v3229_v32  ;;  %v2722_v2 = vpop.f32.mrb[40].mxu0 }
 0x2dc   : > { %v5166_v4 = vadd.f32 %v2722_v2, %v6594_v29  ;;  %v5011_v18 = vpop.f32.mrb[41].mxu0 }
 0x2dd   : > { %v2725_v8 = vpop.f32.mrb[42].mxu0 }
 0x2de   : > { %2972 = vst.msk [vmem:[#allocation2 + $0xa0] sm:$0xff] %vm2951_vm2, %v5166_v4  ;;  %v5167_v35 = vadd.f32 %v2725_v8, %v6596_v33  ;;  %v5012_v45 = vpop.f32.mrb[43].mxu0 }
 0x2df   : > { %v3022_v33 = vld [vmem:[#allocation2 + $0x80] ss:$4 sm:$0xff]  ;;  %v3054_v46 = vld [vmem:[#allocation2 + $0x81] ss:$4 sm:$0xff]  ;;  %v3102_v21 = vld [vmem:[#allocation2 + $0x82] ss:$4 sm:$0xff] }
 0x2e0   : > { %2973 = vst.msk [vmem:[#allocation2 + $0xa8] sm:$0xff] %vm2951_vm2, %v5167_v35  ;;  %v3134_v24 = vld [vmem:[#allocation2 + $0x83] ss:$4 sm:$0xff]  ;;  %v3081_v54 = vmax.f32 %v3022_v33, %v3054_v46 }
 0x2e1   : > { %v3161_v27 = vmax.f32 %v3102_v21, %v3134_v24 }
 0x2e2   : > { %v6782_v0 = vpop.f32.mrb[80].mxu1 }
 0x2e3   : > { %v2730_v11 = vpop.f32.mrb[44].mxu0  ;;  %v4799_v14 = vpop.f32.mrb[81].mxu1  ;;  %v3177_v50 = vmax.f32 %v3081_v54, %v3161_v27 }
 0x2e4   : > { %v5168_v13 = vadd.f32 %v2730_v11, %v6608_v41  ;;  %v5015_v15 = vpop.f32.mrb[45].mxu0  ;;  %v6785_v42 = vpop.f32.mrb[82].mxu1 }
 0x2e5   : > { %v2733_v19 = vpop.f32.mrb[46].mxu0  ;;  %v4800_v29 = vpop.f32.mrb[83].mxu1  ;;  %v3200_v6 = vadd.f32 %v6750_v36, %v3177_v50 }
 0x2e6   : > { %2974 = vst.msk [vmem:[#allocation2 + $0xb0] sm:$0xff] %vm2951_vm2, %v5168_v13  ;;  %v5169_v16 = vadd.f32 %v2733_v19, %v6610_v47  ;;  %v5016_v48 = vpop.f32.mrb[47].mxu0 }
 0x2e7   : > { %v3216_v35 = vmax.f32 %v3200_v6, 0.0 }
 0x2e8   : > { %2975 = vst.msk [vmem:[#allocation2 + $0xb8] sm:$0xff] %vm2951_vm2, %v5169_v16 }
 0x2ea   : > { %v6790_v26 = vpop.f32.mrb[84].mxu1 }
 0x2eb   : > { %v2738_v55 = vpop.f32.mrb[48].mxu0  ;;  %v4803_v41 = vpop.f32.mrb[85].mxu1 }
 0x2ec   : > { %v5170_v30 = vadd.f32 %v2738_v55, %v6622_v57  ;;  %v5019_v59 = vpop.f32.mrb[49].mxu0  ;;  %v6793_v22 = vpop.f32.mrb[86].mxu1 }
 0x2ed   : > { %v2741_v38 = vpop.f32.mrb[50].mxu0  ;;  %v4804_v47 = vpop.f32.mrb[87].mxu1 }
 0x2ee   : > { %2976 = vst.msk [vmem:[#allocation2 + $0xc0] sm:$0xff] %vm2951_vm2, %v5170_v30  ;;  %v5171_v58 = vadd.f32 %v2741_v38, %v6624_v62  ;;  %v5020_v39 = vpop.f32.mrb[51].mxu0 }
 0x2ef   : > { %v3024_v25 = vld [vmem:[#allocation2 + $0xa0] ss:$4 sm:$0xff]  ;;  %v3056_v43 = vld [vmem:[#allocation2 + $0xa1] ss:$4 sm:$0xff]  ;;  %v3104_v49 = vld [vmem:[#allocation2 + $0xa2] ss:$4 sm:$0xff] }
 0x2f0   : > { %2977 = vst.msk [vmem:[#allocation2 + $0xc8] sm:$0xff] %vm2951_vm2, %v5171_v58  ;;  %v3082_v5 = vmax.f32 %v3024_v25, %v3056_v43  ;;  %v3136_v3 = vld [vmem:[#allocation2 + $0xa3] ss:$4 sm:$0xff] }
 0x2f1   : > { %v3162_v51 = vmax.f32 %v3104_v49, %v3136_v3 }
 0x2f2   : > { %v6798_v57 = vpop.f32.mrb[88].mxu1 }
 0x2f3   : > { %v2746_v52 = vpop.f32.mrb[52].mxu0  ;;  %v4807_v9 = vpop.f32.mrb[89].mxu1  ;;  %v3178_v56 = vmax.f32 %v3082_v5, %v3162_v51 }
 0x2f4   : > { %v5172_v61 = vadd.f32 %v2746_v52, %v6639_v12  ;;  %v5023_v62 = vpop.f32.mrb[53].mxu0  ;;  %v6802_v63 = vpop.f32.mrb[90].mxu1 }
 0x2f5   : > { %v2749_v32 = vpop.f32.mrb[54].mxu0  ;;  %v4808_v2 = vpop.f32.mrb[91].mxu1  ;;  %v3201_v4 = vadd.f32 %v6750_v36, %v3178_v56 }
 0x2f6   : > { %2978 = vst.msk [vmem:[#allocation2 + $0xd0] sm:$0xff] %vm2951_vm2, %v5172_v61  ;;  %v5173_v18 = vadd.f32 %v2749_v32, %v6641_v17  ;;  %v5024_v8 = vpop.f32.mrb[55].mxu0 }
 0x2f7   : > { %v3217_v45 = vmax.f32 %v3201_v4, 0.0 }
 0x2f8   : > { %2979 = vst.msk [vmem:[#allocation2 + $0xd8] sm:$0xff] %vm2951_vm2, %v5173_v18 }
 0x2f9   : > { %v3230_v11 = vpack.c.bf16 %v3217_v45, %v3216_v35 }
 0x2fa   : > { %v6808_v14 = vpop.f32.mrb[92].mxu1 }
 0x2fb   : > { %5101 = vmatprep.mubr.msk.bf16.mxu1 %vm2951_vm2, %v3230_v11  ;;  %v2754_v12 = vpop.f32.mrb[56].mxu0  ;;  %v4811_v13 = vpop.f32.mrb[93].mxu1 }
 0x2fc   : > { %v5174_v15 = vadd.f32 %v2754_v12, %v6656_v28  ;;  %v5027_v19 = vpop.f32.mrb[57].mxu0  ;;  %v6812_v29 = vpop.f32.mrb[94].mxu1 }
 0x2fd   : > { %v2757_v16 = vpop.f32.mrb[58].mxu0  ;;  %v4812_v48 = vpop.f32.mrb[95].mxu1 }
 0x2fe   : > { %2980 = vst.msk [vmem:[#allocation2 + $0xe0] sm:$0xff] %vm2951_vm2, %v5174_v15  ;;  %v5175_v17 = vadd.f32 %v2757_v16, %v6658_v34  ;;  %v5028_v33 = vpop.f32.mrb[59].mxu0 }
 0x2ff   : > { %v3026_v34 = vld [vmem:[#allocation2 + $0xc0] ss:$4 sm:$0xff]  ;;  %v3058_v38 = vld [vmem:[#allocation2 + $0xc1] ss:$4 sm:$0xff]  ;;  %v3106_v47 = vld [vmem:[#allocation2 + $0xc2] ss:$4 sm:$0xff] }
 0x300   : > { %2981 = vst.msk [vmem:[#allocation2 + $0xe8] sm:$0xff] %vm2951_vm2, %v5175_v17  ;;  %v3138_v58 = vld [vmem:[#allocation2 + $0xc3] ss:$4 sm:$0xff]  ;;  %v3083_v43 = vmax.f32 %v3026_v34, %v3058_v38 }
 0x301   : > { %v3163_v49 = vmax.f32 %v3106_v47, %v3138_v58 }
 0x302   : > { %v6817_v46 = vpop.f32.mrb[96].mxu1 }
 0x303   : > { %v2762_v21 = vpop.f32.mrb[60].mxu0  ;;  %v4815_v24 = vpop.f32.mrb[97].mxu1  ;;  %v3179_v62 = vmax.f32 %v3083_v43, %v3163_v49 }
 0x304   : > { %v5176_v55 = vadd.f32 %v2762_v21, %v6666_v40  ;;  %v5031_v41 = vpop.f32.mrb[61].mxu0  ;;  %v6820_v28 = vpop.f32.mrb[98].mxu1 }
 0x305   : > { %v2765_v54 = vpop.f32.mrb[62].mxu0  ;;  %v4816_v27 = vpop.f32.mrb[99].mxu1  ;;  %v3202_v45 = vadd.f32 %v6750_v36, %v3179_v62 }
 0x306   : > { %2982 = vst.msk [vmem:[#allocation2 + $0xf0] sm:$0xff] %vm2951_vm2, %v5176_v55  ;;  %v5177_v30 = vadd.f32 %v2765_v54, %v6668_v44  ;;  %v5032_v59 = vpop.f32.mrb[63].mxu0 }
 0x307   : > { %v3218_v17 = vmax.f32 %v3202_v45, 0.0 }
 0x308   : > { %2983 = vst.msk [vmem:[#allocation2 + $0xf8] sm:$0xff] %vm2951_vm2, %v5177_v30 }
 0x30a   : > { %v6825_v39 = vpop.f32.mrb[100].mxu1 }
 0x30b   : > { %v2770_v25 = vpop.f32.mrb[64].mxu0  ;;  %v4819_v40 = vpop.f32.mrb[101].mxu1 }
 0x30c   : > { %v5178_v50 = vadd.f32 %v2770_v25, %v6675_v53  ;;  %v5035_v5 = vpop.f32.mrb[65].mxu0  ;;  %v6828_v3 = vpop.f32.mrb[102].mxu1 }
 0x30d   : > { %v2773_v51 = vpop.f32.mrb[66].mxu0  ;;  %v4820_v44 = vpop.f32.mrb[103].mxu1 }
 0x30e   : > { %2984 = vst.msk [vmem:[#allocation2 + $0x100] sm:$0xff] %vm2951_vm2, %v5178_v50  ;;  %v5179_v52 = vadd.f32 %v2773_v51, %v6677_v60  ;;  %v5036_v9 = vpop.f32.mrb[67].mxu0 }
 0x30f   : > { %v3028_v56 = vld [vmem:[#allocation2 + $0xe0] ss:$4 sm:$0xff]  ;;  %v3060_v6 = vld [vmem:[#allocation2 + $0xe1] ss:$4 sm:$0xff]  ;;  %v3108_v61 = vld [vmem:[#allocation2 + $0xe2] ss:$4 sm:$0xff] }
 0x310   : > { %2985 = vst.msk [vmem:[#allocation2 + $0x108] sm:$0xff] %vm2951_vm2, %v5179_v52  ;;  %v3084_v32 = vmax.f32 %v3028_v56, %v3060_v6  ;;  %v3140_v2 = vld [vmem:[#allocation2 + $0xe3] ss:$4 sm:$0xff] }
 0x311   : > { %v3164_v4 = vmax.f32 %v3108_v61, %v3140_v2 }
 0x312   : > { %v6833_v53 = vpop.f32.mrb[104].mxu1 }
 0x313   : > { %v2778_v18 = vpop.f32.mrb[68].mxu0  ;;  %v4823_v8 = vpop.f32.mrb[105].mxu1  ;;  %v3180_v35 = vmax.f32 %v3084_v32, %v3164_v4 }
 0x314   : > { %v5180_v11 = vadd.f32 %v2778_v18, %v6684_v7  ;;  %v5039_v60 = vpop.f32.mrb[69].mxu0  ;;  %v6837_v12 = vpop.f32.mrb[106].mxu1 }
 0x315   : > { %v2781_v13 = vpop.f32.mrb[70].mxu0  ;;  %v4824_v15 = vpop.f32.mrb[107].mxu1  ;;  %v3203_v19 = vadd.f32 %v6750_v36, %v3180_v35 }
 0x316   : > { %2986 = vst.msk [vmem:[#allocation2 + $0x110] sm:$0xff] %vm2951_vm2, %v5180_v11  ;;  %v5181_v16 = vadd.f32 %v2781_v13, %v6686_v10  ;;  %v5040_v48 = vpop.f32.mrb[71].mxu0 }
 0x317   : > { %v3219_v33 = vmax.f32 %v3203_v19, 0.0 }
 0x318   : > { %2987 = vst.msk [vmem:[#allocation2 + $0x118] sm:$0xff] %vm2951_vm2, %v5181_v16 }
 0x319   : > { %v3231_v21 = vpack.c.bf16 %v3219_v33, %v3218_v17 }
 0x31a   : > { %v6843_v24 = vpop.f32.mrb[108].mxu1 }
 0x31b   : > { %5102 = vmatmul.mubr.msk.bf16.gmra.mrb[128].mxu1 %vm2951_vm2, %v3231_v21  ;;  %v2786_v7 = vpop.f32.mrb[72].mxu0  ;;  %v4827_v55 = vpop.f32.mrb[109].mxu1 }
 0x31c   : > { %v5182_v41 = vadd.f32 %v2786_v7, %v6693_v20  ;;  %v5043_v54 = vpop.f32.mrb[73].mxu0  ;;  %v6847_v27 = vpop.f32.mrb[110].mxu1 }
 0x31d   : > { %v2789_v30 = vpop.f32.mrb[74].mxu0  ;;  %v4828_v59 = vpop.f32.mrb[111].mxu1 }
 0x31e   : > { %2988 = vst.msk [vmem:[#allocation2 + $0x120] sm:$0xff] %vm2951_vm2, %v5182_v41  ;;  %v5183_v10 = vadd.f32 %v2789_v30, %v6695_v23  ;;  %v5044_v34 = vpop.f32.mrb[75].mxu0 }
 0x31f   : > { %v3030_v23 = vld [vmem:[#allocation2 + $0x100] ss:$4 sm:$0xff]  ;;  %v3062_v51 = vld [vmem:[#allocation2 + $0x101] ss:$4 sm:$0xff]  ;;  %v3110_v44 = vld [vmem:[#allocation2 + $0x102] ss:$4 sm:$0xff] }
 0x320   : > { %2989 = vst.msk [vmem:[#allocation2 + $0x128] sm:$0xff] %vm2951_vm2, %v5183_v10  ;;  %v3142_v52 = vld [vmem:[#allocation2 + $0x103] ss:$4 sm:$0xff]  ;;  %v3085_v6 = vmax.f32 %v3030_v23, %v3062_v51 }
 0x321   : > { %v3165_v61 = vmax.f32 %v3110_v44, %v3142_v52 }
 0x322   : > { %v6852_v38 = vpop.f32.mrb[112].mxu1 }
 0x323   : > { %v2794_v47 = vpop.f32.mrb[76].mxu0  ;;  %v4831_v58 = vpop.f32.mrb[113].mxu1  ;;  %v3181_v60 = vmax.f32 %v3085_v6, %v3165_v61 }
 0x324   : > { %v5184_v25 = vadd.f32 %v2794_v47, %v6702_v31  ;;  %v5047_v40 = vpop.f32.mrb[77].mxu0  ;;  %v6855_v20 = vpop.f32.mrb[114].mxu1 }
 0x325   : > { %v2797_v43 = vpop.f32.mrb[78].mxu0  ;;  %v4832_v49 = vpop.f32.mrb[115].mxu1  ;;  %v3204_v33 = vadd.f32 %v6750_v36, %v3181_v60 }
 0x326   : > { %2990 = vst.msk [vmem:[#allocation2 + $0x130] sm:$0xff] %vm2951_vm2, %v5184_v25  ;;  %v5185_v50 = vadd.f32 %v2797_v43, %v6704_v37  ;;  %v5048_v5 = vpop.f32.mrb[79].mxu0 }
 0x327   : > { %v3220_v10 = vmax.f32 %v3204_v33, 0.0 }
 0x328   : > { %2991 = vst.msk [vmem:[#allocation2 + $0x138] sm:$0xff] %vm2951_vm2, %v5185_v50 }
 0x32a   : > { %v6860_v9 = vpop.f32.mrb[116].mxu1 }
 0x32b   : > { %v2802_v56 = vpop.f32.mrb[80].mxu0  ;;  %v4835_v31 = vpop.f32.mrb[117].mxu1 }
 0x32c   : > { %v5186_v62 = vadd.f32 %v2802_v56, %v6782_v0  ;;  %v5051_v32 = vpop.f32.mrb[81].mxu0  ;;  %v6863_v2 = vpop.f32.mrb[118].mxu1 }
 0x32d   : > { %v2805_v4 = vpop.f32.mrb[82].mxu0  ;;  %v4836_v37 = vpop.f32.mrb[119].mxu1 }
 0x32e   : > { %2992 = vst.msk [vmem:[#allocation2 + $0x140] sm:$0xff] %vm2951_vm2, %v5186_v62  ;;  %v5187_v18 = vadd.f32 %v2805_v4, %v6785_v42  ;;  %v5052_v8 = vpop.f32.mrb[83].mxu0 }
 0x32f   : > { %v3032_v35 = vld [vmem:[#allocation2 + $0x120] ss:$4 sm:$0xff]  ;;  %v3064_v45 = vld [vmem:[#allocation2 + $0x121] ss:$4 sm:$0xff]  ;;  %v3112_v11 = vld [vmem:[#allocation2 + $0x122] ss:$4 sm:$0xff] }
 0x330   : > { %2993 = vst.msk [vmem:[#allocation2 + $0x148] sm:$0xff] %vm2951_vm2, %v5187_v18  ;;  %v3086_v13 = vmax.f32 %v3032_v35, %v3064_v45  ;;  %v3144_v15 = vld [vmem:[#allocation2 + $0x123] ss:$4 sm:$0xff] }
 0x331   : > { %v3166_v19 = vmax.f32 %v3112_v11, %v3144_v15 }
 0x332   : > { %v6868_v0 = vpop.f32.mrb[120].mxu1 }
 0x333   : > { %v2810_v16 = vpop.f32.mrb[84].mxu0  ;;  %v4839_v48 = vpop.f32.mrb[121].mxu1  ;;  %v3182_v17 = vmax.f32 %v3086_v13, %v3166_v19 }
 0x334   : > { %v5188_v21 = vadd.f32 %v2810_v16, %v6790_v26  ;;  %v5055_v42 = vpop.f32.mrb[85].mxu0  ;;  %v6872_v7 = vpop.f32.mrb[122].mxu1 }
 0x335   : > { %v2813_v55 = vpop.f32.mrb[86].mxu0  ;;  %v4840_v41 = vpop.f32.mrb[123].mxu1  ;;  %v3205_v54 = vadd.f32 %v6750_v36, %v3182_v17 }
 0x336   : > { %2994 = vst.msk [vmem:[#allocation2 + $0x150] sm:$0xff] %vm2951_vm2, %v5188_v21  ;;  %v5189_v30 = vadd.f32 %v2813_v55, %v6793_v22  ;;  %v5056_v59 = vpop.f32.mrb[87].mxu0 }
 0x337   : > { %v3221_v34 = vmax.f32 %v3205_v54, 0.0 }
 0x338   : > { %2995 = vst.msk [vmem:[#allocation2 + $0x158] sm:$0xff] %vm2951_vm2, %v5189_v30 }
 0x339   : > { %v3232_v47 = vpack.c.bf16 %v3221_v34, %v3220_v10 }
 0x33b   : > { %5105 = vmatprep.mubr.msk.bf16.mxu1 %vm2951_vm2, %v3232_v47  ;;  %v2818_v26 = vpop.f32.mrb[88].mxu0 }
 0x33c   : > { %v5190_v58 = vadd.f32 %v2818_v26, %v6798_v57  ;;  %v5059_v25 = vpop.f32.mrb[89].mxu0 }
 0x33d   : > { %v2821_v40 = vpop.f32.mrb[90].mxu0 }
 0x33e   : > { %2996 = vst.msk [vmem:[#allocation2 + $0x160] sm:$0xff] %vm2951_vm2, %v5190_v58  ;;  %v5191_v43 = vadd.f32 %v2821_v40, %v6802_v63  ;;  %v5060_v49 = vpop.f32.mrb[91].mxu0 }
 0x33f   : > { %v3034_v57 = vld [vmem:[#allocation2 + $0x140] ss:$4 sm:$0xff]  ;;  %v3066_v52 = vld [vmem:[#allocation2 + $0x141] ss:$4 sm:$0xff]  ;;  %v3114_v56 = vld [vmem:[#allocation2 + $0x142] ss:$4 sm:$0xff] }
 0x340   : > { %2997 = vst.msk [vmem:[#allocation2 + $0x168] sm:$0xff] %vm2951_vm2, %v5191_v43  ;;  %v3146_v31 = vld [vmem:[#allocation2 + $0x143] ss:$4 sm:$0xff]  ;;  %v3087_v6 = vmax.f32 %v3034_v57, %v3066_v52 }
 0x341   : > { %v3167_v61 = vmax.f32 %v3114_v56, %v3146_v31 }
 0x343   : > { %v2826_v22 = vpop.f32.mrb[92].mxu0  ;;  %v3183_v35 = vmax.f32 %v3087_v6, %v3167_v61 }
 0x344   : > { %v5192_v50 = vadd.f32 %v2826_v22, %v6808_v14  ;;  %v5063_v5 = vpop.f32.mrb[93].mxu0 }
 0x345   : > { %v2829_v23 = vpop.f32.mrb[94].mxu0 }
 0x346   : > { %2998 = vst.msk [vmem:[#allocation2 + $0x170] sm:$0xff] %vm2951_vm2, %v5192_v50  ;;  %v5193_v51 = vadd.f32 %v2829_v23, %v6812_v29  ;;  %v5064_v44 = vpop.f32.mrb[95].mxu0 }
 0x348   : > { %2999 = vst.msk [vmem:[#allocation2 + $0x178] sm:$0xff] %vm2951_vm2, %v5193_v51 }
 0x34b   : > { %v2834_v63 = vpop.f32.mrb[96].mxu0 }
 0x34c   : > { %v5194_v62 = vadd.f32 %v2834_v63, %v6817_v46  ;;  %v5067_v32 = vpop.f32.mrb[97].mxu0  ;;  %v3206_v46 = vadd.f32 %v6750_v36, %v3183_v35 }
 0x34d   : > { %v2837_v14 = vpop.f32.mrb[98].mxu0 }
 0x34e   : > { %3000 = vst.msk [vmem:[#allocation2 + $0x180] sm:$0xff] %vm2951_vm2, %v5194_v62  ;;  %v5195_v4 = vadd.f32 %v2837_v14, %v6820_v28  ;;  %v5068_v37 = vpop.f32.mrb[99].mxu0  ;;  %v3222_v21 = vmax.f32 %v3206_v46, 0.0 }
 0x34f   : > { %v3036_v29 = vld [vmem:[#allocation2 + $0x160] ss:$4 sm:$0xff]  ;;  %v3068_v18 = vld [vmem:[#allocation2 + $0x161] ss:$4 sm:$0xff]  ;;  %v3116_v8 = vld [vmem:[#allocation2 + $0x162] ss:$4 sm:$0xff] }
 0x350   : > { %3001 = vst.msk [vmem:[#allocation2 + $0x188] sm:$0xff] %vm2951_vm2, %v5195_v4  ;;  %v3088_v45 = vmax.f32 %v3036_v29, %v3068_v18  ;;  %v3148_v11 = vld [vmem:[#allocation2 + $0x163] ss:$4 sm:$0xff] }
 0x351   : > { %v3168_v60 = vmax.f32 %v3116_v8, %v3148_v11 }
 0x353   : > { %v2842_v13 = vpop.f32.mrb[100].mxu0  ;;  %v3184_v15 = vmax.f32 %v3088_v45, %v3168_v60 }
 0x354   : > { %v5196_v19 = vadd.f32 %v2842_v13, %v6825_v39  ;;  %v5071_v16 = vpop.f32.mrb[101].mxu0 }
 0x355   : > { %v2845_v48 = vpop.f32.mrb[102].mxu0  ;;  %v3207_v28 = vadd.f32 %v6750_v36, %v3184_v15 }
 0x356   : > { %3002 = vst.msk [vmem:[#allocation2 + $0x190] sm:$0xff] %vm2951_vm2, %v5196_v19  ;;  %v5197_v17 = vadd.f32 %v2845_v48, %v6828_v3  ;;  %v5072_v33 = vpop.f32.mrb[103].mxu0 }
 0x357   : > { %v3223_v42 = vmax.f32 %v3207_v28, 0.0 }
 0x358   : > { %3003 = vst.msk [vmem:[#allocation2 + $0x198] sm:$0xff] %vm2951_vm2, %v5197_v17 }
 0x359   : > { %v3233_v55 = vpack.c.bf16 %v3223_v42, %v3222_v21 }
 0x35b   : > { %5106 = vmatmul.mubr.msk.bf16.gmra.mrb[132].mxu1 %vm2951_vm2, %v3233_v55  ;;  %v2850_v41 = vpop.f32.mrb[104].mxu0 }
 0x35c   : > { %v5198_v54 = vadd.f32 %v2850_v41, %v6833_v53  ;;  %v5075_v39 = vpop.f32.mrb[105].mxu0 }
 0x35d   : > { %v2853_v30 = vpop.f32.mrb[106].mxu0 }
 0x35e   : > { %3004 = vst.msk [vmem:[#allocation2 + $0x1a0] sm:$0xff] %vm2951_vm2, %v5198_v54  ;;  %v5199_v59 = vadd.f32 %v2853_v30, %v6837_v12  ;;  %v5076_v10 = vpop.f32.mrb[107].mxu0 }
 0x35f   : > { %v3038_v53 = vld [vmem:[#allocation2 + $0x180] ss:$4 sm:$0xff]  ;;  %v3070_v40 = vld [vmem:[#allocation2 + $0x181] ss:$4 sm:$0xff]  ;;  %v3118_v43 = vld [vmem:[#allocation2 + $0x182] ss:$4 sm:$0xff] }
 0x360   : > { %3005 = vst.msk [vmem:[#allocation2 + $0x1a8] sm:$0xff] %vm2951_vm2, %v5199_v59  ;;  %v3150_v49 = vld [vmem:[#allocation2 + $0x183] ss:$4 sm:$0xff]  ;;  %v3089_v22 = vmax.f32 %v3038_v53, %v3070_v40 }
 0x361   : > { %v3169_v50 = vmax.f32 %v3118_v43, %v3150_v49 }
 0x363   : > { %v2858_v3 = vpop.f32.mrb[108].mxu0  ;;  %v3185_v56 = vmax.f32 %v3089_v22, %v3169_v50 }
 0x364   : > { %v5200_v34 = vadd.f32 %v2858_v3, %v6843_v24  ;;  %v5079_v47 = vpop.f32.mrb[109].mxu0 }
 0x365   : > { %v2861_v26 = vpop.f32.mrb[110].mxu0 }
 0x366   : > { %3006 = vst.msk [vmem:[#allocation2 + $0x1b0] sm:$0xff] %vm2951_vm2, %v5200_v34  ;;  %v5201_v58 = vadd.f32 %v2861_v26, %v6847_v27  ;;  %v5080_v25 = vpop.f32.mrb[111].mxu0 }
 0x368   : > { %3007 = vst.msk [vmem:[#allocation2 + $0x1b8] sm:$0xff] %vm2951_vm2, %v5201_v58 }
 0x36b   : > { %v2866_v12 = vpop.f32.mrb[112].mxu0 }
 0x36c   : > { %v5202_v5 = vadd.f32 %v2866_v12, %v6852_v38  ;;  %v5083_v23 = vpop.f32.mrb[113].mxu0  ;;  %v3208_v38 = vadd.f32 %v6750_v36, %v3185_v56 }
 0x36d   : > { %v2869_v24 = vpop.f32.mrb[114].mxu0 }
 0x36e   : > { %3008 = vst.msk [vmem:[#allocation2 + $0x1c0] sm:$0xff] %vm2951_vm2, %v5202_v5  ;;  %v5203_v51 = vadd.f32 %v2869_v24, %v6855_v20  ;;  %v5084_v44 = vpop.f32.mrb[115].mxu0  ;;  %v3224_v18 = vmax.f32 %v3208_v38, 0.0 }
 0x36f   : > { %v3040_v27 = vld [vmem:[#allocation2 + $0x1a0] ss:$4 sm:$0xff]  ;;  %v3072_v57 = vld [vmem:[#allocation2 + $0x1a1] ss:$4 sm:$0xff]  ;;  %v3120_v52 = vld [vmem:[#allocation2 + $0x1a2] ss:$4 sm:$0xff] }
 0x370   : > { %3009 = vst.msk [vmem:[#allocation2 + $0x1c8] sm:$0xff] %vm2951_vm2, %v5203_v51  ;;  %v3090_v31 = vmax.f32 %v3040_v27, %v3072_v57  ;;  %v3152_v63 = vld [vmem:[#allocation2 + $0x1a3] ss:$4 sm:$0xff] }
 0x371   : > { %v3170_v6 = vmax.f32 %v3120_v52, %v3152_v63 }
 0x373   : > { %v2874_v61 = vpop.f32.mrb[116].mxu0  ;;  %v3186_v62 = vmax.f32 %v3090_v31, %v3170_v6 }
 0x374   : > { %v5204_v32 = vadd.f32 %v2874_v61, %v6860_v9  ;;  %v5087_v14 = vpop.f32.mrb[117].mxu0 }
 0x375   : > { %v2877_v4 = vpop.f32.mrb[118].mxu0  ;;  %v3209_v20 = vadd.f32 %v6750_v36, %v3186_v62 }
 0x376   : > { %3010 = vst.msk [vmem:[#allocation2 + $0x1d0] sm:$0xff] %vm2951_vm2, %v5204_v32  ;;  %v5205_v37 = vadd.f32 %v2877_v4, %v6863_v2  ;;  %v5088_v29 = vpop.f32.mrb[119].mxu0 }
 0x377   : > { %v3225_v8 = vmax.f32 %v3209_v20, 0.0 }
 0x378   : > { %3011 = vst.msk [vmem:[#allocation2 + $0x1d8] sm:$0xff] %vm2951_vm2, %v5205_v37 }
 0x379   : > { %v3234_v35 = vpack.c.bf16 %v3225_v8, %v3224_v18 }
 0x37b   : > { %5109 = vmatprep.mubr.msk.bf16.mxu1 %vm2951_vm2, %v3234_v35  ;;  %v2882_v45 = vpop.f32.mrb[120].mxu0 }
 0x37c   : > { %v5206_v11 = vadd.f32 %v2882_v45, %v6868_v0  ;;  %v5091_v9 = vpop.f32.mrb[121].mxu0 }
 0x37d   : > { %v2885_v60 = vpop.f32.mrb[122].mxu0 }
 0x37e   : > { %3012 = vst.msk [vmem:[#allocation2 + $0x1e0] sm:$0xff] %vm2951_vm2, %v5206_v11  ;;  %v5207_v13 = vadd.f32 %v2885_v60, %v6872_v7  ;;  %v5092_v15 = vpop.f32.mrb[123].mxu0 }
 0x37f   : > { %v3042_v46 = vld [vmem:[#allocation2 + $0x1c0] ss:$4 sm:$0xff]  ;;  %v3074_v2 = vld [vmem:[#allocation2 + $0x1c1] ss:$4 sm:$0xff]  ;;  %v3122_v19 = vld [vmem:[#allocation2 + $0x1c2] ss:$4 sm:$0xff] }
 0x380   : > { %3013 = vst.msk [vmem:[#allocation2 + $0x1e8] sm:$0xff] %vm2951_vm2, %v5207_v13  ;;  %v3154_v16 = vld [vmem:[#allocation2 + $0x1c3] ss:$4 sm:$0xff]  ;;  %v3091_v48 = vmax.f32 %v3042_v46, %v3074_v2 }
 0x381   : > { %v3171_v28 = vmax.f32 %v3122_v19, %v3154_v16 }
 0x383   : > { %v3187_v21 = vmax.f32 %v3091_v48, %v3171_v28 }
 0x385   : > { %v3210_v39 = vadd.f32 %v6750_v36, %v3187_v21 }
 0x387   : > { %v3044_v17 = vld [vmem:[#allocation2 + $0x1e0] ss:$4 sm:$0xf]  ;;  %v3076_v33 = vld [vmem:[#allocation2 + $0x1e1] ss:$4 sm:$0xf] }
 0x388   : > { %v3092_v42 = vmax.f32 %v3044_v17, %v3076_v33  ;;  %v3124_v0 = vld [vmem:[#allocation2 + $0x1e2] ss:$4 sm:$0xf]  ;;  %v3156_v55 = vld [vmem:[#allocation2 + $0x1e3] ss:$4 sm:$0xf] }
 0x389   : > { %v3172_v41 = vmax.f32 %v3124_v0, %v3156_v55  ;;  %v3226_v30 = vmax.f32 %v3210_v39, 0.0 }
 0x38b   : > { %v3188_v54 = vmax.f32 %v3092_v42, %v3172_v41 }
 0x38d   : > { %v3211_v7 = vadd.f32 %v6750_v36, %v3188_v54 }
 0x38f   : > { %v3227_v59 = vmax.f32 %v3211_v7, 0.0 }
 0x391   : > { %v3235_v10 = vpack.c.bf16 %v3227_v59, %v3226_v30 }
 0x393   : > { %5110 = vmatmul.mubr.msk.bf16.gmra.mrb[136].mxu1 %vm2951_vm2, %v3235_v10 }
 0x3ae   : > { %v5099_v3 = vpop.f32.mrb[124].mxu1 }
 0x3af   : > { %v6924_v34 = vpop.f32.mrb[125].mxu1  ;;  %v3393_v26 = vrot.slane %v5099_v3, 1  ;;  %v3485_v58 = vrot.slane %v5099_v3, 2 }
 0x3b0   : > { %v6926_v47 = vpop.f32.mrb[126].mxu1  ;;  %v3390_v36 = vrot.slane %v6924_v34, 1  ;;  %v3482_v12 = vrot.slane %v6924_v34, 2 }
 0x3b1   : > { %v3395_v25 = vrot.slane %v6926_v47, 1  ;;  %v3487_v53 = vrot.slane %v6926_v47, 2  ;;  %v3313_v40 = vpop.f32.mrb[127].mxu1 }
 0x3b2   : > { %v3391_v43 = vrot.slane %v3313_v40, 1  ;;  %v3483_v49 = vrot.slane %v3313_v40, 2 }
 0x3b3   : > { %v3488_v22 = vsel %vm3481_vm3, %v3485_v58, %v3487_v53  ;;  %v3396_v50 = vsel %vm3389_vm4, %v3393_v26, %v3395_v25 }
 0x3b4   : > { %3517 = vrot.lane.b32.xlu0 %v3488_v22, %s5721_s30  ;;  %3425 = vrot.lane.b32.xlu1 %v3396_v50, %s5722_s12  ;;  %v3486_v5 = vsel %vm3481_vm3, %v3483_v49, %v3485_v58  ;;  %v3392_v23 = vsel %vm3389_vm4, %v3390_v36, %v3391_v43  ;;  %v3394_v24 = vsel %vm3389_vm4, %v3391_v43, %v3393_v26  ;;  %v5635_v36 = vld [vmem:[%s7216_s5 + $0x4] ss:$8 sps:$4 sm:$0xff]   ;;  %v5633_v43 = vld [vmem:[%s7216_s5] ss:$8 sps:$4 sm:$0xff]   ;;  %v5723_v22 = vmov 0  }
 0x3b5   : > { %v3484_v51 = vsel %vm3481_vm3, %v3482_v12, %v3483_v49  ;;  %3678 = vmatprep.subr.bf16.mxu1 %v5635_v36  ;;  %v5638_v49 = vld [vmem:[%s7216_s5 + $0x14] ss:$8 sps:$4 sm:$0xff]   ;;  %v5636_v12 = vld [vmem:[%s7216_s5 + $0x10] ss:$8 sps:$4 sm:$0xff]   ;;  %3710 = vmatprep.mubr.bf16.mxu1 %v5723_v22 }
 0x3b6   : > { %3679 = vmatpush1.bf16.msra.mxu1 %v5633_v43 }
 0x3b7   : > { %3680 = vmatprep.subr.bf16.mxu1 %v5638_v49 }
 0x3b8   : > { %3515 = vrot.lane.b32.xlu1 %v3486_v5, %s5721_s30  ;;  %3421 = vrot.lane.b32.xlu0 %v3392_v23, %s5722_s12 }
 0x3ba   : > { %3681 = vmatpush1.bf16.msra.mxu1 %v5636_v12 }
 0x3bc   : > { %3423 = vrot.lane.b32.xlu0 %v3394_v24, %s5722_s12 }
 0x3c0   : > { %3513 = vrot.lane.b32.xlu0 %v3484_v51, %s5721_s30 }
 0x3ee   : > { %v6944_v44 = vpop.f32.mrb[128].mxu1 }
 0x3ef   : > { %v6946_v27 = vpop.f32.mrb[129].mxu1  ;;  %v3401_v31 = vrot.slane %v6944_v44, 1  ;;  %v3493_v63 = vrot.slane %v6944_v44, 2 }
 0x3f0   : > { %v3397_v57 = vrot.slane %v6946_v27, 1  ;;  %v3489_v52 = vrot.slane %v6946_v27, 2  ;;  %v6950_v56 = vpop.f32.mrb[130].mxu1 }
 0x3f1   : > { %v3403_v6 = vrot.slane %v6950_v56, 1  ;;  %v3495_v61 = vrot.slane %v6950_v56, 2  ;;  %v6956_v62 = vpop.f32.mrb[131].mxu1 }
 0x3f2   : > { %v3399_v38 = vrot.slane %v6956_v62, 1  ;;  %v3491_v32 = vrot.slane %v6956_v62, 2  ;;  %v3398_v14 = vsel %vm3389_vm4, %v3395_v25, %v3397_v57  ;;  %v3490_v4 = vsel %vm3481_vm3, %v3487_v53, %v3489_v52 }
 0x3f3   : > { %3427 = vrot.lane.b32.xlu1 %v3398_v14, %s5722_s12  ;;  %v3404_v20 = vsel %vm3389_vm4, %v3401_v31, %v3403_v6  ;;  %v3496_v37 = vsel %vm3481_vm3, %v3493_v63, %v3495_v61 }
 0x3f4   : > { %3433 = vrot.lane.b32.xlu0 %v3404_v20, %s5722_s12  ;;  %v3402_v29 = vsel %vm3389_vm4, %v3399_v38, %v3401_v31  ;;  %v3400_v18 = vsel %vm3389_vm4, %v3397_v57, %v3399_v38  ;;  %v3494_v8 = vsel %vm3481_vm3, %v3491_v32, %v3493_v63  ;;  %v3492_v35 = vsel %vm3481_vm3, %v3489_v52, %v3491_v32 }
 0x3f7   : > { %3519 = vrot.lane.b32.xlu1 %v3490_v4, %s5721_s30 }
 0x3f8   : > { %3525 = vrot.lane.b32.xlu0 %v3496_v37, %s5721_s30 }
 0x3fb   : > { %3431 = vrot.lane.b32.xlu1 %v3402_v29, %s5722_s12 }
 0x3fc   : > { %3429 = vrot.lane.b32.xlu0 %v3400_v18, %s5722_s12 }
 0x3ff   : > { %3523 = vrot.lane.b32.xlu1 %v3494_v8, %s5721_s30 }
 0x400   : > { %3521 = vrot.lane.b32.xlu0 %v3492_v35, %s5721_s30 }
 0x426   : > { %v3518_v45 = vpop.permute.xlu0 %3517  ;;  %v3426_v11 = vpop.permute.xlu1 %3425 }
 0x427   : > { %v3468_v9 = vadd.f32 %v5099_v3, %v3426_v11 }
 0x429   : > { %v3560_v60 = vadd.f32 %v3518_v45, %v3468_v9 }
 0x42a   : > { %v3422_v13 = vpop.permute.xlu0 %3421  ;;  %v3516_v16 = vpop.permute.xlu1 %3515 }
 0x42b   : > { %3575 = vst.msk [vmem:[#allocation3 + $0x10] sm:$0xff] %vm2951_vm2, %v3560_v60  ;;  %v3466_v48 = vadd.f32 %v3422_v13, %v6924_v34 }
 0x42e   : > { %v3424_v15 = vpop.permute.xlu0 %3423  ;;  %v6977_v46 = vpop.f32.mrb[132].mxu1 }
 0x42f   : > { %v3467_v2 = vadd.f32 %v3424_v15, %v3313_v40  ;;  %v6979_v19 = vpop.f32.mrb[133].mxu1  ;;  %v3409_v28 = vrot.slane %v6977_v46, 1  ;;  %v3501_v0 = vrot.slane %v6977_v46, 2 }
 0x430   : > { %v3405_v17 = vrot.slane %v6979_v19, 1  ;;  %v3497_v33 = vrot.slane %v6979_v19, 2  ;;  %v6985_v21 = vpop.f32.mrb[134].mxu1 }
 0x431   : > { %v3559_v42 = vadd.f32 %v3516_v16, %v3467_v2  ;;  %v3411_v55 = vrot.slane %v6985_v21, 1  ;;  %v3503_v41 = vrot.slane %v6985_v21, 2  ;;  %v6990_v54 = vpop.f32.mrb[135].mxu1 }
 0x432   : > { %v3407_v39 = vrot.slane %v6990_v54, 1  ;;  %v3499_v7 = vrot.slane %v6990_v54, 2  ;;  %v3514_v30 = vpop.permute.xlu0 %3513  ;;  %v3406_v59 = vsel %vm3389_vm4, %v3403_v6, %v3405_v17  ;;  %v3498_v10 = vsel %vm3481_vm3, %v3495_v61, %v3497_v33 }
 0x433   : > { %3574 = vst.msk [vmem:[#allocation3 + $0x8] sm:$0xff] %vm2951_vm2, %v3559_v42  ;;  %v3558_v3 = vadd.f32 %v3514_v30, %v3466_v48  ;;  %3435 = vrot.lane.b32.xlu1 %v3406_v59, %s5722_s12  ;;  %v3412_v34 = vsel %vm3389_vm4, %v3409_v28, %v3411_v55  ;;  %v3504_v26 = vsel %vm3481_vm3, %v3501_v0, %v3503_v41 }
 0x434   : > { %3441 = vrot.lane.b32.xlu0 %v3412_v34, %s5722_s12  ;;  %v3408_v58 = vsel %vm3389_vm4, %v3405_v17, %v3407_v39  ;;  %v3502_v25 = vsel %vm3481_vm3, %v3499_v7, %v3501_v0  ;;  %v3410_v53 = vsel %vm3389_vm4, %v3407_v39, %v3409_v28  ;;  %v3500_v40 = vsel %vm3481_vm3, %v3497_v33, %v3499_v7 }
 0x435   : > { %3573 = vst.msk [vmem:[#allocation3] sm:$0xff] %vm2951_vm2, %v3558_v3 }
 0x437   : > { %3527 = vrot.lane.b32.xlu1 %v3498_v10, %s5721_s30 }
 0x438   : > { %3437 = vrot.lane.b32.xlu0 %v3408_v58, %s5722_s12 }
 0x43b   : > { %3533 = vrot.lane.b32.xlu1 %v3504_v26, %s5721_s30 }
 0x43c   : > { %3531 = vrot.lane.b32.xlu0 %v3502_v25, %s5721_s30 }
 0x43f   : > { %3439 = vrot.lane.b32.xlu1 %v3410_v53, %s5722_s12 }
 0x443   : > { %3529 = vrot.lane.b32.xlu1 %v3500_v40, %s5721_s30 }
 0x465   : > { %v3428_v50 = vpop.permute.xlu1 %3427 }
 0x466   : > { %v3434_v5 = vpop.permute.xlu0 %3433  ;;  %v7025_v23 = vpop.f32.mrb[136].mxu1  ;;  %v3469_v51 = vadd.f32 %v6926_v47, %v3428_v50 }
 0x467   : > { %v7027_v24 = vpop.f32.mrb[137].mxu1  ;;  %v3472_v57 = vadd.f32 %v6944_v44, %v3434_v5  ;;  %v3417_v6 = vrot.slane %v7025_v23, 1  ;;  %v3509_v61 = vrot.slane %v7025_v23, 2 }
 0x468   : > { %v3413_v52 = vrot.slane %v7027_v24, 1  ;;  %v3505_v31 = vrot.slane %v7027_v24, 2  ;;  %v5112_v63 = vpop.f32.mrb[138].mxu1 }
 0x469   : > { %v3419_v38 = vrot.slane %v5112_v63, 1  ;;  %v3511_v32 = vrot.slane %v5112_v63, 2  ;;  %v3520_v14 = vpop.permute.xlu1 %3519  ;;  %v7035_v4 = vpop.f32.mrb[139].mxu1 }
 0x46a   : > { %v3561_v20 = vadd.f32 %v3520_v14, %v3469_v51  ;;  %v3415_v37 = vrot.slane %v7035_v4, 1  ;;  %v3507_v47 = vrot.slane %v7035_v4, 2  ;;  %v3526_v44 = vpop.permute.xlu0 %3525  ;;  %v3506_v29 = vsel %vm3481_vm3, %v3503_v41, %v3505_v31 }
 0x46b   : > { %v3564_v18 = vadd.f32 %v3526_v44, %v3472_v57  ;;  %3535 = vrot.lane.b32.xlu0 %v3506_v29, %s5721_s30  ;;  %v3414_v8 = vsel %vm3389_vm4, %v3411_v55, %v3413_v52  ;;  %v3420_v35 = vsel %vm3389_vm4, %v3417_v6, %v3419_v38  ;;  %v3512_v45 = vsel %vm3481_vm3, %v3509_v61, %v3511_v32  ;;  %v4263_v57 = vld [vmem:[%s7215_s4] ss:$0 sm:$0xff] }
 0x46c   : > { %3576 = vst.msk [vmem:[#allocation3 + $0x18] sm:$0xff] %vm2951_vm2, %v3561_v20  ;;  %3443 = vrot.lane.b32.xlu1 %v3414_v8, %s5722_s12  ;;  %v3418_v11 = vsel %vm3389_vm4, %v3415_v37, %v3417_v6  ;;  %v3508_v9 = vsel %vm3481_vm3, %v3505_v31, %v3507_v47  ;;  %v3416_v60 = vsel %vm3389_vm4, %v3413_v52, %v3415_v37 }
 0x46d   : > { %v3510_v13 = vsel %vm3481_vm3, %v3507_v47, %v3509_v61  ;;  %3579 = vst.msk [vmem:[#allocation3 + $0x30] sm:$0xff] %vm2951_vm2, %v3564_v18  ;;  %v3432_v15 = vpop.permute.xlu1 %3431 }
 0x46e   : > { %v3430_v2 = vpop.permute.xlu0 %3429  ;;  %v3471_v16 = vadd.f32 %v3432_v15, %v6956_v62 }
 0x46f   : > { %3449 = vrot.lane.b32.xlu0 %v3420_v35, %s5722_s12  ;;  %v3470_v48 = vadd.f32 %v3430_v2, %v6946_v27 }
 0x470   : > { %3447 = vrot.lane.b32.xlu1 %v3418_v11, %s5722_s12 }
 0x471   : > { %v3524_v28 = vpop.permute.xlu1 %3523 }
 0x472   : > { %v3563_v17 = vadd.f32 %v3524_v28, %v3471_v16  ;;  %v3522_v33 = vpop.permute.xlu0 %3521 }
 0x473   : > { %v3562_v42 = vadd.f32 %v3522_v33, %v3470_v48  ;;  %3445 = vrot.lane.b32.xlu0 %v3416_v60, %s5722_s12  ;;  %v3588_v39 = vld [vmem:[#allocation3] ss:$4 sm:$0xff]  ;;  %v3596_v30 = vld [vmem:[#allocation3 + $0x1] ss:$4 sm:$0xff]  ;;  %v3608_v59 = vld [vmem:[#allocation3 + $0x2] ss:$4 sm:$0xff] }
 0x474   : > { %3578 = vst.msk [vmem:[#allocation3 + $0x28] sm:$0xff] %vm2951_vm2, %v3563_v17  ;;  %3537 = vrot.lane.b32.xlu1 %v3508_v9, %s5721_s30  ;;  %v3616_v10 = vld [vmem:[#allocation3 + $0x3] ss:$4 sm:$0xff]  ;;  %v3603_v58 = vmax.f32 %v3588_v39, %v3596_v30  ;;  %s4012_s12 = scalar_lea.sflag [#allocation6], %s377_s15 }
 0x475   : > { %3577 = vst.msk [vmem:[#allocation3 + $0x20] sm:$0xff] %vm2951_vm2, %v3562_v42  ;;  %v3623_v25 = vmax.f32 %v3608_v59, %v3616_v10 }
 0x477   : > { %3539 = vrot.lane.b32.xlu0 %v3510_v13, %s5721_s30 }
 0x478   : > { %3541 = vrot.lane.b32.xlu1 %v3512_v45, %s5721_s30 }
 0x4a5   : > { %v3436_v62 = vpop.permute.xlu1 %3435 }
 0x4a6   : > { %v3442_v0 = vpop.permute.xlu0 %3441  ;;  %v3473_v27 = vadd.f32 %v6950_v56, %v3436_v62 }
 0x4a7   : > { %v3476_v7 = vadd.f32 %v6977_v46, %v3442_v0  ;;  %v3627_v46 = vmax.f32 %v3603_v58, %v3623_v25 }
 0x4a9   : > { %v3528_v55 = vpop.permute.xlu1 %3527  ;;  %v3638_v6 = vadd.f32 %v4263_v57, %v3627_v46  ;;  %v5644_v46 = vld [vmem:[%s7218_s7 + $0x14] ss:$8 sps:$4 sm:$0xff]  }
 0x4aa   : > { %v3565_v41 = vadd.f32 %v3528_v55, %v3473_v27  ;;  %v3438_v3 = vpop.permute.xlu0 %3437 }
 0x4ab   : > { %v3474_v12 = vadd.f32 %v3438_v3, %v6979_v19  ;;  %v3642_v38 = vmax.f32 %v3638_v6, 0.0 }
 0x4ac   : > { %3580 = vst.msk [vmem:[#allocation3 + $0x38] sm:$0xff] %vm2951_vm2, %v3565_v41 }
 0x4ad   : > { %v3534_v34 = vpop.permute.xlu1 %3533 }
 0x4ae   : > { %v3568_v26 = vadd.f32 %v3534_v34, %v3476_v7  ;;  %v3532_v40 = vpop.permute.xlu0 %3531 }
 0x4b0   : > { %3583 = vst.msk [vmem:[#allocation3 + $0x50] sm:$0xff] %vm2951_vm2, %v3568_v26 }
 0x4b1   : > { %v3440_v53 = vpop.permute.xlu1 %3439 }
 0x4b2   : > { %v3475_v56 = vadd.f32 %v3440_v53, %v6990_v54 }
 0x4b3   : > { %v3590_v36 = vld [vmem:[#allocation3 + $0x20] ss:$4 sm:$0xff]  ;;  %v3598_v43 = vld [vmem:[#allocation3 + $0x21] ss:$4 sm:$0xff]  ;;  %v3610_v49 = vld [vmem:[#allocation3 + $0x22] ss:$4 sm:$0xff] }
 0x4b4   : > { %v3567_v50 = vadd.f32 %v3532_v40, %v3475_v56  ;;  %v3604_v5 = vmax.f32 %v3590_v36, %v3598_v43  ;;  %v3618_v51 = vld [vmem:[#allocation3 + $0x23] ss:$4 sm:$0xff] }
 0x4b5   : > { %v3530_v52 = vpop.permute.xlu1 %3529  ;;  %v3624_v31 = vmax.f32 %v3610_v49, %v3618_v51  ;;  %v5639_v43 = vld [vmem:[%s7218_s7] ss:$8 sps:$4 sm:$0xff]  }
 0x4b6   : > { %3582 = vst.msk [vmem:[#allocation3 + $0x48] sm:$0xff] %vm2951_vm2, %v3567_v50  ;;  %v3566_v63 = vadd.f32 %v3530_v52, %v3474_v12 }
 0x4b7   : > { %v3628_v54 = vmax.f32 %v3604_v5, %v3624_v31 }
 0x4b8   : > { %3581 = vst.msk [vmem:[#allocation3 + $0x40] sm:$0xff] %vm2951_vm2, %v3566_v63 }
 0x4b9   : > { %v3639_v61 = vadd.f32 %v4263_v57, %v3628_v54  ;;  %v5647_v54 = vld [vmem:[%s7218_s7 + $0x24] ss:$8 sps:$4 sm:$0xff]  }
 0x4bb   : > { %v3643_v32 = vmax.f32 %v3639_v61, 0.0 }
 0x4bd   : > { %v3646_v19 = vpack.c.bf16 %v3643_v32, %v3642_v38 }
 0x4bf   : > { %4268 = vmatmul.mubr.msk.bf16.vlgmr.msra.gmra.mrb[140].mxu1 %vm2951_vm2, %v3646_v19  ;;  %v5645_v19 = vld [vmem:[%s7218_s7 + $0x20] ss:$8 sps:$4 sm:$0xff]  }
 0x4c0   : > { %3720 = vmatprep.mubr.bf16.mxu1 %v5723_v22 }
 0x4dd   : > { %v3536_v14 = vpop.permute.xlu0 %3535 }
 0x4de   : > { %v3444_v20 = vpop.permute.xlu1 %3443 }
 0x4df   : > { %v3477_v37 = vadd.f32 %v6985_v21, %v3444_v20  ;;  %v5648_v20 = vld [vmem:[%s7218_s7 + $0x30] ss:$8 sps:$4 sm:$0xff]  }
 0x4e1   : > { %v3569_v47 = vadd.f32 %v3536_v14, %v3477_v37  ;;  %v3450_v44 = vpop.permute.xlu0 %3449  ;;  %v5650_v14 = vld [vmem:[%s7218_s7 + $0x34] ss:$8 sps:$4 sm:$0xff]  }
 0x4e2   : > { %v3448_v29 = vpop.permute.xlu1 %3447  ;;  %v3480_v9 = vadd.f32 %v7025_v23, %v3450_v44 }
 0x4e3   : > { %3584 = vst.msk [vmem:[#allocation3 + $0x58] sm:$0xff] %vm2951_vm2, %v3569_v47  ;;  %v3479_v45 = vadd.f32 %v3448_v29, %v7035_v4 }
 0x4e5   : > { %v3446_v18 = vpop.permute.xlu0 %3445 }
 0x4e6   : > { %v3538_v8 = vpop.permute.xlu1 %3537  ;;  %v3478_v35 = vadd.f32 %v3446_v18, %v7027_v24 }
 0x4e8   : > { %v3570_v11 = vadd.f32 %v3538_v8, %v3478_v35 }
 0x4e9   : > { %v3540_v60 = vpop.permute.xlu0 %3539 }
 0x4ea   : > { %3585 = vst.msk [vmem:[#allocation3 + $0x60] sm:$0xff] %vm2951_vm2, %v3570_v11  ;;  %v3542_v13 = vpop.permute.xlu1 %3541  ;;  %v3571_v15 = vadd.f32 %v3540_v60, %v3479_v45  ;;  %v3592_v2 = vld [vmem:[#allocation3 + $0x40] ss:$4 sm:$0xff]  ;;  %v3600_v16 = vld [vmem:[#allocation3 + $0x41] ss:$4 sm:$0xff] }
 0x4eb   : > { %v3572_v21 = vadd.f32 %v3542_v13, %v3480_v9  ;;  %v3612_v48 = vld [vmem:[#allocation3 + $0x42] ss:$4 sm:$0xff]  ;;  %v3620_v28 = vld [vmem:[#allocation3 + $0x43] ss:$4 sm:$0xff]  ;;  %v3605_v24 = vmax.f32 %v3592_v2, %v3600_v16 }
 0x4ec   : > { %3586 = vst.msk [vmem:[#allocation3 + $0x68] sm:$0xff] %vm2951_vm2, %v3571_v15  ;;  %v3625_v17 = vmax.f32 %v3612_v48, %v3620_v28 }
 0x4ed   : > { %3587 = vst.msk [vmem:[#allocation3 + $0x70] sm:$0xff] %vm2951_vm2, %v3572_v21 }
 0x4ee   : > { %v3629_v42 = vmax.f32 %v3605_v24, %v3625_v17  ;;  %v4270_v24 = vld [vmem:[%s7217_s6] ss:$0 sm:$0xff] }
 0x4f0   : > { %v3640_v41 = vadd.f32 %v4263_v57, %v3629_v42 }
 0x4f2   : > { %v3644_v7 = vmax.f32 %v3640_v41, 0.0 }
 0x4f4   : > { %v3594_v4 = vld [vmem:[#allocation3 + $0x60] ss:$4 sm:$0x3f]  ;;  %v3602_v33 = vld [vmem:[#allocation3 + $0x61] ss:$4 sm:$0x3f] }
 0x4f5   : > { %v3606_v23 = vmax.f32 %v3594_v4, %v3602_v33  ;;  %v3614_v62 = vld [vmem:[#allocation3 + $0x62] ss:$4 sm:$0x3f]  ;;  %v3622_v0 = vld [vmem:[#allocation3 + $0x63] ss:$4 sm:$0x3f] }
 0x4f6   : > { %v3626_v27 = vmax.f32 %v3614_v62, %v3622_v0  ;;  %v3916_v62 = vld [vmem:[%s7220_s9 + $0x8] sm:$0xff] }
 0x4f8   : > { %v3630_v55 = vmax.f32 %v3606_v23, %v3626_v27  ;;  %v3915_v23 = vld [vmem:[%s7220_s9] sm:$0xff]  ;;  %v5724_v27 = vmov 0.0|0.0  }
 0x4f9   : > { %v5133_v0 = vpack.c.bf16 %v3916_v62, %v3915_v23 }
 0x4fa   : > { %v3641_v39 = vadd.f32 %v4263_v57, %v3630_v55  ;;  %v5642_v57 = vld [vmem:[%s7218_s7 + $0x10] ss:$8 sps:$4 sm:$0xff]  }
 0x4fb   : > { %v3917_v55 = vld [vmem:[%s7220_s9 + $0x10] sm:$0xff] }
 0x4fc   : > { %v3645_v30 = vmax.f32 %v3641_v39, 0.0 }
 0x4fe   : > { %v3647_v59 = vpack.c.bf16 %v3645_v30, %v3644_v7 }
 0x500   : > { %4269 = vmatmul.mubr.msk.bf16.gmra.mrb[144].mxu1 %vm2951_vm2, %v3647_v59  ;;  %v3919_v59 = vld [vmem:[%s7220_s9 + $0x20] sm:$0xff] }
 0x501   : > { %3886 = vmatprep.mubr.bf16.mxu1 %v5723_v22  ;;  %v5641_v22 = vld [vmem:[%s7218_s7 + $0x4] ss:$8 sps:$4 sm:$0xff]  }
 0x502   : > { %3854 = vmatprep.subr.bf16.mxu1 %v5641_v22 }
 0x503   : > { %3855 = vmatpush1.bf16.msra.mxu1 %v5639_v43 }
 0x504   : > { %3856 = vmatprep.subr.bf16.mxu1 %v5644_v46 }
 0x507   : > { %3857 = vmatpush1.bf16.msra.mxu1 %v5642_v57 }
 0x508   : > { %3858 = vmatprep.subr.bf16.mxu1 %v5647_v54 }
 0x50b   : > { %3859 = vmatpush1.bf16.msra.mxu1 %v5645_v19 }
 0x50c   : > { %3860 = vmatprep.subr.bf16.mxu1 %v5650_v14 }
 0x50f   : > { %3861 = vmatpush1.bf16.msra.mxu1 %v5648_v20 }
 0x510   : > { %5132 = vmatprep.subr.bf16.mxu1 %v5724_v27 }
 0x592   : > { %v3712_v10 = vpop.f32.mrb[140].mxu1 }
 0x593   : > { %v3714_v3 = vpop.f32.mrb[141].mxu1  ;;  %v3735_v26 = vrot.slane %v3712_v10, 1 }
 0x594   : > { %v3716_v34 = vpop.f32.mrb[142].mxu1  ;;  %v3762_v53 = vrot.slane %v3714_v3, 2 }
 0x595   : > { %v3736_v58 = vrot.slane %v3716_v34, 1  ;;  %v3718_v25 = vpop.f32.mrb[143].mxu1 }
 0x596   : > { %v3763_v56 = vrot.slane %v3718_v25, 2  ;;  %v3922_v25 = vld [vmem:[%s7220_s9 + $0x38] sm:$0xff] }
 0x597   : > { %v3737_v40 = vsel %vm3389_vm4, %v3735_v26, %v3736_v58 }
 0x598   : > { %3742 = vrot.lane.b32.xlu0 %v3737_v40, %s5721_s30  ;;  %v3764_v36 = vsel %vm3481_vm3, %v3762_v53, %v3763_v56 }
 0x5d3   : > { %v3722_v49 = vpop.f32.mrb[144].mxu1 }
 0x5d4   : > { %v3738_v12 = vrot.slane %v3722_v49, 1  ;;  %v3724_v50 = vpop.f32.mrb[145].mxu1 }
 0x5d5   : > { %v3765_v5 = vrot.slane %v3724_v50, 2  ;;  %v3726_v51 = vpop.f32.mrb[146].mxu1 }
 0x5d6   : > { %v3740_v52 = vrot.slane %v3726_v51, 1  ;;  %v3728_v31 = vpop.f32.mrb[147].mxu1  ;;  %v3739_v63 = vsel %vm3389_vm4, %v3736_v58, %v3738_v12  ;;  %v3921_v58 = vld [vmem:[%s7220_s9 + $0x30] sm:$0xff] }
 0x5d7   : > { %v3767_v6 = vrot.slane %v3728_v31, 2  ;;  %3744 = vrot.lane.b32.xlu1 %v3739_v63, %s5721_s30  ;;  %v3766_v61 = vsel %vm3481_vm3, %v3763_v56, %v3765_v5  ;;  %v5142_v53 = vpack.c.bf16 %v3922_v25, %v3921_v58  ;;  %v3923_v63 = vld [vmem:[%s7221_s10] sm:$0x1] }
 0x5d8   : > { %v3741_v38 = vsel %vm3389_vm4, %v3738_v12, %v3740_v52 }
 0x5d9   : > { %3746 = vrot.lane.b32.xlu0 %v3741_v38, %s5721_s30  ;;  %v3768_v32 = vsel %vm3481_vm3, %v3765_v5, %v3767_v6 }
 0x5db   : > { %3748 = vrot.lane.b32.xlu1 %v3740_v52, %s5721_s30 }
 0x60a   : > { %v3743_v37 = vpop.permute.xlu0 %3742 }
 0x60b   : > { %v3754_v47 = vadd.f32 %v3743_v37, %v3712_v10  ;;  %v3920_v10 = vld [vmem:[%s7220_s9 + $0x28] sm:$0xff] }
 0x60d   : > { %v3773_v44 = vadd.f32 %v3764_v36, %v3754_v47 }
 0x60f   : > { %3778 = vst.msk [vmem:[#allocation4] sm:$0xff] %vm3777_vm5, %v3773_v44 }
 0x649   : > { %v3745_v29 = vpop.permute.xlu1 %3744 }
 0x64a   : > { %v3755_v18 = vadd.f32 %v3745_v29, %v3716_v34  ;;  %v5139_v34 = vpack.c.bf16 %v3920_v10, %v3919_v59 }
 0x64b   : > { %v3747_v8 = vpop.permute.xlu0 %3746 }
 0x64c   : > { %v3774_v35 = vadd.f32 %v3766_v61, %v3755_v18  ;;  %v3756_v45 = vadd.f32 %v3747_v8, %v3722_v49 }
 0x64d   : > { %v3749_v11 = vpop.permute.xlu1 %3748 }
 0x64e   : > { %3779 = vst.msk [vmem:[#allocation4 + $0x8] sm:$0xff] %vm3777_vm5, %v3774_v35  ;;  %v3775_v9 = vadd.f32 %v3768_v32, %v3756_v45  ;;  %v3757_v60 = vadd.f32 %v3749_v11, %v3726_v51  ;;  %v3912_v51 = vld [vmem:[%s7219_s8] sm:$0x1] }
 0x650   : > { %3780 = vst.msk [vmem:[#allocation4 + $0x10] sm:$0xff] %vm3777_vm5, %v3775_v9  ;;  %v3776_v13 = vadd.f32 %v3767_v6, %v3757_v60 }
 0x652   : > { %3782 = vst.msk [vmem:[#allocation4 + $0x18] sm:$0xf] %vm3781_vm6, %v3776_v13 }
 0x659   : > { %v3783_v15 = vld [vmem:[#allocation4] ss:$4 sm:$0x7f]  ;;  %v3785_v21 = vld [vmem:[#allocation4 + $0x1] ss:$4 sm:$0x7f] }
 0x65a   : > { %v3786_v2 = vmax.f32 %v3783_v15, %v3785_v21  ;;  %v3788_v16 = vld [vmem:[#allocation4 + $0x2] ss:$4 sm:$0x7f]  ;;  %v3790_v48 = vld [vmem:[#allocation4 + $0x3] ss:$4 sm:$0x7f] }
 0x65b   : > { %v3791_v28 = vmax.f32 %v3788_v16, %v3790_v48 }
 0x65d   : > { %v3792_v17 = vmax.f32 %v3786_v2, %v3791_v28 }
 0x65f   : > { %v3800_v4 = vadd.f32 %v4270_v24, %v3792_v17 }
 0x661   : > { %v3801_v33 = vmax.f32 %v3800_v4, 0.0 }
 0x663   : > { %v3802_v42 = vpack.c.bf16 %v3801_v33, %v3801_v33 }
 0x665   : > { %4279 = vmatmul.mubr.msk.bf16.vlgmr.msra.gmra.mrb[148].mxu1 %vm3777_vm5, %v3802_v42 }
 0x666   : > { %5129 = vmatprep.mubr.msk.f32.mxu1 %vm5720_vm0, %v5719_v1  ;;  %5134 = vmatpush3.bf16.msra.mxu1 %v5133_v0  ;;  %v3918_v1 = vld [vmem:[%s7220_s9 + $0x18] sm:$0xff] }
 0x667   : > { %5135 = vmatprep.subr.bf16.mxu1 %v5724_v27  ;;  %v5136_v41 = vpack.c.bf16 %v3918_v1, %v3917_v55 }
 0x66a   : > { %5137 = vmatpush3.bf16.msra.mxu1 %v5136_v41 }
 0x66b   : > { %5138 = vmatprep.subr.bf16.mxu1 %v5724_v27 }
 0x66e   : > { %5140 = vmatpush3.bf16.msra.mxu1 %v5139_v34 }
 0x66f   : > { %5141 = vmatprep.subr.bf16.mxu1 %v5724_v27 }
 0x672   : > { %5143 = vmatpush3.bf16.msra.mxu1 %v5142_v53 }
 0x738   : > { %v3888_v39 = vpop.f32.mrb[148].mxu1 }
 0x739   : > { %v3896_v7 = vrot.slane %v3888_v39, 1  ;;  %v3890_v30 = vpop.f32.mrb[149].mxu1 }
 0x73a   : > { %v3892_v3 = vpop.f32.mrb[150].mxu1  ;;  %v3902_v40 = vrot.slane %v3890_v30, 2 }
 0x73b   : > { %3897 = vrot.lane.b32.xlu0 %v3896_v7, %s5721_s30  ;;  %v3893_v26 = vpop.f32.mrb[151].mxu1  ;;  %s7168_s30 = scalar_lea.hbm %s7222_s11, %s4281_s16 }
 0x7ad   : > { %v3898_v56 = vpop.permute.xlu0 %3897 }
 0x7ae   : > { %v3900_v36 = vadd.f32 %v3898_v56, %v3888_v39 }
 0x7b0   : > { %v3904_v43 = vadd.f32 %v3902_v40, %v3900_v36 }
 0x7b2   : > { %v3905_v22 = vsel %vm3781_vm6, %v3904_v43, -inf }
 0x7b3   : > { %v3906_v49 = vrot.slane %v3905_v22, 4 }
 0x7b5   : > { %v3907_v46 = vmax.f32 %v3905_v22, %v3906_v49 }
 0x7b7   : > { %v3908_v12 = vrot.slane %v3907_v46, 2 }
 0x7b9   : > { %v3909_v50 = vmax.f32 %v3907_v46, %v3908_v12 }
 0x7bb   : > { %v3910_v5 = vrot.slane %v3909_v50, 1 }
 0x7bd   : > { %v3911_v57 = vmax.f32 %v3909_v50, %v3910_v5 }
 0x7bf   : > { %v3913_v52 = vadd.f32 %v3912_v51, %v3911_v57 }
 0x7c1   : > { %v3914_v31 = vmax.f32 %v3913_v52, 0.0 }
 0x7c3   : > { %5130 = vmatmul.mubr.msk.f32.vlgmr.msra.gmra.mrb[152].mxu1 %vm3777_vm5, %v3914_v31 }
 0x896   : > { %v3993_v54 = vpop.f32.mrb[152].mxu1 }
 0x897   : > { %v3994_v6 = vadd.f32 %v3993_v54, %v3923_v63  ;;  %v5131_v61 = vpop.f32.mrb[153].mxu1 }
 0x899   : > { %v3998_v38 = vsel %vm3997_vm7, %v3994_v6, -inf }
 0x89a   : > { %3999 = vmax.xlane.f32.xlu1 %v3998_v38 }
 0x927   : > { %v4000_v32 = vpop.xlane.xlu1 %3999 }
 0x928   : > { %v4001_v19 = vsub.f32 %v3994_v6, %v4000_v32 }
 0x92a   : > { %v4002_v14 = vmul.f32 1.442695, %v4001_v19 }
 0x92c   : > { %5651 = vpow2.f32 %v4002_v14 }
 0x936   : > { %v5652_v20 = vpop.eup %5651 }
 0x937   : > { %v4004_v37 = vsel %vm3997_vm7, %v5652_v20, 0.0 }
 0x938   : > { %4005 = vadd.xlane.f32.xlu0 %v4004_v37 }
 0x9c5   : > { %v4006_v47 = vpop.xlane.xlu0 %4005 }
 0x9c6   : > { %5653 = vlog2.f32 %v4006_v47 }
 0x9d0   : > { %v5654_v44 = vpop.eup %5653 }
 0x9d1   : > { %v4008_v29 = vmul.f32 0.6931472, %v5654_v44 }
 0x9d3   : > { %v4009_v18 = vsub.f32 %v4001_v19, %v4008_v29 }
 0x9d5   : > { %4010 = vst.msk [vmem:[%s378_s22] sm:$0x1] %vm3997_vm7, %v4009_v18 }
 0x9d6   : > { %5668 = shalt.err (!%p5665_p3)
}
 0x9d7   : > { %s5669_s15 = scalar_lea.hbm %s7168_s30, 16  ;;  %s5673_s24 = scalar_lea.hbm %s7222_s11, 32 }
 0x9d8   : > { %p5670_p4 = scmp.ne.s32.totalorder %s7168_s30, %s5669_s15  ;;  %p5674_p9 = scmp.lt.u32.totalorder %s7168_s30, %s7222_s11 }
 0x9d9   : > { %p5675_p10 = scmp.lt.u32.totalorder %s5673_s24, %s5669_s15  ;;  %p5677_p12 = scmp.lt.u32.totalorder %s5669_s15, %s7168_s30 }
 0x9da   : > { %p5671_p7 = pnand %p5670_p4, %p5824_p5 }
 0x9db   : > { %p5676_p11 = por %p5675_p10, %p5674_p9 }
 0x9dc   : > { %p5672_p8 = pneg %p5671_p7 }
 0x9dd   : > { %p5678_p13 = por %p5677_p12, %p5676_p11 }
 0x9df   : > { %p5679_p0 = pnand %p5678_p13, %p5672_p8 }
 0x9e1   : > { %5682 = shalt.err (!%p5679_p0)
}
 0x9e2   : > { %5581 = dma.vmem_to_hbm [thread:$0]  (%p5824_p5), %s7170_s25, 16, %s7168_s30, %s4012_s12  }
 0x9e3 PF: > { %p5587_p1 = scmp.ge.s32.totalorder %s5717_s20, 2  ;;  %s4036_s0 = sand.u32 1, %s5705_s17  }
 0x9e4   : > { %s4037_s13 = scalar_lea.sflag [#allocation6], %s4036_s0 }
 0x9e5   : > { %p5584_p2 = pnand %p5587_p1, %p5828_p6 }
 0x9e7   : > { %5700 = dma.done.wait (!%p5584_p2), %s4037_s13, 16  }
 0x9e8   : > { %5702 = vsyncadd (!%p5584_p2), %s4037_s13, 4294967280  ;;  %p21_p3 = scmp.ge.s32.totalorder %s5811_s23, 4   ;;  %s7227_s17 = smov %s5709_s18 }
 0x9e9   : > { %s7228_s18 = smov %s5713_s19  ;;  %s7229_s19 = smov %s5822_s26 }
 0x9ea   : > { %s7230_s20 = smov %s5811_s23  ;;  %23 = sbr.rel (!%p21_p3) target bundleno = 5 (0x5), region = 184 }
 0x9f1   :  { %4041 = vsyncpa [#allocation6], 1 }
 0x9f2   :  { %4043 = vsyncpa [#allocation6 + $0x1], 1 }

</bundles_post_ra>
